<compile_context>
chip_gen: v7x
topology: tpu7x:2x2x1
jax: 0.10.0
libtpu: 0.0.40
codegen_flags: <defaults>
</compile_context>

<pallas_src>
import functools
import math

import jax
import jax.numpy as jnp
from jax import lax
from jax.experimental import pallas as pl
from jax.experimental.pallas import tpu as pltpu

RGB_MEAN = jnp.array([0.4488, 0.4371, 0.4040], jnp.float32)


# ----------------------------------------------------------------------------
# Pallas kernels
# ----------------------------------------------------------------------------
def _body_kernel(x_ref, mean_ref, cw_ref, cb_ref, carw_ref, carb_ref, o_ref,
                 pad_ref, head_ref, res_ref, *, H, W, F, n_carb):
    """Fused CARN body for one batch element (everything VMEM-resident).

    x_ref   : (1, H, W, F)   NHWC input, channels zero-padded n_colors -> F
    mean_ref: (1, 1, F)      rgb_range * rgb_mean, zero-padded (sub_mean fused)
    cw_ref  : (L, 9, F, F)   bf16 stacked conv taps, L = 2 + 4*n_carb
                             (head conv Cin rows zero-padded to F)
    cb_ref  : (L, 1, F)      f32 conv biases
    carw_ref: (2*n_carb, F, F) bf16 folded CAR 1x1 pairs, zero-padded to (F, F)
    carb_ref: (2*n_carb, 1, F) f32 folded CAR biases (padding exactly zero)
    o_ref   : (1, H, W, F)
    pad_ref : VMEM (H+2, W+2, F) zero-padded activation scratch
    head_ref: VMEM (H*W, F)      long-skip source
    res_ref : VMEM (H*W, F)      CARB residual carry
    """
    f32 = jnp.float32

    # --- zero only the 4 one-pixel border strips (interior is always fully
    # overwritten by to_pad / the head store below).  Cheap enough to redo per
    # grid step, which keeps "parallel" batch splitting across cores safe.
    z_row = jnp.zeros((1, W + 2, F), f32)
    pad_ref[0:1, :, :] = z_row
    pad_ref[H + 1:H + 2, :, :] = z_row
    z_col = jnp.zeros((H + 2, 1, F), f32)
    pad_ref[:, 0:1, :] = z_col
    pad_ref[:, W + 1:W + 2, :] = z_col

    def conv_from_pad(layer, relu):
        """3x3 same conv of the pad interior: 9 accumulated MXU matmuls."""
        wl = cw_ref[layer]                                     # (9, F, F) bf16
        acc = jnp.zeros((H * W, F), f32)
        for dy in range(3):
            for dx in range(3):
                win = pad_ref[dy:dy + H, dx:dx + W, :].reshape(H * W, F)
                acc = acc + jnp.dot(win.astype(jnp.bfloat16), wl[dy * 3 + dx],
                                    preferred_element_type=f32)
        acc = acc + cb_ref[layer]                              # (1, F) f32
        if relu:
            acc = jnp.maximum(acc, 0.0)
        return acc                                             # (H*W, F) f32

    def to_pad(h_flat):
        pad_ref[1:H + 1, 1:W + 1, :] = h_flat.reshape(H, W, F)

    # --- head: fused sub_mean + conv3x3 (n_colors -> F).  Channels
    # [n_colors, F) of both input and mean are zero (padded in the wrapper),
    # matching the zero-padded head-weight rows -> exact, no garbage reads.
    pad_ref[1:H + 1, 1:W + 1, :] = x_ref[0] - mean_ref[...]
    head = conv_from_pad(0, relu=False)
    head_ref[...] = head
    res_ref[...] = head

    # --- CARB blocks (dynamic weight indexing; res carried in VMEM) ----------
    def carb_body(g, carry):
        base = 1 + 4 * g
        to_pad(res_ref[...])
        h = conv_from_pad(base + 0, relu=False)
        to_pad(h)
        h = conv_from_pad(base + 1, relu=True)
        to_pad(h)
        h = conv_from_pad(base + 2, relu=False)
        to_pad(h)
        h = conv_from_pad(base + 3, relu=True)

        # CAR: global-avg-pool + folded(1x1,1x1) + ReLU + folded(1x1,1x1)
        # + sigmoid gate, then the CARB residual add.  Zero-padded weight
        # rows/cols and zero-padded biases keep the padded (F,F) matmuls exact
        # (padding stays exactly zero after the bf16 cast).
        y = jnp.mean(h, axis=0, keepdims=True)                 # (1, F) f32
        y = jnp.dot(y.astype(jnp.bfloat16), carw_ref[2 * g + 0],
                    preferred_element_type=f32) + carb_ref[2 * g + 0]
        y = jnp.maximum(y, 0.0)
        y = jnp.dot(y.astype(jnp.bfloat16), carw_ref[2 * g + 1],
                    preferred_element_type=f32) + carb_ref[2 * g + 1]
        y = jax.nn.sigmoid(y)
        res_ref[...] = h * y + res_ref[...]
        return carry

    lax.fori_loop(0, n_carb, carb_body, 0)

    # --- body-tail conv + long skip -------------------------------------------
    to_pad(res_ref[...])
    out = conv_from_pad(1 + 4 * n_carb, relu=False) + head_ref[...]
    o_ref[...] = out.reshape(1, H, W, F)


def _conv3x3_kernel(x_ref, w_ref, b_ref, o_ref, pad_ref, *,
                    H, W, Cin, Cout, relu):
    """3x3 same conv (+ optional ReLU), one batch element, no im2col scratch.

    x_ref: (1, H, W, Cin) f32; w_ref: (9, Cin, Cout) bf16; b_ref: (1, Cout) f32
    o_ref: (1, H, W, Cout); pad_ref: VMEM (H+2, W+2, Cin) f32
    """
    f32 = jnp.float32
    z_row = jnp.zeros((1, W + 2, Cin), f32)
    pad_ref[0:1, :, :] = z_row
    pad_ref[H + 1:H + 2, :, :] = z_row
    z_col = jnp.zeros((H + 2, 1, Cin), f32)
    pad_ref[:, 0:1, :] = z_col
    pad_ref[:, W + 1:W + 2, :] = z_col
    pad_ref[1:H + 1, 1:W + 1, :] = x_ref[0]

    acc = jnp.zeros((H * W, Cout), f32)
    for dy in range(3):
        for dx in range(3):
            win = pad_ref[dy:dy + H, dx:dx + W, :].reshape(H * W, Cin)
            acc = acc + jnp.dot(win.astype(jnp.bfloat16), w_ref[dy * 3 + dx],
                                preferred_element_type=f32)
    acc = acc + b_ref[...]
    if relu:
        acc = jnp.maximum(acc, 0.0)
    o_ref[...] = acc.reshape(1, H, W, Cout)


# ----------------------------------------------------------------------------
# Pallas wrappers
# ----------------------------------------------------------------------------
_COMPILER_PARAMS = pltpu.CompilerParams(
    dimension_semantics=("parallel",),          # batch across TCs on v7x
    vmem_limit_bytes=64 * 1024 * 1024,          # beyond scoped default
)


def carn_body(x_nhwc, params):
    """Fused sub_mean + head + CARBs + body-tail conv + long skip."""
    N, H, W, nc = x_nhwc.shape
    F = params["n_feats"]
    n_carb = params["n_carb"]
    L = params["body_cw"].shape[0]
    if F > nc:  # channel-pad input so the kernel only does full-lane stores
        x_nhwc = jnp.pad(x_nhwc, ((0, 0), (0, 0), (0, 0), (0, F - nc)))
    return pl.pallas_call(
        functools.partial(_body_kernel, H=H, W=W, F=F, n_carb=n_carb),
        out_shape=jax.ShapeDtypeStruct((N, H, W, F), jnp.float32),
        grid=(N,),
        in_specs=[
            pl.BlockSpec((1, H, W, F), lambda n: (n, 0, 0, 0)),
            pl.BlockSpec((1, 1, F), lambda n: (0, 0, 0)),
            pl.BlockSpec((L, 9, F, F), lambda n: (0, 0, 0, 0)),
            pl.BlockSpec((L, 1, F), lambda n: (0, 0, 0)),
            pl.BlockSpec((2 * n_carb, F, F), lambda n: (0, 0, 0)),
            pl.BlockSpec((2 * n_carb, 1, F), lambda n: (0, 0, 0)),
        ],
        out_specs=pl.BlockSpec((1, H, W, F), lambda n: (n, 0, 0, 0)),
        scratch_shapes=[
            pltpu.VMEM((H + 2, W + 2, F), jnp.float32),   # padded activation
            pltpu.VMEM((H * W, F), jnp.float32),          # x_head (long skip)
            pltpu.VMEM((H * W, F), jnp.float32),          # res carry
        ],
        compiler_params=_COMPILER_PARAMS,
    )(x_nhwc, params["mean"], params["body_cw"], params["body_cb"],
      params["car_w"], params["car_b"])


def conv3x3(x, w_taps, b_row, relu=False):
    """x: (N,H,W,Cin) f32 NHWC; w_taps: (9,Cin,Cout) bf16; b_row: (1,Cout) f32."""
    N, H, W, Cin = x.shape
    Cout = w_taps.shape[2]
    return pl.pallas_call(
        functools.partial(_conv3x3_kernel, H=H, W=W, Cin=Cin, Cout=Cout,
                          relu=relu),
        out_shape=jax.ShapeDtypeStruct((N, H, W, Cout), jnp.float32),
        grid=(N,),
        in_specs=[
            pl.BlockSpec((1, H, W, Cin), lambda n: (n, 0, 0, 0)),
            pl.BlockSpec((9, Cin, Cout), lambda n: (0, 0, 0)),
            pl.BlockSpec((1, Cout), lambda n: (0, 0)),
        ],
        out_specs=pl.BlockSpec((1, H, W, Cout), lambda n: (n, 0, 0, 0)),
        scratch_shapes=[pltpu.VMEM((H + 2, W + 2, Cin), jnp.float32)],
        compiler_params=_COMPILER_PARAMS,
    )(x, w_taps, b_row)


# ----------------------------------------------------------------------------
# Plain-JAX glue
# ----------------------------------------------------------------------------
def pixel_shuffle_nhwc(x, r):
    """PixelShuffle with PyTorch channel ordering (c*r*r + i*r + j), NHWC."""
    N, H, W, Cr2 = x.shape
    C = Cr2 // (r * r)
    x = x.reshape(N, H, W, C, r, r)
    x = jnp.transpose(x, (0, 1, 4, 2, 5, 3))
    return x.reshape(N, H * r, W * r, C)


def build_params(key, n_colors=3, n_feats=16, reduction=4, n_carb=2, scale=2,
                 rgb_range=1.0):
    """Random params pre-packed into the fused-kernel layout (bf16 weights)."""
    keys = iter(jax.random.split(key, 512))
    F = n_feats
    cr = n_feats // reduction

    def conv_w(cin, cout):
        return (jax.random.normal(next(keys), (3, 3, cin, cout), jnp.float32) * 0.05,
                jax.random.normal(next(keys), (cout,), jnp.float32) * 0.05)

    def dense_w(cin, cout):
        return (jax.random.normal(next(keys), (cin, cout), jnp.float32) * 0.05,
                jax.random.normal(next(keys), (cout,), jnp.float32) * 0.05)

    def taps(w):  # (3,3,cin,cout) -> (9,cin,cout); tap k = dy*3 + dx
        return w.reshape(9, w.shape[2], w.shape[3])

    # Head conv: zero-pad Cin (n_colors -> F) so the stacked taps are (9,F,F).
    wh, bh = conv_w(n_colors, F)
    wh = jnp.pad(wh, ((0, 0), (0, 0), (0, F - n_colors), (0, 0)))
    conv_ws, conv_bs = [taps(wh)], [bh]
    car_ws, car_bs = [], []
    for _ in range(n_carb):
        for _ in range(4):
            w, b = conv_w(F, F)
            conv_ws.append(taps(w))
            conv_bs.append(b)
        # CAR 1x1 chain: fold the back-to-back affine pairs (no nonlinearity
        # between them), then zero-pad to (F, F) (exact under zero padding).
        w1, b1 = dense_w(F, cr)
        w2, b2 = dense_w(cr, cr)
        w3, b3 = dense_w(cr, cr)
        w4, b4 = dense_w(cr, F)
        w12 = w1 @ w2
        b12 = b1 @ w2 + b2
        w34 = w3 @ w4
        b34 = b3 @ w4 + b4
        car_ws += [jnp.pad(w12, ((0, 0), (0, F - cr))),
                   jnp.pad(w34, ((0, F - cr), (0, 0)))]
        car_bs += [jnp.pad(b12, (0, F - cr)), b34]
    wt, bt = conv_w(F, F)                      # body-tail conv
    conv_ws.append(taps(wt))
    conv_bs.append(bt)

    mean = jnp.pad(rgb_range * RGB_MEAN[:n_colors], (0, F - n_colors))

    params = {
        "n_feats": F, "n_colors": n_colors, "n_carb": n_carb, "scale": scale,
        "rgb_range": rgb_range,
        "body_cw": jnp.stack(conv_ws).astype(jnp.bfloat16),   # (L, 9, F, F)
        "body_cb": jnp.stack(conv_bs)[:, None, :],            # (L, 1, F) f32
        "car_w": jnp.stack(car_ws).astype(jnp.bfloat16),      # (2*n_carb, F, F)
        "car_b": jnp.stack(car_bs)[:, None, :],               # (2*n_carb, 1, F)
        "mean": mean.reshape(1, 1, F),                        # sub_mean, padded
    }

    # Upsampler (common.Upsampler): power-of-two -> log2(scale) x (conv, PS(2));
    # scale==3 -> (conv F->9F, PS(3)).
    ups = []
    if scale > 1 and (scale & (scale - 1)) == 0:
        for _ in range(int(math.log2(scale))):
            w, b = conv_w(F, 4 * F)
            ups.append((taps(w).astype(jnp.bfloat16), b[None, :], 2))
    elif scale == 3:
        w, b = conv_w(F, 9 * F)
        ups.append((taps(w).astype(jnp.bfloat16), b[None, :], 3))
    elif scale != 1:
        raise ValueError("unsupported scale %d" % scale)
    params["up"] = ups

    # Tail conv with add_mean folded into the bias (free fusion).
    w, b = conv_w(F, n_colors)
    params["tail_w"] = taps(w).astype(jnp.bfloat16)
    params["tail_b"] = (b + rgb_range * RGB_MEAN[:n_colors])[None, :]
    return params


def carn_forward(x_nchw, params):
    # Layout: NCHW in/out (PyTorch convention); all kernel compute in NHWC.
    x = jnp.transpose(x_nchw, (0, 2, 3, 1)).astype(jnp.float32)

    t = carn_body(x, params)                   # fused sub_mean+head+body+skip
    for (w, b, r) in params["up"]:             # Upsampler stage(s)
        t = conv3x3(t, w, b)
        t = pixel_shuffle_nhwc(t, r)           # pure data rearrangement (XLA)
    out = conv3x3(t, params["tail_w"], params["tail_b"])  # tail conv (+add_mean)
    return jnp.transpose(out, (0, 3, 1, 2))


if __name__ == "__main__":
    key = jax.random.PRNGKey(0)
    kx, kp = jax.random.split(key)
    # args: n_colors=3, n_feats=16, reduction=4, n_resgroups=2, scale=[2]
    x = jax.random.uniform(kx, (2, 3, 8, 8), jnp.float32)   # NCHW
    params = build_params(kp, n_colors=3, n_feats=16, reduction=4,
                          n_carb=2, scale=2, rgb_range=1.0)
    out = carn_forward(x, params)
    out = jax.block_until_ready(out)
    assert out.shape == (2, 3, 16, 16), out.shape
    assert bool(jnp.all(jnp.isfinite(out)))
    print("KERNEL_OK")
</pallas_src>

<mosaic_0001>
module attributes {stable_mosaic.version = 11 : i64} {
  func.func @_body_kernel(%arg0: i32, %arg1: memref<1x8x8x16xf32, #tpu.memory_space<vmem>>, %arg2: memref<1x1x16xf32, #tpu.memory_space<vmem>>, %arg3: memref<10x9x16x16xbf16, #tpu.memory_space<vmem>>, %arg4: memref<10x1x16xf32, #tpu.memory_space<vmem>>, %arg5: memref<4x16x16xbf16, #tpu.memory_space<vmem>>, %arg6: memref<4x1x16xf32, #tpu.memory_space<vmem>>, %arg7: memref<1x8x8x16xf32, #tpu.memory_space<vmem>>, %arg8: memref<10x10x16xf32, #tpu.memory_space<vmem>>, %arg9: memref<64x16xf32, #tpu.memory_space<vmem>>, %arg10: memref<64x16xf32, #tpu.memory_space<vmem>>) attributes {dimension_semantics = [#tpu.dimension_semantics<parallel>], iteration_bounds = array<i64: 2>, scalar_prefetch = 0 : i64, scratch_operands = 3 : i64, tpu.core_type = #tpu.core_type<tc>, window_params = [{transform_indices = @transform_0, window_bounds = array<i64: 1, 8, 8, 16>}, {pipeline_mode = #tpu.pipeline_mode<synchronous>, transform_indices = @transform_1, window_bounds = array<i64: 1, 1, 16>}, {pipeline_mode = #tpu.pipeline_mode<synchronous>, transform_indices = @transform_2, window_bounds = array<i64: 10, 9, 16, 16>}, {pipeline_mode = #tpu.pipeline_mode<synchronous>, transform_indices = @transform_3, window_bounds = array<i64: 10, 1, 16>}, {pipeline_mode = #tpu.pipeline_mode<synchronous>, transform_indices = @transform_4, window_bounds = array<i64: 4, 16, 16>}, {pipeline_mode = #tpu.pipeline_mode<synchronous>, transform_indices = @transform_5, window_bounds = array<i64: 4, 1, 16>}, {transform_indices = @transform_6, window_bounds = array<i64: 1, 8, 8, 16>}]} {
    %cst = arith.constant 0.000000e+00 : f32
    %0 = vector.broadcast %cst : f32 to vector<1x10x16xf32>
    %c0 = arith.constant 0 : index
    %c0_0 = arith.constant 0 : index
    %c0_1 = arith.constant 0 : index
    %1 = vector.load %arg8[%c0, %c0_0, %c0_1] : memref<10x10x16xf32, #tpu.memory_space<vmem>>, vector<1x10x16xf32>
    tpu.vector_store %arg8[%c0, %c0_0, %c0_1], %0 {strides = array<i32>} : memref<10x10x16xf32, #tpu.memory_space<vmem>>, vector<1x10x16xf32>,
    %c9 = arith.constant 9 : index
    %c0_2 = arith.constant 0 : index
    %c0_3 = arith.constant 0 : index
    %2 = vector.load %arg8[%c9, %c0_2, %c0_3] : memref<10x10x16xf32, #tpu.memory_space<vmem>>, vector<1x10x16xf32>
    tpu.vector_store %arg8[%c9, %c0_2, %c0_3], %0 {strides = array<i32>} : memref<10x10x16xf32, #tpu.memory_space<vmem>>, vector<1x10x16xf32>,
    %cst_4 = arith.constant 0.000000e+00 : f32
    %3 = vector.broadcast %cst_4 : f32 to vector<10x1x16xf32>
    %c0_5 = arith.constant 0 : index
    %c0_6 = arith.constant 0 : index
    %c0_7 = arith.constant 0 : index
    %4 = vector.load %arg8[%c0_5, %c0_6, %c0_7] : memref<10x10x16xf32, #tpu.memory_space<vmem>>, vector<10x1x16xf32>
    tpu.vector_store %arg8[%c0_5, %c0_6, %c0_7], %3 {strides = array<i32>} : memref<10x10x16xf32, #tpu.memory_space<vmem>>, vector<10x1x16xf32>,
    %c0_8 = arith.constant 0 : index
    %c9_9 = arith.constant 9 : index
    %c0_10 = arith.constant 0 : index
    %5 = vector.load %arg8[%c0_8, %c9_9, %c0_10] : memref<10x10x16xf32, #tpu.memory_space<vmem>>, vector<10x1x16xf32>
    tpu.vector_store %arg8[%c0_8, %c9_9, %c0_10], %3 {strides = array<i32>} : memref<10x10x16xf32, #tpu.memory_space<vmem>>, vector<10x1x16xf32>,
    %c0_11 = arith.constant 0 : index
    %c0_12 = arith.constant 0 : index
    %c0_13 = arith.constant 0 : index
    %c0_14 = arith.constant 0 : index
    %6 = vector.load %arg1[%c0_11, %c0_12, %c0_13, %c0_14] : memref<1x8x8x16xf32, #tpu.memory_space<vmem>>, vector<1x8x8x16xf32>
    %7 = vector.shape_cast %6 : vector<1x8x8x16xf32> to vector<8x8x16xf32>
    %c0_15 = arith.constant 0 : index
    %c0_16 = arith.constant 0 : index
    %c0_17 = arith.constant 0 : index
    %8 = vector.load %arg2[%c0_15, %c0_16, %c0_17] : memref<1x1x16xf32, #tpu.memory_space<vmem>>, vector<1x1x16xf32>
    %9 = vector.broadcast %8 : vector<1x1x16xf32> to vector<8x8x16xf32>
    %10 = arith.subf %7, %9 : vector<8x8x16xf32>
    %c1 = arith.constant 1 : index
    %c1_18 = arith.constant 1 : index
    %c0_19 = arith.constant 0 : index
    %11 = vector.load %arg8[%c1, %c1_18, %c0_19] : memref<10x10x16xf32, #tpu.memory_space<vmem>>, vector<8x8x16xf32>
    tpu.vector_store %arg8[%c1, %c1_18, %c0_19], %10 {strides = array<i32>} : memref<10x10x16xf32, #tpu.memory_space<vmem>>, vector<8x8x16xf32>,
    %c0_20 = arith.constant 0 : index
    %c0_21 = arith.constant 0 : index
    %c0_22 = arith.constant 0 : index
    %c0_23 = arith.constant 0 : index
    %12 = vector.load %arg3[%c0_20, %c0_21, %c0_22, %c0_23] : memref<10x9x16x16xbf16, #tpu.memory_space<vmem>>, vector<1x9x16x16xbf16>
    %13 = vector.shape_cast %12 : vector<1x9x16x16xbf16> to vector<9x16x16xbf16>
    %cst_24 = arith.constant 0.000000e+00 : f32
    %14 = vector.broadcast %cst_24 : f32 to vector<64x16xf32>
    %c0_25 = arith.constant 0 : index
    %c0_26 = arith.constant 0 : index
    %c0_27 = arith.constant 0 : index
    %15 = vector.load %arg8[%c0_25, %c0_26, %c0_27] : memref<10x10x16xf32, #tpu.memory_space<vmem>>, vector<8x8x16xf32>
    %16 = vector.shape_cast %15 : vector<8x8x16xf32> to vector<64x16xf32>
    %17 = arith.truncf %16 : vector<64x16xf32> to vector<64x16xbf16>
    %18 = vector.extract_strided_slice %13 {offsets = [0, 0, 0], sizes = [1, 16, 16], strides = [1, 1, 1]} : vector<9x16x16xbf16> to vector<1x16x16xbf16>
    %19 = vector.shape_cast %18 : vector<1x16x16xbf16> to vector<16x16xbf16>
    %cst_28 = arith.constant dense<0.000000e+00> : vector<64x16xf32>
    %20 = tpu.matmul %17, %19, %cst_28 {dimension_numbers = #tpu.dot_dimension_numbers<[1], [0], [0], [1], [0, 0, 1, 1], [], []>} : vector<64x16xbf16>, vector<16x16xbf16>, vector<64x16xf32> -> vector<64x16xf32>
    %21 = arith.addf %14, %20 : vector<64x16xf32>
    %c0_29 = arith.constant 0 : index
    %c1_30 = arith.constant 1 : index
    %c0_31 = arith.constant 0 : index
    %22 = vector.load %arg8[%c0_29, %c1_30, %c0_31] : memref<10x10x16xf32, #tpu.memory_space<vmem>>, vector<8x8x16xf32>
    %23 = vector.shape_cast %22 : vector<8x8x16xf32> to vector<64x16xf32>
    %24 = arith.truncf %23 : vector<64x16xf32> to vector<64x16xbf16>
    %25 = vector.extract_strided_slice %13 {offsets = [1, 0, 0], sizes = [1, 16, 16], strides = [1, 1, 1]} : vector<9x16x16xbf16> to vector<1x16x16xbf16>
    %26 = vector.shape_cast %25 : vector<1x16x16xbf16> to vector<16x16xbf16>
    %cst_32 = arith.constant dense<0.000000e+00> : vector<64x16xf32>
    %27 = tpu.matmul %24, %26, %cst_32 {dimension_numbers = #tpu.dot_dimension_numbers<[1], [0], [0], [1], [0, 0, 1, 1], [], []>} : vector<64x16xbf16>, vector<16x16xbf16>, vector<64x16xf32> -> vector<64x16xf32>
    %28 = arith.addf %21, %27 : vector<64x16xf32>
    %c0_33 = arith.constant 0 : index
    %c2 = arith.constant 2 : index
    %c0_34 = arith.constant 0 : index
    %29 = vector.load %arg8[%c0_33, %c2, %c0_34] : memref<10x10x16xf32, #tpu.memory_space<vmem>>, vector<8x8x16xf32>
    %30 = vector.shape_cast %29 : vector<8x8x16xf32> to vector<64x16xf32>
    %31 = arith.truncf %30 : vector<64x16xf32> to vector<64x16xbf16>
    %32 = vector.extract_strided_slice %13 {offsets = [2, 0, 0], sizes = [1, 16, 16], strides = [1, 1, 1]} : vector<9x16x16xbf16> to vector<1x16x16xbf16>
    %33 = vector.shape_cast %32 : vector<1x16x16xbf16> to vector<16x16xbf16>
    %cst_35 = arith.constant dense<0.000000e+00> : vector<64x16xf32>
    %34 = tpu.matmul %31, %33, %cst_35 {dimension_numbers = #tpu.dot_dimension_numbers<[1], [0], [0], [1], [0, 0, 1, 1], [], []>} : vector<64x16xbf16>, vector<16x16xbf16>, vector<64x16xf32> -> vector<64x16xf32>
    %35 = arith.addf %28, %34 : vector<64x16xf32>
    %c1_36 = arith.constant 1 : index
    %c0_37 = arith.constant 0 : index
    %c0_38 = arith.constant 0 : index
    %36 = vector.load %arg8[%c1_36, %c0_37, %c0_38] : memref<10x10x16xf32, #tpu.memory_space<vmem>>, vector<8x8x16xf32>
    %37 = vector.shape_cast %36 : vector<8x8x16xf32> to vector<64x16xf32>
    %38 = arith.truncf %37 : vector<64x16xf32> to vector<64x16xbf16>
    %39 = vector.extract_strided_slice %13 {offsets = [3, 0, 0], sizes = [1, 16, 16], strides = [1, 1, 1]} : vector<9x16x16xbf16> to vector<1x16x16xbf16>
    %40 = vector.shape_cast %39 : vector<1x16x16xbf16> to vector<16x16xbf16>
    %cst_39 = arith.constant dense<0.000000e+00> : vector<64x16xf32>
    %41 = tpu.matmul %38, %40, %cst_39 {dimension_numbers = #tpu.dot_dimension_numbers<[1], [0], [0], [1], [0, 0, 1, 1], [], []>} : vector<64x16xbf16>, vector<16x16xbf16>, vector<64x16xf32> -> vector<64x16xf32>
    %42 = arith.addf %35, %41 : vector<64x16xf32>
    %c1_40 = arith.constant 1 : index
    %c1_41 = arith.constant 1 : index
    %c0_42 = arith.constant 0 : index
    %43 = vector.load %arg8[%c1_40, %c1_41, %c0_42] : memref<10x10x16xf32, #tpu.memory_space<vmem>>, vector<8x8x16xf32>
    %44 = vector.shape_cast %43 : vector<8x8x16xf32> to vector<64x16xf32>
    %45 = arith.truncf %44 : vector<64x16xf32> to vector<64x16xbf16>
    %46 = vector.extract_strided_slice %13 {offsets = [4, 0, 0], sizes = [1, 16, 16], strides = [1, 1, 1]} : vector<9x16x16xbf16> to vector<1x16x16xbf16>
    %47 = vector.shape_cast %46 : vector<1x16x16xbf16> to vector<16x16xbf16>
    %cst_43 = arith.constant dense<0.000000e+00> : vector<64x16xf32>
    %48 = tpu.matmul %45, %47, %cst_43 {dimension_numbers = #tpu.dot_dimension_numbers<[1], [0], [0], [1], [0, 0, 1, 1], [], []>} : vector<64x16xbf16>, vector<16x16xbf16>, vector<64x16xf32> -> vector<64x16xf32>
    %49 = arith.addf %42, %48 : vector<64x16xf32>
    %c1_44 = arith.constant 1 : index
    %c2_45 = arith.constant 2 : index
    %c0_46 = arith.constant 0 : index
    %50 = vector.load %arg8[%c1_44, %c2_45, %c0_46] : memref<10x10x16xf32, #tpu.memory_space<vmem>>, vector<8x8x16xf32>
    %51 = vector.shape_cast %50 : vector<8x8x16xf32> to vector<64x16xf32>
    %52 = arith.truncf %51 : vector<64x16xf32> to vector<64x16xbf16>
    %53 = vector.extract_strided_slice %13 {offsets = [5, 0, 0], sizes = [1, 16, 16], strides = [1, 1, 1]} : vector<9x16x16xbf16> to vector<1x16x16xbf16>
    %54 = vector.shape_cast %53 : vector<1x16x16xbf16> to vector<16x16xbf16>
    %cst_47 = arith.constant dense<0.000000e+00> : vector<64x16xf32>
    %55 = tpu.matmul %52, %54, %cst_47 {dimension_numbers = #tpu.dot_dimension_numbers<[1], [0], [0], [1], [0, 0, 1, 1], [], []>} : vector<64x16xbf16>, vector<16x16xbf16>, vector<64x16xf32> -> vector<64x16xf32>
    %56 = arith.addf %49, %55 : vector<64x16xf32>
    %c2_48 = arith.constant 2 : index
    %c0_49 = arith.constant 0 : index
    %c0_50 = arith.constant 0 : index
    %57 = vector.load %arg8[%c2_48, %c0_49, %c0_50] : memref<10x10x16xf32, #tpu.memory_space<vmem>>, vector<8x8x16xf32>
    %58 = vector.shape_cast %57 : vector<8x8x16xf32> to vector<64x16xf32>
    %59 = arith.truncf %58 : vector<64x16xf32> to vector<64x16xbf16>
    %60 = vector.extract_strided_slice %13 {offsets = [6, 0, 0], sizes = [1, 16, 16], strides = [1, 1, 1]} : vector<9x16x16xbf16> to vector<1x16x16xbf16>
    %61 = vector.shape_cast %60 : vector<1x16x16xbf16> to vector<16x16xbf16>
    %cst_51 = arith.constant dense<0.000000e+00> : vector<64x16xf32>
    %62 = tpu.matmul %59, %61, %cst_51 {dimension_numbers = #tpu.dot_dimension_numbers<[1], [0], [0], [1], [0, 0, 1, 1], [], []>} : vector<64x16xbf16>, vector<16x16xbf16>, vector<64x16xf32> -> vector<64x16xf32>
    %63 = arith.addf %56, %62 : vector<64x16xf32>
    %c2_52 = arith.constant 2 : index
    %c1_53 = arith.constant 1 : index
    %c0_54 = arith.constant 0 : index
    %64 = vector.load %arg8[%c2_52, %c1_53, %c0_54] : memref<10x10x16xf32, #tpu.memory_space<vmem>>, vector<8x8x16xf32>
    %65 = vector.shape_cast %64 : vector<8x8x16xf32> to vector<64x16xf32>
    %66 = arith.truncf %65 : vector<64x16xf32> to vector<64x16xbf16>
    %67 = vector.extract_strided_slice %13 {offsets = [7, 0, 0], sizes = [1, 16, 16], strides = [1, 1, 1]} : vector<9x16x16xbf16> to vector<1x16x16xbf16>
    %68 = vector.shape_cast %67 : vector<1x16x16xbf16> to vector<16x16xbf16>
    %cst_55 = arith.constant dense<0.000000e+00> : vector<64x16xf32>
    %69 = tpu.matmul %66, %68, %cst_55 {dimension_numbers = #tpu.dot_dimension_numbers<[1], [0], [0], [1], [0, 0, 1, 1], [], []>} : vector<64x16xbf16>, vector<16x16xbf16>, vector<64x16xf32> -> vector<64x16xf32>
    %70 = arith.addf %63, %69 : vector<64x16xf32>
    %c2_56 = arith.constant 2 : index
    %c2_57 = arith.constant 2 : index
    %c0_58 = arith.constant 0 : index
    %71 = vector.load %arg8[%c2_56, %c2_57, %c0_58] : memref<10x10x16xf32, #tpu.memory_space<vmem>>, vector<8x8x16xf32>
    %72 = vector.shape_cast %71 : vector<8x8x16xf32> to vector<64x16xf32>
    %73 = arith.truncf %72 : vector<64x16xf32> to vector<64x16xbf16>
    %74 = vector.extract_strided_slice %13 {offsets = [8, 0, 0], sizes = [1, 16, 16], strides = [1, 1, 1]} : vector<9x16x16xbf16> to vector<1x16x16xbf16>
    %75 = vector.shape_cast %74 : vector<1x16x16xbf16> to vector<16x16xbf16>
    %cst_59 = arith.constant dense<0.000000e+00> : vector<64x16xf32>
    %76 = tpu.matmul %73, %75, %cst_59 {dimension_numbers = #tpu.dot_dimension_numbers<[1], [0], [0], [1], [0, 0, 1, 1], [], []>} : vector<64x16xbf16>, vector<16x16xbf16>, vector<64x16xf32> -> vector<64x16xf32>
    %77 = arith.addf %70, %76 : vector<64x16xf32>
    %c0_60 = arith.constant 0 : index
    %c0_61 = arith.constant 0 : index
    %c0_62 = arith.constant 0 : index
    %78 = vector.load %arg4[%c0_60, %c0_61, %c0_62] : memref<10x1x16xf32, #tpu.memory_space<vmem>>, vector<1x1x16xf32>
    %79 = vector.shape_cast %78 : vector<1x1x16xf32> to vector<1x16xf32>
    %80 = vector.broadcast %79 : vector<1x16xf32> to vector<64x16xf32>
    %81 = arith.addf %77, %80 : vector<64x16xf32>
    %c0_63 = arith.constant 0 : index
    %c0_64 = arith.constant 0 : index
    %82 = vector.load %arg9[%c0_63, %c0_64] : memref<64x16xf32, #tpu.memory_space<vmem>>, vector<64x16xf32>
    tpu.vector_store %arg9[%c0_63, %c0_64], %81 {strides = array<i32>} : memref<64x16xf32, #tpu.memory_space<vmem>>, vector<64x16xf32>,
    %c0_65 = arith.constant 0 : index
    %c0_66 = arith.constant 0 : index
    %83 = vector.load %arg10[%c0_65, %c0_66] : memref<64x16xf32, #tpu.memory_space<vmem>>, vector<64x16xf32>
    tpu.vector_store %arg10[%c0_65, %c0_66], %81 {strides = array<i32>} : memref<64x16xf32, #tpu.memory_space<vmem>>, vector<64x16xf32>,
    %c0_i32 = arith.constant 0 : i32
    %c2_i32 = arith.constant 2 : i32
    %84 = arith.addi %c0_i32, %c2_i32 : i32
    %c1_i32 = arith.constant 1 : i32
    scf.for %arg11 = %c0_i32 to %84 step %c1_i32  : i32 {
      %c4_i32 = arith.constant 4 : i32
      %162 = arith.muli %c4_i32, %arg11 : i32
      %c1_i32_123 = arith.constant 1 : i32
      %163 = arith.addi %c1_i32_123, %162 : i32
      %c0_124 = arith.constant 0 : index
      %c0_125 = arith.constant 0 : index
      %164 = vector.load %arg10[%c0_124, %c0_125] : memref<64x16xf32, #tpu.memory_space<vmem>>, vector<64x16xf32>
      %165 = vector.shape_cast %164 : vector<64x16xf32> to vector<8x8x16xf32>
      %c1_126 = arith.constant 1 : index
      %c1_127 = arith.constant 1 : index
      %c0_128 = arith.constant 0 : index
      %166 = vector.load %arg8[%c1_126, %c1_127, %c0_128] : memref<10x10x16xf32, #tpu.memory_space<vmem>>, vector<8x8x16xf32>
      tpu.vector_store %arg8[%c1_126, %c1_127, %c0_128], %165 {strides = array<i32>} : memref<10x10x16xf32, #tpu.memory_space<vmem>>, vector<8x8x16xf32>,
      %c0_i32_129 = arith.constant 0 : i32
      %167 = arith.addi %163, %c0_i32_129 : i32
      %168 = arith.index_cast %167 : i32 to index
      %c0_130 = arith.constant 0 : index
      %c0_131 = arith.constant 0 : index
      %c0_132 = arith.constant 0 : index
      %169 = vector.load %arg3[%168, %c0_130, %c0_131, %c0_132] : memref<10x9x16x16xbf16, #tpu.memory_space<vmem>>, vector<1x9x16x16xbf16>
      %170 = vector.shape_cast %169 : vector<1x9x16x16xbf16> to vector<9x16x16xbf16>
      %cst_133 = arith.constant 0.000000e+00 : f32
      %171 = vector.broadcast %cst_133 : f32 to vector<64x16xf32>
      %c0_134 = arith.constant 0 : index
      %c0_135 = arith.constant 0 : index
      %c0_136 = arith.constant 0 : index
      %172 = vector.load %arg8[%c0_134, %c0_135, %c0_136] : memref<10x10x16xf32, #tpu.memory_space<vmem>>, vector<8x8x16xf32>
      %173 = vector.shape_cast %172 : vector<8x8x16xf32> to vector<64x16xf32>
      %174 = arith.truncf %173 : vector<64x16xf32> to vector<64x16xbf16>
      %175 = vector.extract_strided_slice %170 {offsets = [0, 0, 0], sizes = [1, 16, 16], strides = [1, 1, 1]} : vector<9x16x16xbf16> to vector<1x16x16xbf16>
      %176 = vector.shape_cast %175 : vector<1x16x16xbf16> to vector<16x16xbf16>
      %cst_137 = arith.constant dense<0.000000e+00> : vector<64x16xf32>
      %177 = tpu.matmul %174, %176, %cst_137 {dimension_numbers = #tpu.dot_dimension_numbers<[1], [0], [0], [1], [0, 0, 1, 1], [], []>} : vector<64x16xbf16>, vector<16x16xbf16>, vector<64x16xf32> -> vector<64x16xf32>
      %178 = arith.addf %171, %177 : vector<64x16xf32>
      %c0_138 = arith.constant 0 : index
      %c1_139 = arith.constant 1 : index
      %c0_140 = arith.constant 0 : index
      %179 = vector.load %arg8[%c0_138, %c1_139, %c0_140] : memref<10x10x16xf32, #tpu.memory_space<vmem>>, vector<8x8x16xf32>
      %180 = vector.shape_cast %179 : vector<8x8x16xf32> to vector<64x16xf32>
      %181 = arith.truncf %180 : vector<64x16xf32> to vector<64x16xbf16>
      %182 = vector.extract_strided_slice %170 {offsets = [1, 0, 0], sizes = [1, 16, 16], strides = [1, 1, 1]} : vector<9x16x16xbf16> to vector<1x16x16xbf16>
      %183 = vector.shape_cast %182 : vector<1x16x16xbf16> to vector<16x16xbf16>
      %cst_141 = arith.constant dense<0.000000e+00> : vector<64x16xf32>
      %184 = tpu.matmul %181, %183, %cst_141 {dimension_numbers = #tpu.dot_dimension_numbers<[1], [0], [0], [1], [0, 0, 1, 1], [], []>} : vector<64x16xbf16>, vector<16x16xbf16>, vector<64x16xf32> -> vector<64x16xf32>
      %185 = arith.addf %178, %184 : vector<64x16xf32>
      %c0_142 = arith.constant 0 : index
      %c2_143 = arith.constant 2 : index
      %c0_144 = arith.constant 0 : index
      %186 = vector.load %arg8[%c0_142, %c2_143, %c0_144] : memref<10x10x16xf32, #tpu.memory_space<vmem>>, vector<8x8x16xf32>
      %187 = vector.shape_cast %186 : vector<8x8x16xf32> to vector<64x16xf32>
      %188 = arith.truncf %187 : vector<64x16xf32> to vector<64x16xbf16>
      %189 = vector.extract_strided_slice %170 {offsets = [2, 0, 0], sizes = [1, 16, 16], strides = [1, 1, 1]} : vector<9x16x16xbf16> to vector<1x16x16xbf16>
      %190 = vector.shape_cast %189 : vector<1x16x16xbf16> to vector<16x16xbf16>
      %cst_145 = arith.constant dense<0.000000e+00> : vector<64x16xf32>
      %191 = tpu.matmul %188, %190, %cst_145 {dimension_numbers = #tpu.dot_dimension_numbers<[1], [0], [0], [1], [0, 0, 1, 1], [], []>} : vector<64x16xbf16>, vector<16x16xbf16>, vector<64x16xf32> -> vector<64x16xf32>
      %192 = arith.addf %185, %191 : vector<64x16xf32>
      %c1_146 = arith.constant 1 : index
      %c0_147 = arith.constant 0 : index
      %c0_148 = arith.constant 0 : index
      %193 = vector.load %arg8[%c1_146, %c0_147, %c0_148] : memref<10x10x16xf32, #tpu.memory_space<vmem>>, vector<8x8x16xf32>
      %194 = vector.shape_cast %193 : vector<8x8x16xf32> to vector<64x16xf32>
      %195 = arith.truncf %194 : vector<64x16xf32> to vector<64x16xbf16>
      %196 = vector.extract_strided_slice %170 {offsets = [3, 0, 0], sizes = [1, 16, 16], strides = [1, 1, 1]} : vector<9x16x16xbf16> to vector<1x16x16xbf16>
      %197 = vector.shape_cast %196 : vector<1x16x16xbf16> to vector<16x16xbf16>
      %cst_149 = arith.constant dense<0.000000e+00> : vector<64x16xf32>
      %198 = tpu.matmul %195, %197, %cst_149 {dimension_numbers = #tpu.dot_dimension_numbers<[1], [0], [0], [1], [0, 0, 1, 1], [], []>} : vector<64x16xbf16>, vector<16x16xbf16>, vector<64x16xf32> -> vector<64x16xf32>
      %199 = arith.addf %192, %198 : vector<64x16xf32>
      %c1_150 = arith.constant 1 : index
      %c1_151 = arith.constant 1 : index
      %c0_152 = arith.constant 0 : index
      %200 = vector.load %arg8[%c1_150, %c1_151, %c0_152] : memref<10x10x16xf32, #tpu.memory_space<vmem>>, vector<8x8x16xf32>
      %201 = vector.shape_cast %200 : vector<8x8x16xf32> to vector<64x16xf32>
      %202 = arith.truncf %201 : vector<64x16xf32> to vector<64x16xbf16>
      %203 = vector.extract_strided_slice %170 {offsets = [4, 0, 0], sizes = [1, 16, 16], strides = [1, 1, 1]} : vector<9x16x16xbf16> to vector<1x16x16xbf16>
      %204 = vector.shape_cast %203 : vector<1x16x16xbf16> to vector<16x16xbf16>
      %cst_153 = arith.constant dense<0.000000e+00> : vector<64x16xf32>
      %205 = tpu.matmul %202, %204, %cst_153 {dimension_numbers = #tpu.dot_dimension_numbers<[1], [0], [0], [1], [0, 0, 1, 1], [], []>} : vector<64x16xbf16>, vector<16x16xbf16>, vector<64x16xf32> -> vector<64x16xf32>
      %206 = arith.addf %199, %205 : vector<64x16xf32>
      %c1_154 = arith.constant 1 : index
      %c2_155 = arith.constant 2 : index
      %c0_156 = arith.constant 0 : index
      %207 = vector.load %arg8[%c1_154, %c2_155, %c0_156] : memref<10x10x16xf32, #tpu.memory_space<vmem>>, vector<8x8x16xf32>
      %208 = vector.shape_cast %207 : vector<8x8x16xf32> to vector<64x16xf32>
      %209 = arith.truncf %208 : vector<64x16xf32> to vector<64x16xbf16>
      %210 = vector.extract_strided_slice %170 {offsets = [5, 0, 0], sizes = [1, 16, 16], strides = [1, 1, 1]} : vector<9x16x16xbf16> to vector<1x16x16xbf16>
      %211 = vector.shape_cast %210 : vector<1x16x16xbf16> to vector<16x16xbf16>
      %cst_157 = arith.constant dense<0.000000e+00> : vector<64x16xf32>
      %212 = tpu.matmul %209, %211, %cst_157 {dimension_numbers = #tpu.dot_dimension_numbers<[1], [0], [0], [1], [0, 0, 1, 1], [], []>} : vector<64x16xbf16>, vector<16x16xbf16>, vector<64x16xf32> -> vector<64x16xf32>
      %213 = arith.addf %206, %212 : vector<64x16xf32>
      %c2_158 = arith.constant 2 : index
      %c0_159 = arith.constant 0 : index
      %c0_160 = arith.constant 0 : index
      %214 = vector.load %arg8[%c2_158, %c0_159, %c0_160] : memref<10x10x16xf32, #tpu.memory_space<vmem>>, vector<8x8x16xf32>
      %215 = vector.shape_cast %214 : vector<8x8x16xf32> to vector<64x16xf32>
      %216 = arith.truncf %215 : vector<64x16xf32> to vector<64x16xbf16>
      %217 = vector.extract_strided_slice %170 {offsets = [6, 0, 0], sizes = [1, 16, 16], strides = [1, 1, 1]} : vector<9x16x16xbf16> to vector<1x16x16xbf16>
      %218 = vector.shape_cast %217 : vector<1x16x16xbf16> to vector<16x16xbf16>
      %cst_161 = arith.constant dense<0.000000e+00> : vector<64x16xf32>
      %219 = tpu.matmul %216, %218, %cst_161 {dimension_numbers = #tpu.dot_dimension_numbers<[1], [0], [0], [1], [0, 0, 1, 1], [], []>} : vector<64x16xbf16>, vector<16x16xbf16>, vector<64x16xf32> -> vector<64x16xf32>
      %220 = arith.addf %213, %219 : vector<64x16xf32>
      %c2_162 = arith.constant 2 : index
      %c1_163 = arith.constant 1 : index
      %c0_164 = arith.constant 0 : index
      %221 = vector.load %arg8[%c2_162, %c1_163, %c0_164] : memref<10x10x16xf32, #tpu.memory_space<vmem>>, vector<8x8x16xf32>
      %222 = vector.shape_cast %221 : vector<8x8x16xf32> to vector<64x16xf32>
      %223 = arith.truncf %222 : vector<64x16xf32> to vector<64x16xbf16>
      %224 = vector.extract_strided_slice %170 {offsets = [7, 0, 0], sizes = [1, 16, 16], strides = [1, 1, 1]} : vector<9x16x16xbf16> to vector<1x16x16xbf16>
      %225 = vector.shape_cast %224 : vector<1x16x16xbf16> to vector<16x16xbf16>
      %cst_165 = arith.constant dense<0.000000e+00> : vector<64x16xf32>
      %226 = tpu.matmul %223, %225, %cst_165 {dimension_numbers = #tpu.dot_dimension_numbers<[1], [0], [0], [1], [0, 0, 1, 1], [], []>} : vector<64x16xbf16>, vector<16x16xbf16>, vector<64x16xf32> -> vector<64x16xf32>
      %227 = arith.addf %220, %226 : vector<64x16xf32>
      %c2_166 = arith.constant 2 : index
      %c2_167 = arith.constant 2 : index
      %c0_168 = arith.constant 0 : index
      %228 = vector.load %arg8[%c2_166, %c2_167, %c0_168] : memref<10x10x16xf32, #tpu.memory_space<vmem>>, vector<8x8x16xf32>
      %229 = vector.shape_cast %228 : vector<8x8x16xf32> to vector<64x16xf32>
      %230 = arith.truncf %229 : vector<64x16xf32> to vector<64x16xbf16>
      %231 = vector.extract_strided_slice %170 {offsets = [8, 0, 0], sizes = [1, 16, 16], strides = [1, 1, 1]} : vector<9x16x16xbf16> to vector<1x16x16xbf16>
      %232 = vector.shape_cast %231 : vector<1x16x16xbf16> to vector<16x16xbf16>
      %cst_169 = arith.constant dense<0.000000e+00> : vector<64x16xf32>
      %233 = tpu.matmul %230, %232, %cst_169 {dimension_numbers = #tpu.dot_dimension_numbers<[1], [0], [0], [1], [0, 0, 1, 1], [], []>} : vector<64x16xbf16>, vector<16x16xbf16>, vector<64x16xf32> -> vector<64x16xf32>
      %234 = arith.addf %227, %233 : vector<64x16xf32>
      %235 = arith.index_cast %167 : i32 to index
      %c0_170 = arith.constant 0 : index
      %c0_171 = arith.constant 0 : index
      %236 = vector.load %arg4[%235, %c0_170, %c0_171] : memref<10x1x16xf32, #tpu.memory_space<vmem>>, vector<1x1x16xf32>
      %237 = vector.shape_cast %236 : vector<1x1x16xf32> to vector<1x16xf32>
      %238 = vector.broadcast %237 : vector<1x16xf32> to vector<64x16xf32>
      %239 = arith.addf %234, %238 : vector<64x16xf32>
      %240 = vector.shape_cast %239 : vector<64x16xf32> to vector<8x8x16xf32>
      %c1_172 = arith.constant 1 : index
      %c1_173 = arith.constant 1 : index
      %c0_174 = arith.constant 0 : index
      %241 = vector.load %arg8[%c1_172, %c1_173, %c0_174] : memref<10x10x16xf32, #tpu.memory_space<vmem>>, vector<8x8x16xf32>
      tpu.vector_store %arg8[%c1_172, %c1_173, %c0_174], %240 {strides = array<i32>} : memref<10x10x16xf32, #tpu.memory_space<vmem>>, vector<8x8x16xf32>,
      %c1_i32_175 = arith.constant 1 : i32
      %242 = arith.addi %163, %c1_i32_175 : i32
      %243 = arith.index_cast %242 : i32 to index
      %c0_176 = arith.constant 0 : index
      %c0_177 = arith.constant 0 : index
      %c0_178 = arith.constant 0 : index
      %244 = vector.load %arg3[%243, %c0_176, %c0_177, %c0_178] : memref<10x9x16x16xbf16, #tpu.memory_space<vmem>>, vector<1x9x16x16xbf16>
      %245 = vector.shape_cast %244 : vector<1x9x16x16xbf16> to vector<9x16x16xbf16>
      %cst_179 = arith.constant 0.000000e+00 : f32
      %246 = vector.broadcast %cst_179 : f32 to vector<64x16xf32>
      %c0_180 = arith.constant 0 : index
      %c0_181 = arith.constant 0 : index
      %c0_182 = arith.constant 0 : index
      %247 = vector.load %arg8[%c0_180, %c0_181, %c0_182] : memref<10x10x16xf32, #tpu.memory_space<vmem>>, vector<8x8x16xf32>
      %248 = vector.shape_cast %247 : vector<8x8x16xf32> to vector<64x16xf32>
      %249 = arith.truncf %248 : vector<64x16xf32> to vector<64x16xbf16>
      %250 = vector.extract_strided_slice %245 {offsets = [0, 0, 0], sizes = [1, 16, 16], strides = [1, 1, 1]} : vector<9x16x16xbf16> to vector<1x16x16xbf16>
      %251 = vector.shape_cast %250 : vector<1x16x16xbf16> to vector<16x16xbf16>
      %cst_183 = arith.constant dense<0.000000e+00> : vector<64x16xf32>
      %252 = tpu.matmul %249, %251, %cst_183 {dimension_numbers = #tpu.dot_dimension_numbers<[1], [0], [0], [1], [0, 0, 1, 1], [], []>} : vector<64x16xbf16>, vector<16x16xbf16>, vector<64x16xf32> -> vector<64x16xf32>
      %253 = arith.addf %246, %252 : vector<64x16xf32>
      %c0_184 = arith.constant 0 : index
      %c1_185 = arith.constant 1 : index
      %c0_186 = arith.constant 0 : index
      %254 = vector.load %arg8[%c0_184, %c1_185, %c0_186] : memref<10x10x16xf32, #tpu.memory_space<vmem>>, vector<8x8x16xf32>
      %255 = vector.shape_cast %254 : vector<8x8x16xf32> to vector<64x16xf32>
      %256 = arith.truncf %255 : vector<64x16xf32> to vector<64x16xbf16>
      %257 = vector.extract_strided_slice %245 {offsets = [1, 0, 0], sizes = [1, 16, 16], strides = [1, 1, 1]} : vector<9x16x16xbf16> to vector<1x16x16xbf16>
      %258 = vector.shape_cast %257 : vector<1x16x16xbf16> to vector<16x16xbf16>
      %cst_187 = arith.constant dense<0.000000e+00> : vector<64x16xf32>
      %259 = tpu.matmul %256, %258, %cst_187 {dimension_numbers = #tpu.dot_dimension_numbers<[1], [0], [0], [1], [0, 0, 1, 1], [], []>} : vector<64x16xbf16>, vector<16x16xbf16>, vector<64x16xf32> -> vector<64x16xf32>
      %260 = arith.addf %253, %259 : vector<64x16xf32>
      %c0_188 = arith.constant 0 : index
      %c2_189 = arith.constant 2 : index
      %c0_190 = arith.constant 0 : index
      %261 = vector.load %arg8[%c0_188, %c2_189, %c0_190] : memref<10x10x16xf32, #tpu.memory_space<vmem>>, vector<8x8x16xf32>
      %262 = vector.shape_cast %261 : vector<8x8x16xf32> to vector<64x16xf32>
      %263 = arith.truncf %262 : vector<64x16xf32> to vector<64x16xbf16>
      %264 = vector.extract_strided_slice %245 {offsets = [2, 0, 0], sizes = [1, 16, 16], strides = [1, 1, 1]} : vector<9x16x16xbf16> to vector<1x16x16xbf16>
      %265 = vector.shape_cast %264 : vector<1x16x16xbf16> to vector<16x16xbf16>
      %cst_191 = arith.constant dense<0.000000e+00> : vector<64x16xf32>
      %266 = tpu.matmul %263, %265, %cst_191 {dimension_numbers = #tpu.dot_dimension_numbers<[1], [0], [0], [1], [0, 0, 1, 1], [], []>} : vector<64x16xbf16>, vector<16x16xbf16>, vector<64x16xf32> -> vector<64x16xf32>
      %267 = arith.addf %260, %266 : vector<64x16xf32>
      %c1_192 = arith.constant 1 : index
      %c0_193 = arith.constant 0 : index
      %c0_194 = arith.constant 0 : index
      %268 = vector.load %arg8[%c1_192, %c0_193, %c0_194] : memref<10x10x16xf32, #tpu.memory_space<vmem>>, vector<8x8x16xf32>
      %269 = vector.shape_cast %268 : vector<8x8x16xf32> to vector<64x16xf32>
      %270 = arith.truncf %269 : vector<64x16xf32> to vector<64x16xbf16>
      %271 = vector.extract_strided_slice %245 {offsets = [3, 0, 0], sizes = [1, 16, 16], strides = [1, 1, 1]} : vector<9x16x16xbf16> to vector<1x16x16xbf16>
      %272 = vector.shape_cast %271 : vector<1x16x16xbf16> to vector<16x16xbf16>
      %cst_195 = arith.constant dense<0.000000e+00> : vector<64x16xf32>
      %273 = tpu.matmul %270, %272, %cst_195 {dimension_numbers = #tpu.dot_dimension_numbers<[1], [0], [0], [1], [0, 0, 1, 1], [], []>} : vector<64x16xbf16>, vector<16x16xbf16>, vector<64x16xf32> -> vector<64x16xf32>
      %274 = arith.addf %267, %273 : vector<64x16xf32>
      %c1_196 = arith.constant 1 : index
      %c1_197 = arith.constant 1 : index
      %c0_198 = arith.constant 0 : index
      %275 = vector.load %arg8[%c1_196, %c1_197, %c0_198] : memref<10x10x16xf32, #tpu.memory_space<vmem>>, vector<8x8x16xf32>
      %276 = vector.shape_cast %275 : vector<8x8x16xf32> to vector<64x16xf32>
      %277 = arith.truncf %276 : vector<64x16xf32> to vector<64x16xbf16>
      %278 = vector.extract_strided_slice %245 {offsets = [4, 0, 0], sizes = [1, 16, 16], strides = [1, 1, 1]} : vector<9x16x16xbf16> to vector<1x16x16xbf16>
      %279 = vector.shape_cast %278 : vector<1x16x16xbf16> to vector<16x16xbf16>
      %cst_199 = arith.constant dense<0.000000e+00> : vector<64x16xf32>
      %280 = tpu.matmul %277, %279, %cst_199 {dimension_numbers = #tpu.dot_dimension_numbers<[1], [0], [0], [1], [0, 0, 1, 1], [], []>} : vector<64x16xbf16>, vector<16x16xbf16>, vector<64x16xf32> -> vector<64x16xf32>
      %281 = arith.addf %274, %280 : vector<64x16xf32>
      %c1_200 = arith.constant 1 : index
      %c2_201 = arith.constant 2 : index
      %c0_202 = arith.constant 0 : index
      %282 = vector.load %arg8[%c1_200, %c2_201, %c0_202] : memref<10x10x16xf32, #tpu.memory_space<vmem>>, vector<8x8x16xf32>
      %283 = vector.shape_cast %282 : vector<8x8x16xf32> to vector<64x16xf32>
      %284 = arith.truncf %283 : vector<64x16xf32> to vector<64x16xbf16>
      %285 = vector.extract_strided_slice %245 {offsets = [5, 0, 0], sizes = [1, 16, 16], strides = [1, 1, 1]} : vector<9x16x16xbf16> to vector<1x16x16xbf16>
      %286 = vector.shape_cast %285 : vector<1x16x16xbf16> to vector<16x16xbf16>
      %cst_203 = arith.constant dense<0.000000e+00> : vector<64x16xf32>
      %287 = tpu.matmul %284, %286, %cst_203 {dimension_numbers = #tpu.dot_dimension_numbers<[1], [0], [0], [1], [0, 0, 1, 1], [], []>} : vector<64x16xbf16>, vector<16x16xbf16>, vector<64x16xf32> -> vector<64x16xf32>
      %288 = arith.addf %281, %287 : vector<64x16xf32>
      %c2_204 = arith.constant 2 : index
      %c0_205 = arith.constant 0 : index
      %c0_206 = arith.constant 0 : index
      %289 = vector.load %arg8[%c2_204, %c0_205, %c0_206] : memref<10x10x16xf32, #tpu.memory_space<vmem>>, vector<8x8x16xf32>
      %290 = vector.shape_cast %289 : vector<8x8x16xf32> to vector<64x16xf32>
      %291 = arith.truncf %290 : vector<64x16xf32> to vector<64x16xbf16>
      %292 = vector.extract_strided_slice %245 {offsets = [6, 0, 0], sizes = [1, 16, 16], strides = [1, 1, 1]} : vector<9x16x16xbf16> to vector<1x16x16xbf16>
      %293 = vector.shape_cast %292 : vector<1x16x16xbf16> to vector<16x16xbf16>
      %cst_207 = arith.constant dense<0.000000e+00> : vector<64x16xf32>
      %294 = tpu.matmul %291, %293, %cst_207 {dimension_numbers = #tpu.dot_dimension_numbers<[1], [0], [0], [1], [0, 0, 1, 1], [], []>} : vector<64x16xbf16>, vector<16x16xbf16>, vector<64x16xf32> -> vector<64x16xf32>
      %295 = arith.addf %288, %294 : vector<64x16xf32>
      %c2_208 = arith.constant 2 : index
      %c1_209 = arith.constant 1 : index
      %c0_210 = arith.constant 0 : index
      %296 = vector.load %arg8[%c2_208, %c1_209, %c0_210] : memref<10x10x16xf32, #tpu.memory_space<vmem>>, vector<8x8x16xf32>
      %297 = vector.shape_cast %296 : vector<8x8x16xf32> to vector<64x16xf32>
      %298 = arith.truncf %297 : vector<64x16xf32> to vector<64x16xbf16>
      %299 = vector.extract_strided_slice %245 {offsets = [7, 0, 0], sizes = [1, 16, 16], strides = [1, 1, 1]} : vector<9x16x16xbf16> to vector<1x16x16xbf16>
      %300 = vector.shape_cast %299 : vector<1x16x16xbf16> to vector<16x16xbf16>
      %cst_211 = arith.constant dense<0.000000e+00> : vector<64x16xf32>
      %301 = tpu.matmul %298, %300, %cst_211 {dimension_numbers = #tpu.dot_dimension_numbers<[1], [0], [0], [1], [0, 0, 1, 1], [], []>} : vector<64x16xbf16>, vector<16x16xbf16>, vector<64x16xf32> -> vector<64x16xf32>
      %302 = arith.addf %295, %301 : vector<64x16xf32>
      %c2_212 = arith.constant 2 : index
      %c2_213 = arith.constant 2 : index
      %c0_214 = arith.constant 0 : index
      %303 = vector.load %arg8[%c2_212, %c2_213, %c0_214] : memref<10x10x16xf32, #tpu.memory_space<vmem>>, vector<8x8x16xf32>
      %304 = vector.shape_cast %303 : vector<8x8x16xf32> to vector<64x16xf32>
      %305 = arith.truncf %304 : vector<64x16xf32> to vector<64x16xbf16>
      %306 = vector.extract_strided_slice %245 {offsets = [8, 0, 0], sizes = [1, 16, 16], strides = [1, 1, 1]} : vector<9x16x16xbf16> to vector<1x16x16xbf16>
      %307 = vector.shape_cast %306 : vector<1x16x16xbf16> to vector<16x16xbf16>
      %cst_215 = arith.constant dense<0.000000e+00> : vector<64x16xf32>
      %308 = tpu.matmul %305, %307, %cst_215 {dimension_numbers = #tpu.dot_dimension_numbers<[1], [0], [0], [1], [0, 0, 1, 1], [], []>} : vector<64x16xbf16>, vector<16x16xbf16>, vector<64x16xf32> -> vector<64x16xf32>
      %309 = arith.addf %302, %308 : vector<64x16xf32>
      %310 = arith.index_cast %242 : i32 to index
      %c0_216 = arith.constant 0 : index
      %c0_217 = arith.constant 0 : index
      %311 = vector.load %arg4[%310, %c0_216, %c0_217] : memref<10x1x16xf32, #tpu.memory_space<vmem>>, vector<1x1x16xf32>
      %312 = vector.shape_cast %311 : vector<1x1x16xf32> to vector<1x16xf32>
      %313 = vector.broadcast %312 : vector<1x16xf32> to vector<64x16xf32>
      %314 = arith.addf %309, %313 : vector<64x16xf32>
      %cst_218 = arith.constant 0.000000e+00 : f32
      %315 = vector.broadcast %cst_218 : f32 to vector<64x16xf32>
      %316 = arith.maximumf %314, %315 : vector<64x16xf32>
      %317 = vector.shape_cast %316 : vector<64x16xf32> to vector<8x8x16xf32>
      %c1_219 = arith.constant 1 : index
      %c1_220 = arith.constant 1 : index
      %c0_221 = arith.constant 0 : index
      %318 = vector.load %arg8[%c1_219, %c1_220, %c0_221] : memref<10x10x16xf32, #tpu.memory_space<vmem>>, vector<8x8x16xf32>
      tpu.vector_store %arg8[%c1_219, %c1_220, %c0_221], %317 {strides = array<i32>} : memref<10x10x16xf32, #tpu.memory_space<vmem>>, vector<8x8x16xf32>,
      %c2_i32_222 = arith.constant 2 : i32
      %319 = arith.addi %163, %c2_i32_222 : i32
      %320 = arith.index_cast %319 : i32 to index
      %c0_223 = arith.constant 0 : index
      %c0_224 = arith.constant 0 : index
      %c0_225 = arith.constant 0 : index
      %321 = vector.load %arg3[%320, %c0_223, %c0_224, %c0_225] : memref<10x9x16x16xbf16, #tpu.memory_space<vmem>>, vector<1x9x16x16xbf16>
      %322 = vector.shape_cast %321 : vector<1x9x16x16xbf16> to vector<9x16x16xbf16>
      %cst_226 = arith.constant 0.000000e+00 : f32
      %323 = vector.broadcast %cst_226 : f32 to vector<64x16xf32>
      %c0_227 = arith.constant 0 : index
      %c0_228 = arith.constant 0 : index
      %c0_229 = arith.constant 0 : index
      %324 = vector.load %arg8[%c0_227, %c0_228, %c0_229] : memref<10x10x16xf32, #tpu.memory_space<vmem>>, vector<8x8x16xf32>
      %325 = vector.shape_cast %324 : vector<8x8x16xf32> to vector<64x16xf32>
      %326 = arith.truncf %325 : vector<64x16xf32> to vector<64x16xbf16>
      %327 = vector.extract_strided_slice %322 {offsets = [0, 0, 0], sizes = [1, 16, 16], strides = [1, 1, 1]} : vector<9x16x16xbf16> to vector<1x16x16xbf16>
      %328 = vector.shape_cast %327 : vector<1x16x16xbf16> to vector<16x16xbf16>
      %cst_230 = arith.constant dense<0.000000e+00> : vector<64x16xf32>
      %329 = tpu.matmul %326, %328, %cst_230 {dimension_numbers = #tpu.dot_dimension_numbers<[1], [0], [0], [1], [0, 0, 1, 1], [], []>} : vector<64x16xbf16>, vector<16x16xbf16>, vector<64x16xf32> -> vector<64x16xf32>
      %330 = arith.addf %323, %329 : vector<64x16xf32>
      %c0_231 = arith.constant 0 : index
      %c1_232 = arith.constant 1 : index
      %c0_233 = arith.constant 0 : index
      %331 = vector.load %arg8[%c0_231, %c1_232, %c0_233] : memref<10x10x16xf32, #tpu.memory_space<vmem>>, vector<8x8x16xf32>
      %332 = vector.shape_cast %331 : vector<8x8x16xf32> to vector<64x16xf32>
      %333 = arith.truncf %332 : vector<64x16xf32> to vector<64x16xbf16>
      %334 = vector.extract_strided_slice %322 {offsets = [1, 0, 0], sizes = [1, 16, 16], strides = [1, 1, 1]} : vector<9x16x16xbf16> to vector<1x16x16xbf16>
      %335 = vector.shape_cast %334 : vector<1x16x16xbf16> to vector<16x16xbf16>
      %cst_234 = arith.constant dense<0.000000e+00> : vector<64x16xf32>
      %336 = tpu.matmul %333, %335, %cst_234 {dimension_numbers = #tpu.dot_dimension_numbers<[1], [0], [0], [1], [0, 0, 1, 1], [], []>} : vector<64x16xbf16>, vector<16x16xbf16>, vector<64x16xf32> -> vector<64x16xf32>
      %337 = arith.addf %330, %336 : vector<64x16xf32>
      %c0_235 = arith.constant 0 : index
      %c2_236 = arith.constant 2 : index
      %c0_237 = arith.constant 0 : index
      %338 = vector.load %arg8[%c0_235, %c2_236, %c0_237] : memref<10x10x16xf32, #tpu.memory_space<vmem>>, vector<8x8x16xf32>
      %339 = vector.shape_cast %338 : vector<8x8x16xf32> to vector<64x16xf32>
      %340 = arith.truncf %339 : vector<64x16xf32> to vector<64x16xbf16>
      %341 = vector.extract_strided_slice %322 {offsets = [2, 0, 0], sizes = [1, 16, 16], strides = [1, 1, 1]} : vector<9x16x16xbf16> to vector<1x16x16xbf16>
      %342 = vector.shape_cast %341 : vector<1x16x16xbf16> to vector<16x16xbf16>
      %cst_238 = arith.constant dense<0.000000e+00> : vector<64x16xf32>
      %343 = tpu.matmul %340, %342, %cst_238 {dimension_numbers = #tpu.dot_dimension_numbers<[1], [0], [0], [1], [0, 0, 1, 1], [], []>} : vector<64x16xbf16>, vector<16x16xbf16>, vector<64x16xf32> -> vector<64x16xf32>
      %344 = arith.addf %337, %343 : vector<64x16xf32>
      %c1_239 = arith.constant 1 : index
      %c0_240 = arith.constant 0 : index
      %c0_241 = arith.constant 0 : index
      %345 = vector.load %arg8[%c1_239, %c0_240, %c0_241] : memref<10x10x16xf32, #tpu.memory_space<vmem>>, vector<8x8x16xf32>
      %346 = vector.shape_cast %345 : vector<8x8x16xf32> to vector<64x16xf32>
      %347 = arith.truncf %346 : vector<64x16xf32> to vector<64x16xbf16>
      %348 = vector.extract_strided_slice %322 {offsets = [3, 0, 0], sizes = [1, 16, 16], strides = [1, 1, 1]} : vector<9x16x16xbf16> to vector<1x16x16xbf16>
      %349 = vector.shape_cast %348 : vector<1x16x16xbf16> to vector<16x16xbf16>
      %cst_242 = arith.constant dense<0.000000e+00> : vector<64x16xf32>
      %350 = tpu.matmul %347, %349, %cst_242 {dimension_numbers = #tpu.dot_dimension_numbers<[1], [0], [0], [1], [0, 0, 1, 1], [], []>} : vector<64x16xbf16>, vector<16x16xbf16>, vector<64x16xf32> -> vector<64x16xf32>
      %351 = arith.addf %344, %350 : vector<64x16xf32>
      %c1_243 = arith.constant 1 : index
      %c1_244 = arith.constant 1 : index
      %c0_245 = arith.constant 0 : index
      %352 = vector.load %arg8[%c1_243, %c1_244, %c0_245] : memref<10x10x16xf32, #tpu.memory_space<vmem>>, vector<8x8x16xf32>
      %353 = vector.shape_cast %352 : vector<8x8x16xf32> to vector<64x16xf32>
      %354 = arith.truncf %353 : vector<64x16xf32> to vector<64x16xbf16>
      %355 = vector.extract_strided_slice %322 {offsets = [4, 0, 0], sizes = [1, 16, 16], strides = [1, 1, 1]} : vector<9x16x16xbf16> to vector<1x16x16xbf16>
      %356 = vector.shape_cast %355 : vector<1x16x16xbf16> to vector<16x16xbf16>
      %cst_246 = arith.constant dense<0.000000e+00> : vector<64x16xf32>
      %357 = tpu.matmul %354, %356, %cst_246 {dimension_numbers = #tpu.dot_dimension_numbers<[1], [0], [0], [1], [0, 0, 1, 1], [], []>} : vector<64x16xbf16>, vector<16x16xbf16>, vector<64x16xf32> -> vector<64x16xf32>
      %358 = arith.addf %351, %357 : vector<64x16xf32>
      %c1_247 = arith.constant 1 : index
      %c2_248 = arith.constant 2 : index
      %c0_249 = arith.constant 0 : index
      %359 = vector.load %arg8[%c1_247, %c2_248, %c0_249] : memref<10x10x16xf32, #tpu.memory_space<vmem>>, vector<8x8x16xf32>
      %360 = vector.shape_cast %359 : vector<8x8x16xf32> to vector<64x16xf32>
      %361 = arith.truncf %360 : vector<64x16xf32> to vector<64x16xbf16>
      %362 = vector.extract_strided_slice %322 {offsets = [5, 0, 0], sizes = [1, 16, 16], strides = [1, 1, 1]} : vector<9x16x16xbf16> to vector<1x16x16xbf16>
      %363 = vector.shape_cast %362 : vector<1x16x16xbf16> to vector<16x16xbf16>
      %cst_250 = arith.constant dense<0.000000e+00> : vector<64x16xf32>
      %364 = tpu.matmul %361, %363, %cst_250 {dimension_numbers = #tpu.dot_dimension_numbers<[1], [0], [0], [1], [0, 0, 1, 1], [], []>} : vector<64x16xbf16>, vector<16x16xbf16>, vector<64x16xf32> -> vector<64x16xf32>
      %365 = arith.addf %358, %364 : vector<64x16xf32>
      %c2_251 = arith.constant 2 : index
      %c0_252 = arith.constant 0 : index
      %c0_253 = arith.constant 0 : index
      %366 = vector.load %arg8[%c2_251, %c0_252, %c0_253] : memref<10x10x16xf32, #tpu.memory_space<vmem>>, vector<8x8x16xf32>
      %367 = vector.shape_cast %366 : vector<8x8x16xf32> to vector<64x16xf32>
      %368 = arith.truncf %367 : vector<64x16xf32> to vector<64x16xbf16>
      %369 = vector.extract_strided_slice %322 {offsets = [6, 0, 0], sizes = [1, 16, 16], strides = [1, 1, 1]} : vector<9x16x16xbf16> to vector<1x16x16xbf16>
      %370 = vector.shape_cast %369 : vector<1x16x16xbf16> to vector<16x16xbf16>
      %cst_254 = arith.constant dense<0.000000e+00> : vector<64x16xf32>
      %371 = tpu.matmul %368, %370, %cst_254 {dimension_numbers = #tpu.dot_dimension_numbers<[1], [0], [0], [1], [0, 0, 1, 1], [], []>} : vector<64x16xbf16>, vector<16x16xbf16>, vector<64x16xf32> -> vector<64x16xf32>
      %372 = arith.addf %365, %371 : vector<64x16xf32>
      %c2_255 = arith.constant 2 : index
      %c1_256 = arith.constant 1 : index
      %c0_257 = arith.constant 0 : index
      %373 = vector.load %arg8[%c2_255, %c1_256, %c0_257] : memref<10x10x16xf32, #tpu.memory_space<vmem>>, vector<8x8x16xf32>
      %374 = vector.shape_cast %373 : vector<8x8x16xf32> to vector<64x16xf32>
      %375 = arith.truncf %374 : vector<64x16xf32> to vector<64x16xbf16>
      %376 = vector.extract_strided_slice %322 {offsets = [7, 0, 0], sizes = [1, 16, 16], strides = [1, 1, 1]} : vector<9x16x16xbf16> to vector<1x16x16xbf16>
      %377 = vector.shape_cast %376 : vector<1x16x16xbf16> to vector<16x16xbf16>
      %cst_258 = arith.constant dense<0.000000e+00> : vector<64x16xf32>
      %378 = tpu.matmul %375, %377, %cst_258 {dimension_numbers = #tpu.dot_dimension_numbers<[1], [0], [0], [1], [0, 0, 1, 1], [], []>} : vector<64x16xbf16>, vector<16x16xbf16>, vector<64x16xf32> -> vector<64x16xf32>
      %379 = arith.addf %372, %378 : vector<64x16xf32>
      %c2_259 = arith.constant 2 : index
      %c2_260 = arith.constant 2 : index
      %c0_261 = arith.constant 0 : index
      %380 = vector.load %arg8[%c2_259, %c2_260, %c0_261] : memref<10x10x16xf32, #tpu.memory_space<vmem>>, vector<8x8x16xf32>
      %381 = vector.shape_cast %380 : vector<8x8x16xf32> to vector<64x16xf32>
      %382 = arith.truncf %381 : vector<64x16xf32> to vector<64x16xbf16>
      %383 = vector.extract_strided_slice %322 {offsets = [8, 0, 0], sizes = [1, 16, 16], strides = [1, 1, 1]} : vector<9x16x16xbf16> to vector<1x16x16xbf16>
      %384 = vector.shape_cast %383 : vector<1x16x16xbf16> to vector<16x16xbf16>
      %cst_262 = arith.constant dense<0.000000e+00> : vector<64x16xf32>
      %385 = tpu.matmul %382, %384, %cst_262 {dimension_numbers = #tpu.dot_dimension_numbers<[1], [0], [0], [1], [0, 0, 1, 1], [], []>} : vector<64x16xbf16>, vector<16x16xbf16>, vector<64x16xf32> -> vector<64x16xf32>
      %386 = arith.addf %379, %385 : vector<64x16xf32>
      %387 = arith.index_cast %319 : i32 to index
      %c0_263 = arith.constant 0 : index
      %c0_264 = arith.constant 0 : index
      %388 = vector.load %arg4[%387, %c0_263, %c0_264] : memref<10x1x16xf32, #tpu.memory_space<vmem>>, vector<1x1x16xf32>
      %389 = vector.shape_cast %388 : vector<1x1x16xf32> to vector<1x16xf32>
      %390 = vector.broadcast %389 : vector<1x16xf32> to vector<64x16xf32>
      %391 = arith.addf %386, %390 : vector<64x16xf32>
      %392 = vector.shape_cast %391 : vector<64x16xf32> to vector<8x8x16xf32>
      %c1_265 = arith.constant 1 : index
      %c1_266 = arith.constant 1 : index
      %c0_267 = arith.constant 0 : index
      %393 = vector.load %arg8[%c1_265, %c1_266, %c0_267] : memref<10x10x16xf32, #tpu.memory_space<vmem>>, vector<8x8x16xf32>
      tpu.vector_store %arg8[%c1_265, %c1_266, %c0_267], %392 {strides = array<i32>} : memref<10x10x16xf32, #tpu.memory_space<vmem>>, vector<8x8x16xf32>,
      %c3_i32 = arith.constant 3 : i32
      %394 = arith.addi %163, %c3_i32 : i32
      %395 = arith.index_cast %394 : i32 to index
      %c0_268 = arith.constant 0 : index
      %c0_269 = arith.constant 0 : index
      %c0_270 = arith.constant 0 : index
      %396 = vector.load %arg3[%395, %c0_268, %c0_269, %c0_270] : memref<10x9x16x16xbf16, #tpu.memory_space<vmem>>, vector<1x9x16x16xbf16>
      %397 = vector.shape_cast %396 : vector<1x9x16x16xbf16> to vector<9x16x16xbf16>
      %cst_271 = arith.constant 0.000000e+00 : f32
      %398 = vector.broadcast %cst_271 : f32 to vector<64x16xf32>
      %c0_272 = arith.constant 0 : index
      %c0_273 = arith.constant 0 : index
      %c0_274 = arith.constant 0 : index
      %399 = vector.load %arg8[%c0_272, %c0_273, %c0_274] : memref<10x10x16xf32, #tpu.memory_space<vmem>>, vector<8x8x16xf32>
      %400 = vector.shape_cast %399 : vector<8x8x16xf32> to vector<64x16xf32>
      %401 = arith.truncf %400 : vector<64x16xf32> to vector<64x16xbf16>
      %402 = vector.extract_strided_slice %397 {offsets = [0, 0, 0], sizes = [1, 16, 16], strides = [1, 1, 1]} : vector<9x16x16xbf16> to vector<1x16x16xbf16>
      %403 = vector.shape_cast %402 : vector<1x16x16xbf16> to vector<16x16xbf16>
      %cst_275 = arith.constant dense<0.000000e+00> : vector<64x16xf32>
      %404 = tpu.matmul %401, %403, %cst_275 {dimension_numbers = #tpu.dot_dimension_numbers<[1], [0], [0], [1], [0, 0, 1, 1], [], []>} : vector<64x16xbf16>, vector<16x16xbf16>, vector<64x16xf32> -> vector<64x16xf32>
      %405 = arith.addf %398, %404 : vector<64x16xf32>
      %c0_276 = arith.constant 0 : index
      %c1_277 = arith.constant 1 : index
      %c0_278 = arith.constant 0 : index
      %406 = vector.load %arg8[%c0_276, %c1_277, %c0_278] : memref<10x10x16xf32, #tpu.memory_space<vmem>>, vector<8x8x16xf32>
      %407 = vector.shape_cast %406 : vector<8x8x16xf32> to vector<64x16xf32>
      %408 = arith.truncf %407 : vector<64x16xf32> to vector<64x16xbf16>
      %409 = vector.extract_strided_slice %397 {offsets = [1, 0, 0], sizes = [1, 16, 16], strides = [1, 1, 1]} : vector<9x16x16xbf16> to vector<1x16x16xbf16>
      %410 = vector.shape_cast %409 : vector<1x16x16xbf16> to vector<16x16xbf16>
      %cst_279 = arith.constant dense<0.000000e+00> : vector<64x16xf32>
      %411 = tpu.matmul %408, %410, %cst_279 {dimension_numbers = #tpu.dot_dimension_numbers<[1], [0], [0], [1], [0, 0, 1, 1], [], []>} : vector<64x16xbf16>, vector<16x16xbf16>, vector<64x16xf32> -> vector<64x16xf32>
      %412 = arith.addf %405, %411 : vector<64x16xf32>
      %c0_280 = arith.constant 0 : index
      %c2_281 = arith.constant 2 : index
      %c0_282 = arith.constant 0 : index
      %413 = vector.load %arg8[%c0_280, %c2_281, %c0_282] : memref<10x10x16xf32, #tpu.memory_space<vmem>>, vector<8x8x16xf32>
      %414 = vector.shape_cast %413 : vector<8x8x16xf32> to vector<64x16xf32>
      %415 = arith.truncf %414 : vector<64x16xf32> to vector<64x16xbf16>
      %416 = vector.extract_strided_slice %397 {offsets = [2, 0, 0], sizes = [1, 16, 16], strides = [1, 1, 1]} : vector<9x16x16xbf16> to vector<1x16x16xbf16>
      %417 = vector.shape_cast %416 : vector<1x16x16xbf16> to vector<16x16xbf16>
      %cst_283 = arith.constant dense<0.000000e+00> : vector<64x16xf32>
      %418 = tpu.matmul %415, %417, %cst_283 {dimension_numbers = #tpu.dot_dimension_numbers<[1], [0], [0], [1], [0, 0, 1, 1], [], []>} : vector<64x16xbf16>, vector<16x16xbf16>, vector<64x16xf32> -> vector<64x16xf32>
      %419 = arith.addf %412, %418 : vector<64x16xf32>
      %c1_284 = arith.constant 1 : index
      %c0_285 = arith.constant 0 : index
      %c0_286 = arith.constant 0 : index
      %420 = vector.load %arg8[%c1_284, %c0_285, %c0_286] : memref<10x10x16xf32, #tpu.memory_space<vmem>>, vector<8x8x16xf32>
      %421 = vector.shape_cast %420 : vector<8x8x16xf32> to vector<64x16xf32>
      %422 = arith.truncf %421 : vector<64x16xf32> to vector<64x16xbf16>
      %423 = vector.extract_strided_slice %397 {offsets = [3, 0, 0], sizes = [1, 16, 16], strides = [1, 1, 1]} : vector<9x16x16xbf16> to vector<1x16x16xbf16>
      %424 = vector.shape_cast %423 : vector<1x16x16xbf16> to vector<16x16xbf16>
      %cst_287 = arith.constant dense<0.000000e+00> : vector<64x16xf32>
      %425 = tpu.matmul %422, %424, %cst_287 {dimension_numbers = #tpu.dot_dimension_numbers<[1], [0], [0], [1], [0, 0, 1, 1], [], []>} : vector<64x16xbf16>, vector<16x16xbf16>, vector<64x16xf32> -> vector<64x16xf32>
      %426 = arith.addf %419, %425 : vector<64x16xf32>
      %c1_288 = arith.constant 1 : index
      %c1_289 = arith.constant 1 : index
      %c0_290 = arith.constant 0 : index
      %427 = vector.load %arg8[%c1_288, %c1_289, %c0_290] : memref<10x10x16xf32, #tpu.memory_space<vmem>>, vector<8x8x16xf32>
      %428 = vector.shape_cast %427 : vector<8x8x16xf32> to vector<64x16xf32>
      %429 = arith.truncf %428 : vector<64x16xf32> to vector<64x16xbf16>
      %430 = vector.extract_strided_slice %397 {offsets = [4, 0, 0], sizes = [1, 16, 16], strides = [1, 1, 1]} : vector<9x16x16xbf16> to vector<1x16x16xbf16>
      %431 = vector.shape_cast %430 : vector<1x16x16xbf16> to vector<16x16xbf16>
      %cst_291 = arith.constant dense<0.000000e+00> : vector<64x16xf32>
      %432 = tpu.matmul %429, %431, %cst_291 {dimension_numbers = #tpu.dot_dimension_numbers<[1], [0], [0], [1], [0, 0, 1, 1], [], []>} : vector<64x16xbf16>, vector<16x16xbf16>, vector<64x16xf32> -> vector<64x16xf32>
      %433 = arith.addf %426, %432 : vector<64x16xf32>
      %c1_292 = arith.constant 1 : index
      %c2_293 = arith.constant 2 : index
      %c0_294 = arith.constant 0 : index
      %434 = vector.load %arg8[%c1_292, %c2_293, %c0_294] : memref<10x10x16xf32, #tpu.memory_space<vmem>>, vector<8x8x16xf32>
      %435 = vector.shape_cast %434 : vector<8x8x16xf32> to vector<64x16xf32>
      %436 = arith.truncf %435 : vector<64x16xf32> to vector<64x16xbf16>
      %437 = vector.extract_strided_slice %397 {offsets = [5, 0, 0], sizes = [1, 16, 16], strides = [1, 1, 1]} : vector<9x16x16xbf16> to vector<1x16x16xbf16>
      %438 = vector.shape_cast %437 : vector<1x16x16xbf16> to vector<16x16xbf16>
      %cst_295 = arith.constant dense<0.000000e+00> : vector<64x16xf32>
      %439 = tpu.matmul %436, %438, %cst_295 {dimension_numbers = #tpu.dot_dimension_numbers<[1], [0], [0], [1], [0, 0, 1, 1], [], []>} : vector<64x16xbf16>, vector<16x16xbf16>, vector<64x16xf32> -> vector<64x16xf32>
      %440 = arith.addf %433, %439 : vector<64x16xf32>
      %c2_296 = arith.constant 2 : index
      %c0_297 = arith.constant 0 : index
      %c0_298 = arith.constant 0 : index
      %441 = vector.load %arg8[%c2_296, %c0_297, %c0_298] : memref<10x10x16xf32, #tpu.memory_space<vmem>>, vector<8x8x16xf32>
      %442 = vector.shape_cast %441 : vector<8x8x16xf32> to vector<64x16xf32>
      %443 = arith.truncf %442 : vector<64x16xf32> to vector<64x16xbf16>
      %444 = vector.extract_strided_slice %397 {offsets = [6, 0, 0], sizes = [1, 16, 16], strides = [1, 1, 1]} : vector<9x16x16xbf16> to vector<1x16x16xbf16>
      %445 = vector.shape_cast %444 : vector<1x16x16xbf16> to vector<16x16xbf16>
      %cst_299 = arith.constant dense<0.000000e+00> : vector<64x16xf32>
      %446 = tpu.matmul %443, %445, %cst_299 {dimension_numbers = #tpu.dot_dimension_numbers<[1], [0], [0], [1], [0, 0, 1, 1], [], []>} : vector<64x16xbf16>, vector<16x16xbf16>, vector<64x16xf32> -> vector<64x16xf32>
      %447 = arith.addf %440, %446 : vector<64x16xf32>
      %c2_300 = arith.constant 2 : index
      %c1_301 = arith.constant 1 : index
      %c0_302 = arith.constant 0 : index
      %448 = vector.load %arg8[%c2_300, %c1_301, %c0_302] : memref<10x10x16xf32, #tpu.memory_space<vmem>>, vector<8x8x16xf32>
      %449 = vector.shape_cast %448 : vector<8x8x16xf32> to vector<64x16xf32>
      %450 = arith.truncf %449 : vector<64x16xf32> to vector<64x16xbf16>
      %451 = vector.extract_strided_slice %397 {offsets = [7, 0, 0], sizes = [1, 16, 16], strides = [1, 1, 1]} : vector<9x16x16xbf16> to vector<1x16x16xbf16>
      %452 = vector.shape_cast %451 : vector<1x16x16xbf16> to vector<16x16xbf16>
      %cst_303 = arith.constant dense<0.000000e+00> : vector<64x16xf32>
      %453 = tpu.matmul %450, %452, %cst_303 {dimension_numbers = #tpu.dot_dimension_numbers<[1], [0], [0], [1], [0, 0, 1, 1], [], []>} : vector<64x16xbf16>, vector<16x16xbf16>, vector<64x16xf32> -> vector<64x16xf32>
      %454 = arith.addf %447, %453 : vector<64x16xf32>
      %c2_304 = arith.constant 2 : index
      %c2_305 = arith.constant 2 : index
      %c0_306 = arith.constant 0 : index
      %455 = vector.load %arg8[%c2_304, %c2_305, %c0_306] : memref<10x10x16xf32, #tpu.memory_space<vmem>>, vector<8x8x16xf32>
      %456 = vector.shape_cast %455 : vector<8x8x16xf32> to vector<64x16xf32>
      %457 = arith.truncf %456 : vector<64x16xf32> to vector<64x16xbf16>
      %458 = vector.extract_strided_slice %397 {offsets = [8, 0, 0], sizes = [1, 16, 16], strides = [1, 1, 1]} : vector<9x16x16xbf16> to vector<1x16x16xbf16>
      %459 = vector.shape_cast %458 : vector<1x16x16xbf16> to vector<16x16xbf16>
      %cst_307 = arith.constant dense<0.000000e+00> : vector<64x16xf32>
      %460 = tpu.matmul %457, %459, %cst_307 {dimension_numbers = #tpu.dot_dimension_numbers<[1], [0], [0], [1], [0, 0, 1, 1], [], []>} : vector<64x16xbf16>, vector<16x16xbf16>, vector<64x16xf32> -> vector<64x16xf32>
      %461 = arith.addf %454, %460 : vector<64x16xf32>
      %462 = arith.index_cast %394 : i32 to index
      %c0_308 = arith.constant 0 : index
      %c0_309 = arith.constant 0 : index
      %463 = vector.load %arg4[%462, %c0_308, %c0_309] : memref<10x1x16xf32, #tpu.memory_space<vmem>>, vector<1x1x16xf32>
      %464 = vector.shape_cast %463 : vector<1x1x16xf32> to vector<1x16xf32>
      %465 = vector.broadcast %464 : vector<1x16xf32> to vector<64x16xf32>
      %466 = arith.addf %461, %465 : vector<64x16xf32>
      %cst_310 = arith.constant 0.000000e+00 : f32
      %467 = vector.broadcast %cst_310 : f32 to vector<64x16xf32>
      %468 = arith.maximumf %466, %467 : vector<64x16xf32>
      %cst_311 = arith.constant dense<0.000000e+00> : vector<16xf32>
      %469 = vector.multi_reduction <add>, %468, %cst_311 [0] : vector<64x16xf32> to vector<16xf32>
      %470 = vector.shape_cast %469 : vector<16xf32> to vector<1x16xf32>
      %cst_312 = arith.constant 6.400000e+01 : f32
      %471 = vector.broadcast %cst_312 : f32 to vector<1x16xf32>
      %472 = arith.divf %470, %471 : vector<1x16xf32>
      %473 = arith.truncf %472 : vector<1x16xf32> to vector<1x16xbf16>
      %c2_i32_313 = arith.constant 2 : i32
      %474 = arith.muli %c2_i32_313, %arg11 : i32
      %c0_i32_314 = arith.constant 0 : i32
      %475 = arith.addi %474, %c0_i32_314 : i32
      %476 = arith.index_cast %475 : i32 to index
      %c0_315 = arith.constant 0 : index
      %c0_316 = arith.constant 0 : index
      %477 = vector.load %arg5[%476, %c0_315, %c0_316] : memref<4x16x16xbf16, #tpu.memory_space<vmem>>, vector<1x16x16xbf16>
      %478 = vector.shape_cast %477 : vector<1x16x16xbf16> to vector<16x16xbf16>
      %cst_317 = arith.constant dense<0.000000e+00> : vector<1x16xf32>
      %479 = tpu.matmul %473, %478, %cst_317 {dimension_numbers = #tpu.dot_dimension_numbers<[1], [0], [0], [1], [0, 0, 1, 1], [], []>} : vector<1x16xbf16>, vector<16x16xbf16>, vector<1x16xf32> -> vector<1x16xf32>
      %c2_i32_318 = arith.constant 2 : i32
      %480 = arith.muli %c2_i32_318, %arg11 : i32
      %c0_i32_319 = arith.constant 0 : i32
      %481 = arith.addi %480, %c0_i32_319 : i32
      %482 = arith.index_cast %481 : i32 to index
      %c0_320 = arith.constant 0 : index
      %c0_321 = arith.constant 0 : index
      %483 = vector.load %arg6[%482, %c0_320, %c0_321] : memref<4x1x16xf32, #tpu.memory_space<vmem>>, vector<1x1x16xf32>
      %484 = vector.shape_cast %483 : vector<1x1x16xf32> to vector<1x16xf32>
      %485 = arith.addf %479, %484 : vector<1x16xf32>
      %cst_322 = arith.constant 0.000000e+00 : f32
      %486 = vector.broadcast %cst_322 : f32 to vector<1x16xf32>
      %487 = arith.maximumf %485, %486 : vector<1x16xf32>
      %488 = arith.truncf %487 : vector<1x16xf32> to vector<1x16xbf16>
      %c2_i32_323 = arith.constant 2 : i32
      %489 = arith.muli %c2_i32_323, %arg11 : i32
      %c1_i32_324 = arith.constant 1 : i32
      %490 = arith.addi %489, %c1_i32_324 : i32
      %491 = arith.index_cast %490 : i32 to index
      %c0_325 = arith.constant 0 : index
      %c0_326 = arith.constant 0 : index
      %492 = vector.load %arg5[%491, %c0_325, %c0_326] : memref<4x16x16xbf16, #tpu.memory_space<vmem>>, vector<1x16x16xbf16>
      %493 = vector.shape_cast %492 : vector<1x16x16xbf16> to vector<16x16xbf16>
      %cst_327 = arith.constant dense<0.000000e+00> : vector<1x16xf32>
      %494 = tpu.matmul %488, %493, %cst_327 {dimension_numbers = #tpu.dot_dimension_numbers<[1], [0], [0], [1], [0, 0, 1, 1], [], []>} : vector<1x16xbf16>, vector<16x16xbf16>, vector<1x16xf32> -> vector<1x16xf32>
      %c2_i32_328 = arith.constant 2 : i32
      %495 = arith.muli %c2_i32_328, %arg11 : i32
      %c1_i32_329 = arith.constant 1 : i32
      %496 = arith.addi %495, %c1_i32_329 : i32
      %497 = arith.index_cast %496 : i32 to index
      %c0_330 = arith.constant 0 : index
      %c0_331 = arith.constant 0 : index
      %498 = vector.load %arg6[%497, %c0_330, %c0_331] : memref<4x1x16xf32, #tpu.memory_space<vmem>>, vector<1x1x16xf32>
      %499 = vector.shape_cast %498 : vector<1x1x16xf32> to vector<1x16xf32>
      %500 = arith.addf %494, %499 : vector<1x16xf32>
      %501 = arith.negf %500 : vector<1x16xf32>
      %502 = math.exp %501 : vector<1x16xf32>
      %cst_332 = arith.constant 1.000000e+00 : f32
      %503 = vector.broadcast %cst_332 : f32 to vector<1x16xf32>
      %504 = arith.addf %503, %502 : vector<1x16xf32>
      %505 = arith.divf %503, %504 : vector<1x16xf32>
      %506 = vector.broadcast %505 : vector<1x16xf32> to vector<64x16xf32>
      %507 = arith.mulf %468, %506 : vector<64x16xf32>
      %c0_333 = arith.constant 0 : index
      %c0_334 = arith.constant 0 : index
      %508 = vector.load %arg10[%c0_333, %c0_334] : memref<64x16xf32, #tpu.memory_space<vmem>>, vector<64x16xf32>
      %509 = arith.addf %507, %508 : vector<64x16xf32>
      %c0_335 = arith.constant 0 : index
      %c0_336 = arith.constant 0 : index
      %510 = vector.load %arg10[%c0_335, %c0_336] : memref<64x16xf32, #tpu.memory_space<vmem>>, vector<64x16xf32>
      tpu.vector_store %arg10[%c0_335, %c0_336], %509 {strides = array<i32>} : memref<64x16xf32, #tpu.memory_space<vmem>>, vector<64x16xf32>,
    }
    %c2_i32_67 = arith.constant 2 : i32
    %c0_68 = arith.constant 0 : index
    %c0_69 = arith.constant 0 : index
    %85 = vector.load %arg10[%c0_68, %c0_69] : memref<64x16xf32, #tpu.memory_space<vmem>>, vector<64x16xf32>
    %86 = vector.shape_cast %85 : vector<64x16xf32> to vector<8x8x16xf32>
    %c1_70 = arith.constant 1 : index
    %c1_71 = arith.constant 1 : index
    %c0_72 = arith.constant 0 : index
    %87 = vector.load %arg8[%c1_70, %c1_71, %c0_72] : memref<10x10x16xf32, #tpu.memory_space<vmem>>, vector<8x8x16xf32>
    tpu.vector_store %arg8[%c1_70, %c1_71, %c0_72], %86 {strides = array<i32>} : memref<10x10x16xf32, #tpu.memory_space<vmem>>, vector<8x8x16xf32>,
    %c9_73 = arith.constant 9 : index
    %c0_74 = arith.constant 0 : index
    %c0_75 = arith.constant 0 : index
    %c0_76 = arith.constant 0 : index
    %88 = vector.load %arg3[%c9_73, %c0_74, %c0_75, %c0_76] : memref<10x9x16x16xbf16, #tpu.memory_space<vmem>>, vector<1x9x16x16xbf16>
    %89 = vector.shape_cast %88 : vector<1x9x16x16xbf16> to vector<9x16x16xbf16>
    %cst_77 = arith.constant 0.000000e+00 : f32
    %90 = vector.broadcast %cst_77 : f32 to vector<64x16xf32>
    %c0_78 = arith.constant 0 : index
    %c0_79 = arith.constant 0 : index
    %c0_80 = arith.constant 0 : index
    %91 = vector.load %arg8[%c0_78, %c0_79, %c0_80] : memref<10x10x16xf32, #tpu.memory_space<vmem>>, vector<8x8x16xf32>
    %92 = vector.shape_cast %91 : vector<8x8x16xf32> to vector<64x16xf32>
    %93 = arith.truncf %92 : vector<64x16xf32> to vector<64x16xbf16>
    %94 = vector.extract_strided_slice %89 {offsets = [0, 0, 0], sizes = [1, 16, 16], strides = [1, 1, 1]} : vector<9x16x16xbf16> to vector<1x16x16xbf16>
    %95 = vector.shape_cast %94 : vector<1x16x16xbf16> to vector<16x16xbf16>
    %cst_81 = arith.constant dense<0.000000e+00> : vector<64x16xf32>
    %96 = tpu.matmul %93, %95, %cst_81 {dimension_numbers = #tpu.dot_dimension_numbers<[1], [0], [0], [1], [0, 0, 1, 1], [], []>} : vector<64x16xbf16>, vector<16x16xbf16>, vector<64x16xf32> -> vector<64x16xf32>
    %97 = arith.addf %90, %96 : vector<64x16xf32>
    %c0_82 = arith.constant 0 : index
    %c1_83 = arith.constant 1 : index
    %c0_84 = arith.constant 0 : index
    %98 = vector.load %arg8[%c0_82, %c1_83, %c0_84] : memref<10x10x16xf32, #tpu.memory_space<vmem>>, vector<8x8x16xf32>
    %99 = vector.shape_cast %98 : vector<8x8x16xf32> to vector<64x16xf32>
    %100 = arith.truncf %99 : vector<64x16xf32> to vector<64x16xbf16>
    %101 = vector.extract_strided_slice %89 {offsets = [1, 0, 0], sizes = [1, 16, 16], strides = [1, 1, 1]} : vector<9x16x16xbf16> to vector<1x16x16xbf16>
    %102 = vector.shape_cast %101 : vector<1x16x16xbf16> to vector<16x16xbf16>
    %cst_85 = arith.constant dense<0.000000e+00> : vector<64x16xf32>
    %103 = tpu.matmul %100, %102, %cst_85 {dimension_numbers = #tpu.dot_dimension_numbers<[1], [0], [0], [1], [0, 0, 1, 1], [], []>} : vector<64x16xbf16>, vector<16x16xbf16>, vector<64x16xf32> -> vector<64x16xf32>
    %104 = arith.addf %97, %103 : vector<64x16xf32>
    %c0_86 = arith.constant 0 : index
    %c2_87 = arith.constant 2 : index
    %c0_88 = arith.constant 0 : index
    %105 = vector.load %arg8[%c0_86, %c2_87, %c0_88] : memref<10x10x16xf32, #tpu.memory_space<vmem>>, vector<8x8x16xf32>
    %106 = vector.shape_cast %105 : vector<8x8x16xf32> to vector<64x16xf32>
    %107 = arith.truncf %106 : vector<64x16xf32> to vector<64x16xbf16>
    %108 = vector.extract_strided_slice %89 {offsets = [2, 0, 0], sizes = [1, 16, 16], strides = [1, 1, 1]} : vector<9x16x16xbf16> to vector<1x16x16xbf16>
    %109 = vector.shape_cast %108 : vector<1x16x16xbf16> to vector<16x16xbf16>
    %cst_89 = arith.constant dense<0.000000e+00> : vector<64x16xf32>
    %110 = tpu.matmul %107, %109, %cst_89 {dimension_numbers = #tpu.dot_dimension_numbers<[1], [0], [0], [1], [0, 0, 1, 1], [], []>} : vector<64x16xbf16>, vector<16x16xbf16>, vector<64x16xf32> -> vector<64x16xf32>
    %111 = arith.addf %104, %110 : vector<64x16xf32>
    %c1_90 = arith.constant 1 : index
    %c0_91 = arith.constant 0 : index
    %c0_92 = arith.constant 0 : index
    %112 = vector.load %arg8[%c1_90, %c0_91, %c0_92] : memref<10x10x16xf32, #tpu.memory_space<vmem>>, vector<8x8x16xf32>
    %113 = vector.shape_cast %112 : vector<8x8x16xf32> to vector<64x16xf32>
    %114 = arith.truncf %113 : vector<64x16xf32> to vector<64x16xbf16>
    %115 = vector.extract_strided_slice %89 {offsets = [3, 0, 0], sizes = [1, 16, 16], strides = [1, 1, 1]} : vector<9x16x16xbf16> to vector<1x16x16xbf16>
    %116 = vector.shape_cast %115 : vector<1x16x16xbf16> to vector<16x16xbf16>
    %cst_93 = arith.constant dense<0.000000e+00> : vector<64x16xf32>
    %117 = tpu.matmul %114, %116, %cst_93 {dimension_numbers = #tpu.dot_dimension_numbers<[1], [0], [0], [1], [0, 0, 1, 1], [], []>} : vector<64x16xbf16>, vector<16x16xbf16>, vector<64x16xf32> -> vector<64x16xf32>
    %118 = arith.addf %111, %117 : vector<64x16xf32>
    %c1_94 = arith.constant 1 : index
    %c1_95 = arith.constant 1 : index
    %c0_96 = arith.constant 0 : index
    %119 = vector.load %arg8[%c1_94, %c1_95, %c0_96] : memref<10x10x16xf32, #tpu.memory_space<vmem>>, vector<8x8x16xf32>
    %120 = vector.shape_cast %119 : vector<8x8x16xf32> to vector<64x16xf32>
    %121 = arith.truncf %120 : vector<64x16xf32> to vector<64x16xbf16>
    %122 = vector.extract_strided_slice %89 {offsets = [4, 0, 0], sizes = [1, 16, 16], strides = [1, 1, 1]} : vector<9x16x16xbf16> to vector<1x16x16xbf16>
    %123 = vector.shape_cast %122 : vector<1x16x16xbf16> to vector<16x16xbf16>
    %cst_97 = arith.constant dense<0.000000e+00> : vector<64x16xf32>
    %124 = tpu.matmul %121, %123, %cst_97 {dimension_numbers = #tpu.dot_dimension_numbers<[1], [0], [0], [1], [0, 0, 1, 1], [], []>} : vector<64x16xbf16>, vector<16x16xbf16>, vector<64x16xf32> -> vector<64x16xf32>
    %125 = arith.addf %118, %124 : vector<64x16xf32>
    %c1_98 = arith.constant 1 : index
    %c2_99 = arith.constant 2 : index
    %c0_100 = arith.constant 0 : index
    %126 = vector.load %arg8[%c1_98, %c2_99, %c0_100] : memref<10x10x16xf32, #tpu.memory_space<vmem>>, vector<8x8x16xf32>
    %127 = vector.shape_cast %126 : vector<8x8x16xf32> to vector<64x16xf32>
    %128 = arith.truncf %127 : vector<64x16xf32> to vector<64x16xbf16>
    %129 = vector.extract_strided_slice %89 {offsets = [5, 0, 0], sizes = [1, 16, 16], strides = [1, 1, 1]} : vector<9x16x16xbf16> to vector<1x16x16xbf16>
    %130 = vector.shape_cast %129 : vector<1x16x16xbf16> to vector<16x16xbf16>
    %cst_101 = arith.constant dense<0.000000e+00> : vector<64x16xf32>
    %131 = tpu.matmul %128, %130, %cst_101 {dimension_numbers = #tpu.dot_dimension_numbers<[1], [0], [0], [1], [0, 0, 1, 1], [], []>} : vector<64x16xbf16>, vector<16x16xbf16>, vector<64x16xf32> -> vector<64x16xf32>
    %132 = arith.addf %125, %131 : vector<64x16xf32>
    %c2_102 = arith.constant 2 : index
    %c0_103 = arith.constant 0 : index
    %c0_104 = arith.constant 0 : index
    %133 = vector.load %arg8[%c2_102, %c0_103, %c0_104] : memref<10x10x16xf32, #tpu.memory_space<vmem>>, vector<8x8x16xf32>
    %134 = vector.shape_cast %133 : vector<8x8x16xf32> to vector<64x16xf32>
    %135 = arith.truncf %134 : vector<64x16xf32> to vector<64x16xbf16>
    %136 = vector.extract_strided_slice %89 {offsets = [6, 0, 0], sizes = [1, 16, 16], strides = [1, 1, 1]} : vector<9x16x16xbf16> to vector<1x16x16xbf16>
    %137 = vector.shape_cast %136 : vector<1x16x16xbf16> to vector<16x16xbf16>
    %cst_105 = arith.constant dense<0.000000e+00> : vector<64x16xf32>
    %138 = tpu.matmul %135, %137, %cst_105 {dimension_numbers = #tpu.dot_dimension_numbers<[1], [0], [0], [1], [0, 0, 1, 1], [], []>} : vector<64x16xbf16>, vector<16x16xbf16>, vector<64x16xf32> -> vector<64x16xf32>
    %139 = arith.addf %132, %138 : vector<64x16xf32>
    %c2_106 = arith.constant 2 : index
    %c1_107 = arith.constant 1 : index
    %c0_108 = arith.constant 0 : index
    %140 = vector.load %arg8[%c2_106, %c1_107, %c0_108] : memref<10x10x16xf32, #tpu.memory_space<vmem>>, vector<8x8x16xf32>
    %141 = vector.shape_cast %140 : vector<8x8x16xf32> to vector<64x16xf32>
    %142 = arith.truncf %141 : vector<64x16xf32> to vector<64x16xbf16>
    %143 = vector.extract_strided_slice %89 {offsets = [7, 0, 0], sizes = [1, 16, 16], strides = [1, 1, 1]} : vector<9x16x16xbf16> to vector<1x16x16xbf16>
    %144 = vector.shape_cast %143 : vector<1x16x16xbf16> to vector<16x16xbf16>
    %cst_109 = arith.constant dense<0.000000e+00> : vector<64x16xf32>
    %145 = tpu.matmul %142, %144, %cst_109 {dimension_numbers = #tpu.dot_dimension_numbers<[1], [0], [0], [1], [0, 0, 1, 1], [], []>} : vector<64x16xbf16>, vector<16x16xbf16>, vector<64x16xf32> -> vector<64x16xf32>
    %146 = arith.addf %139, %145 : vector<64x16xf32>
    %c2_110 = arith.constant 2 : index
    %c2_111 = arith.constant 2 : index
    %c0_112 = arith.constant 0 : index
    %147 = vector.load %arg8[%c2_110, %c2_111, %c0_112] : memref<10x10x16xf32, #tpu.memory_space<vmem>>, vector<8x8x16xf32>
    %148 = vector.shape_cast %147 : vector<8x8x16xf32> to vector<64x16xf32>
    %149 = arith.truncf %148 : vector<64x16xf32> to vector<64x16xbf16>
    %150 = vector.extract_strided_slice %89 {offsets = [8, 0, 0], sizes = [1, 16, 16], strides = [1, 1, 1]} : vector<9x16x16xbf16> to vector<1x16x16xbf16>
    %151 = vector.shape_cast %150 : vector<1x16x16xbf16> to vector<16x16xbf16>
    %cst_113 = arith.constant dense<0.000000e+00> : vector<64x16xf32>
    %152 = tpu.matmul %149, %151, %cst_113 {dimension_numbers = #tpu.dot_dimension_numbers<[1], [0], [0], [1], [0, 0, 1, 1], [], []>} : vector<64x16xbf16>, vector<16x16xbf16>, vector<64x16xf32> -> vector<64x16xf32>
    %153 = arith.addf %146, %152 : vector<64x16xf32>
    %c9_114 = arith.constant 9 : index
    %c0_115 = arith.constant 0 : index
    %c0_116 = arith.constant 0 : index
    %154 = vector.load %arg4[%c9_114, %c0_115, %c0_116] : memref<10x1x16xf32, #tpu.memory_space<vmem>>, vector<1x1x16xf32>
    %155 = vector.shape_cast %154 : vector<1x1x16xf32> to vector<1x16xf32>
    %156 = vector.broadcast %155 : vector<1x16xf32> to vector<64x16xf32>
    %157 = arith.addf %153, %156 : vector<64x16xf32>
    %c0_117 = arith.constant 0 : index
    %c0_118 = arith.constant 0 : index
    %158 = vector.load %arg9[%c0_117, %c0_118] : memref<64x16xf32, #tpu.memory_space<vmem>>, vector<64x16xf32>
    %159 = arith.addf %157, %158 : vector<64x16xf32>
    %160 = vector.shape_cast %159 : vector<64x16xf32> to vector<1x8x8x16xf32>
    %c0_119 = arith.constant 0 : index
    %c0_120 = arith.constant 0 : index
    %c0_121 = arith.constant 0 : index
    %c0_122 = arith.constant 0 : index
    %161 = vector.load %arg7[%c0_119, %c0_120, %c0_121, %c0_122] : memref<1x8x8x16xf32, #tpu.memory_space<vmem>>, vector<1x8x8x16xf32>
    tpu.vector_store %arg7[%c0_119, %c0_120, %c0_121, %c0_122], %160 {strides = array<i32>} : memref<1x8x8x16xf32, #tpu.memory_space<vmem>>, vector<1x8x8x16xf32>,
    return
  }
  func.func @transform_0(%arg0: i32) -> (i32, i32, i32, i32) {
    %c0_i32 = arith.constant 0 : i32
    %c0_i32_0 = arith.constant 0 : i32
    %c0_i32_1 = arith.constant 0 : i32
    %c0_i32_2 = arith.constant 0 : i32
    return %arg0, %c0_i32, %c0_i32_0, %c0_i32_1 : i32, i32, i32, i32
  }
  func.func @transform_1(%arg0: i32) -> (i32, i32, i32) {
    %c0_i32 = arith.constant 0 : i32
    %c0_i32_0 = arith.constant 0 : i32
    %c0_i32_1 = arith.constant 0 : i32
    %c0_i32_2 = arith.constant 0 : i32
    return %c0_i32, %c0_i32_0, %c0_i32_1 : i32, i32, i32
  }
  func.func @transform_2(%arg0: i32) -> (i32, i32, i32, i32) {
    %c0_i32 = arith.constant 0 : i32
    %c0_i32_0 = arith.constant 0 : i32
    %c0_i32_1 = arith.constant 0 : i32
    %c0_i32_2 = arith.constant 0 : i32
    %c0_i32_3 = arith.constant 0 : i32
    return %c0_i32, %c0_i32_0, %c0_i32_1, %c0_i32_2 : i32, i32, i32, i32
  }
  func.func @transform_3(%arg0: i32) -> (i32, i32, i32) {
    %c0_i32 = arith.constant 0 : i32
    %c0_i32_0 = arith.constant 0 : i32
    %c0_i32_1 = arith.constant 0 : i32
    %c0_i32_2 = arith.constant 0 : i32
    return %c0_i32, %c0_i32_0, %c0_i32_1 : i32, i32, i32
  }
  func.func @transform_4(%arg0: i32) -> (i32, i32, i32) {
    %c0_i32 = arith.constant 0 : i32
    %c0_i32_0 = arith.constant 0 : i32
    %c0_i32_1 = arith.constant 0 : i32
    %c0_i32_2 = arith.constant 0 : i32
    return %c0_i32, %c0_i32_0, %c0_i32_1 : i32, i32, i32
  }
  func.func @transform_5(%arg0: i32) -> (i32, i32, i32) {
    %c0_i32 = arith.constant 0 : i32
    %c0_i32_0 = arith.constant 0 : i32
    %c0_i32_1 = arith.constant 0 : i32
    %c0_i32_2 = arith.constant 0 : i32
    return %c0_i32, %c0_i32_0, %c0_i32_1 : i32, i32, i32
  }
  func.func @transform_6(%arg0: i32) -> (i32, i32, i32, i32) {
    %c0_i32 = arith.constant 0 : i32
    %c0_i32_0 = arith.constant 0 : i32
    %c0_i32_1 = arith.constant 0 : i32
    %c0_i32_2 = arith.constant 0 : i32
    return %arg0, %c0_i32, %c0_i32_0, %c0_i32_1 : i32, i32, i32, i32
  }
}

</mosaic_0001>

<bundles_post_ra>
// kernel: tpu_custom_call.1
= control target key start
LH: loop header
LB: loop body
LE: loop exit
PB: predicated region body
PF: predicated region fallthrough
CT: control target
= control target key end

     0   :  { %11 = vsyncpa [#allocation6], 0  ;;  %s9713_s0 = inlined_call_operand.hbm [shape: f32[2,8,8,16], index: 0, kind: input, shape index: {}]   ;;  %s9714_s1 = inlined_call_operand.hbm [shape: f32[1,1,16], index: 1, kind: input, shape index: {}]   ;;  %s9715_s2 = inlined_call_operand.hbm [shape: bf16[10,9,16,16], index: 2, kind: input, shape index: {}]   ;;  %s9716_s3 = inlined_call_operand.hbm [shape: f32[10,1,16], index: 3, kind: input, shape index: {}]   ;;  %s9717_s4 = inlined_call_operand.hbm [shape: bf16[4,16,16], index: 4, kind: input, shape index: {}]   ;;  %s9718_s5 = inlined_call_operand.hbm [shape: f32[4,1,16], index: 5, kind: input, shape index: {}]   ;;  %s9719_s6 = inlined_call_operand.hbm [shape: f32[2,8,8,16], index: 6, kind: output, shape index: {}]  }
   0x1   :  { %13 = vsyncpa [#allocation6 + $0x1], 0 }
   0x2   :  { %14 = vsyncpa [#allocation9], 0 }
   0x3   :  { %15 = vsyncpa [#allocation12], 0 }
   0x4   :  { %16 = vsyncpa [#allocation15], 0 }
   0x5   :  { %17 = vsyncpa [#allocation7], 0 }
   0x6   :  { %19 = vsyncpa [#allocation7 + $0x1], 0  ;;  %s8678_s21 = smov 0   ;;  %s8680_s22 = smov 0  }
   0x7   :  { %s8682_s23 = smov 0   ;;  %s8684_s24 = smov 0  }
   0x8 LB: > { %s8625_s25 = smov [#allocation8]   ;;  %s8699_s27 = sadd.s32 4294967295, %s8619_s24   ;;  %s8619_s24 = sphi %s8684_s24, %s9748_s24   ;;  %s8615_s23 = sphi %s8682_s23, %s9747_s23   ;;  %s8611_s22 = sphi %s8680_s22, %s9746_s22   ;;  %s8607_s21 = sphi %s8678_s21, %s9745_s21  }
   0x9   : > { %s200_s26 = sshll.u32 %s8625_s25, 4  ;;  %p6570_p0 = scmp.ge.s32.totalorder %s8619_s24, 1  ;;  %s8704_s26 = int_to_ptr.vmem [resolvable:$true] %s200_s26 }
   0xa   : > { %p9722_p1 = scmp.eq.s32.totalorder %s8699_s27, 0  ;;  %p187_p2 = scmp.lt.s32.totalorder %s8619_s24, 3 }
   0xb   : > { %s8626_s29 = smov [#allocation11]   ;;  %s8627_s8 = smov [#allocation10]  }
   0xc   : > { %p8706_p3 = pnand %p6570_p0, %p187_p2  ;;  %s223_s30 = sshll.u32 %s8626_s29, 4  ;;  %s8713_s30 = int_to_ptr.vmem [resolvable:$true] %s223_s30 }
   0xd   : > { %s210_s9 = sshll.u32 %s8627_s8, 4  ;;  %s8367_s12 = scalar_lea.hbm %s9714_s1, 16  ;;  %s8721_s9 = int_to_ptr.vmem [resolvable:$true] %s210_s9 }
   0xe   : > { %s9725_s28 = scalar_select %p8706_p3, 1, 0 }
   0xf   : > { %p8215_p5 = pneg %p8706_p3  ;;  %p8368_p7 = scmp.ne.s32.totalorder %s9714_s1, %s8367_s12 }
  0x10   : > { %p8374_p11 = scmp.lt.u32.totalorder %s8367_s12, %s9714_s1 }
  0x11   : > { %p8717_p6 = pnand %p8215_p5, %p9722_p1 }
  0x13   : > { %p8731_p8 = pneg %p8717_p6 }
  0x15   : > { %p8370_p9 = pnand %p8731_p8, %p8368_p7 }
  0x17   : > { %p8371_p10 = pneg %p8370_p9 }
  0x19   : > { %p8376_p12 = pnand %p8374_p11, %p8371_p10 }
  0x1b   : > { %8379 = shalt.err (!%p8376_p12)
}
  0x1c   : > { %s8380_s18 = scalar_lea.vmem %s8704_s26, 16  ;;  %s8387_s19 = scalar_lea.vmem %s8704_s26, 32 }
  0x1d   : > { %p8381_p13 = scmp.ne.s32.totalorder %s8704_s26, %s8380_s18  ;;  %p8388_p5 = scmp.lt.s32.totalorder %s8704_s26, %s8704_s26 }
  0x1e   : > { %p8389_p7 = scmp.lt.s32.totalorder %s8387_s19, %s8380_s18 }
  0x1f   : > { %p8383_p0 = pnand %p8381_p13, %p8731_p8 }
  0x20   : > { %p8390_p9 = por %p8389_p7, %p8388_p5 }
  0x21   : > { %p8384_p2 = pneg %p8383_p0 }
  0x23   : > { %p8391_p4 = pnand %p8390_p9, %p8384_p2 }
  0x25   : > { %8394 = shalt.err (!%p8391_p4)
}
  0x26   : > { %8218 = dma.hbm_to_vmem [thread:$0]  (!%p8717_p6), %s9714_s1, 16, %s8704_s26, [#allocation9]  }
  0x27   : > { %s8395_s10 = scalar_lea.hbm %s9716_s3, 160 }
  0x28   : > { %p8396_p10 = scmp.ne.s32.totalorder %s9716_s3, %s8395_s10  ;;  %p8402_p4 = scmp.lt.u32.totalorder %s8395_s10, %s9716_s3 }
  0x2a   : > { %p8398_p11 = pnand %p8396_p10, %p8731_p8 }
  0x2c   : > { %p8399_p12 = pneg %p8398_p11 }
  0x2e   : > { %p8404_p13 = pnand %p8402_p4, %p8399_p12 }
  0x30   : > { %8407 = shalt.err (!%p8404_p13)
}
  0x31   : > { %s8408_s26 = scalar_lea.vmem %s8713_s30, 160  ;;  %p8416_p7 = scmp.lt.s32.totalorder %s8713_s30, %s8713_s30 }
  0x32   : > { %p8409_p0 = scmp.ne.s32.totalorder %s8713_s30, %s8408_s26  ;;  %p8417_p9 = scmp.lt.s32.totalorder %s8408_s26, %s8408_s26 }
  0x34   : > { %p8411_p2 = pnand %p8409_p0, %p8731_p8  ;;  %p8418_p10 = por %p8417_p9, %p8416_p7 }
  0x36   : > { %p8412_p5 = pneg %p8411_p2 }
  0x38   : > { %p8419_p11 = pnand %p8418_p10, %p8412_p5 }
  0x3a   : > { %8422 = shalt.err (!%p8419_p11)
}
  0x3b   : > { %s9720_s16 = smov 16   ;;  %s9721_s17 = smov 1  }
  0x3c   : > { %8224 = dma.hbm_to_vmem [thread:$0]  (!%p8717_p6), %s9716_s3, 160, %s8713_s30, [#allocation12], %s9720_s16, %s9720_s16, %s9721_s17  }
  0x3d   : > { %s8423_s29 = scalar_lea.hbm %s9715_s2, 11520 }
  0x3e   : > { %p8424_p12 = scmp.ne.s32.totalorder %s9715_s2, %s8423_s29  ;;  %p8430_p0 = scmp.lt.u32.totalorder %s8423_s29, %s9715_s2 }
  0x40   : > { %p8426_p4 = pnand %p8424_p12, %p8731_p8 }
  0x42   : > { %p8427_p13 = pneg %p8426_p4 }
  0x44   : > { %p8432_p2 = pnand %p8430_p0, %p8427_p13 }
  0x46   : > { %8435 = shalt.err (!%p8432_p2)
}
  0x47   : > { %s8436_s30 = scalar_lea.vmem %s8721_s9, 11520  ;;  %p8444_p10 = scmp.lt.s32.totalorder %s8721_s9, %s8721_s9 }
  0x48   : > { %p8437_p5 = scmp.ne.s32.totalorder %s8721_s9, %s8436_s30  ;;  %p8445_p11 = scmp.lt.s32.totalorder %s8436_s30, %s8436_s30 }
  0x4a   : > { %p8439_p7 = pnand %p8437_p5, %p8731_p8  ;;  %p8446_p12 = por %p8445_p11, %p8444_p10 }
  0x4c   : > { %p8440_p9 = pneg %p8439_p7 }
  0x4e   : > { %p8447_p4 = pnand %p8446_p12, %p8440_p9 }
  0x50   : > { %8450 = shalt.err (!%p8447_p4)
}
  0x51   : > { %s8630_s13 = smov 64   ;;  %s8631_s14 = smov 4  }
  0x52   : > { %8221 = dma.hbm_to_vmem [thread:$0]  (!%p8717_p6), %s9715_s2, 11520, %s8721_s9, [#allocation9], %s8630_s13, %s8630_s13, %s8631_s14  }
  0x53   : > { %s8632_s19 = smov [#allocation13]   ;;  %s8633_s25 = smov [#allocation14]  }
  0x54   : > { %s236_s20 = sshll.u32 %s8632_s19, 4  ;;  %s249_s29 = sshll.u32 %s8633_s25, 4  ;;  %s237_s20 = int_to_ptr.vmem [resolvable:$true] %s236_s20  ;;  %s250_s29 = int_to_ptr.vmem [resolvable:$true] %s249_s29 }
  0x55   : > { %s8451_s11 = scalar_lea.hbm %s9717_s4, 512 }
  0x56   : > { %p8452_p13 = scmp.ne.s32.totalorder %s9717_s4, %s8451_s11  ;;  %p8458_p5 = scmp.lt.u32.totalorder %s8451_s11, %s9717_s4 }
  0x58   : > { %p8454_p0 = pnand %p8452_p13, %p8731_p8 }
  0x5a   : > { %p8455_p2 = pneg %p8454_p0 }
  0x5c   : > { %p8460_p7 = pnand %p8458_p5, %p8455_p2 }
  0x5e   : > { %8463 = shalt.err (!%p8460_p7)
}
  0x5f   : > { %s8464_s9 = scalar_lea.vmem %s237_s20, 512  ;;  %p8472_p12 = scmp.lt.s32.totalorder %s237_s20, %s237_s20 }
  0x60   : > { %p8465_p9 = scmp.ne.s32.totalorder %s237_s20, %s8464_s9  ;;  %p8473_p4 = scmp.lt.s32.totalorder %s8464_s9, %s8464_s9 }
  0x62   : > { %p8467_p10 = pnand %p8465_p9, %p8731_p8  ;;  %p8474_p1 = por %p8473_p4, %p8472_p12 }
  0x64   : > { %p8468_p11 = pneg %p8467_p10 }
  0x66   : > { %p8475_p3 = pnand %p8474_p1, %p8468_p11 }
  0x68   : > { %8478 = shalt.err (!%p8475_p3)
}
  0x69   : > { %8227 = dma.hbm_to_vmem [thread:$0]  (!%p8717_p6), %s9717_s4, 512, %s237_s20, [#allocation12], %s8630_s13, %s8630_s13, %s8631_s14  }
  0x6a   : > { %s8479_s19 = scalar_lea.hbm %s9718_s5, 64 }
  0x6b   : > { %p8480_p13 = scmp.ne.s32.totalorder %s9718_s5, %s8479_s19  ;;  %p8486_p3 = scmp.lt.u32.totalorder %s8479_s19, %s9718_s5 }
  0x6d   : > { %p8482_p0 = pnand %p8480_p13, %p8731_p8 }
  0x6f   : > { %p8483_p1 = pneg %p8482_p0 }
  0x71   : > { %p8488_p2 = pnand %p8486_p3, %p8483_p1 }
  0x73   : > { %8491 = shalt.err (!%p8488_p2)
}
  0x74   : > { %s8492_s12 = scalar_lea.vmem %s250_s29, 64  ;;  %p8500_p10 = scmp.lt.s32.totalorder %s250_s29, %s250_s29 }
  0x75   : > { %p8493_p5 = scmp.ne.s32.totalorder %s250_s29, %s8492_s12  ;;  %p8501_p11 = scmp.lt.s32.totalorder %s8492_s12, %s8492_s12 }
  0x77   : > { %p8495_p7 = pnand %p8493_p5, %p8731_p8  ;;  %p8502_p12 = por %p8501_p11, %p8500_p10 }
  0x79   : > { %p8496_p9 = pneg %p8495_p7 }
  0x7b   : > { %p8503_p4 = pnand %p8502_p12, %p8496_p9 }
  0x7d   : > { %8506 = shalt.err (!%p8503_p4)
}
  0x7e   : > { %s9728_s13 = smov 1   ;;  %s9729_s14 = smov 16  }
  0x7f   : > { %8230 = dma.hbm_to_vmem [thread:$0]  (!%p8717_p6), %s9718_s5, 64, %s250_s29, [#allocation15], %s9729_s14, %s9729_s14, %s9728_s13  }
  0x80   : > { %s6569_s7 = sadd.s32 4294967294, %s8619_s24   ;;  %s8843_s15 = sadd.s32 1, %s8619_s24  }
  0x81   : > { %s32_s9 = sadd.s32 1, %s8615_s23  ;;  %s29_s26 = ssub.s32 %s8619_s24, %s8843_s15 }
  0x82   : > { %p39_p8 = scmp.ne.s32.totalorder %s8615_s23, %s8611_s22  ;;  %p30_p13 = scmp.eq.s32.totalorder %s29_s26, 0 }
  0x83   : > { %p40_p0 = scmp.eq.s32.totalorder %s8619_s24, 0  ;;  %p45_p1 = scmp.ne.s32.totalorder %s8611_s22, %s8607_s21 }
  0x84   : > { %p174_p3 = scmp.eq.s32.totalorder %s8699_s27, 1  ;;  %p9730_p5 = scmp.eq.s32.totalorder %s8699_s27, 0 }
  0x85   : > { %s8855_s18 = scalar_select %p30_p13, %s8615_s23, %s32_s9  }
  0x86   : > { %p41_p2 = por %p40_p0, %p39_p8  ;;  %p8859_p7 = por %p9730_p5, %p45_p1 }
  0x87   : > { %p8863_p6 = por %p174_p3, %p39_p8  ;;  %p180_p9 = scmp.eq.s32.totalorder %s6569_s7, 1 }
  0x88   : > { %p8244_p10 = scmp.lt.s32.totalorder %s8619_s24, 2  ;;  %s263_s17 = sand.u32 1, %s8615_s23  }
  0x89   : > { %s9732_s29 = scalar_select %p8863_p6, 1, 0 }
  0x8a   : > { %p8869_p11 = por %p180_p9, %p45_p1  ;;  %s6577_s25 = sshll.u32 %s263_s17, 6 }
  0x8b   : > { %s6972_s8 = sshll.u32 %s8619_s24, 10  ;;  %s267_s13 = scalar_lea.vmem [#allocation5], %s6577_s25 }
  0x8c   : > { %s9733_s19 = scalar_select %p8869_p11, 1, 0 }
  0x8d   : > { %s8877_s12 = scalar_lea.hbm %s9713_s0, %s6972_s8  ;;  %s274_s14 = sshll.u32 %s267_s13, 4  ;;  %s8883_s14 = int_to_ptr.vmem [resolvable:$true] %s274_s14 }
  0x8e   : > { %p8879_p12 = pnand %p8244_p10, %p41_p2  ;;  %s8885_s30 = scalar_lea.sflag [#allocation6], %s263_s17 }
  0x8f   : > { %s8507_s7 = scalar_lea.hbm %s8877_s12, 1024  ;;  %s8512_s25 = scalar_lea.hbm %s9713_s0, 2048 }
  0x90   : > { %p8508_p4 = scmp.ne.s32.totalorder %s8877_s12, %s8507_s7  ;;  %p8509_p8 = pneg %p8879_p12 }
  0x91   : > { %p8513_p1 = scmp.lt.u32.totalorder %s8877_s12, %s9713_s0  ;;  %p8514_p3 = scmp.lt.u32.totalorder %s8512_s25, %s8507_s7 }
  0x92   : > { %p8510_p13 = pnand %p8509_p8, %p8508_p4  ;;  %p8516_p5 = scmp.lt.u32.totalorder %s8507_s7, %s8877_s12 }
  0x93   : > { %p8515_p2 = por %p8514_p3, %p8513_p1 }
  0x94   : > { %p8511_p0 = pneg %p8510_p13 }
  0x95   : > { %p8517_p9 = por %p8516_p5, %p8515_p2 }
  0x97   : > { %p8518_p10 = pnand %p8517_p9, %p8511_p0 }
  0x99   : > { %8521 = shalt.err (!%p8518_p10)
}
  0x9a   : > { %s8522_s17 = scalar_lea.vmem %s8883_s14, 1024  ;;  %s8634_s11 = smov [#allocation5]  }
  0x9b   : > { %p8523_p4 = scmp.ne.s32.totalorder %s8883_s14, %s8522_s17  ;;  %s8527_s13 = sshll.u32 %s8634_s11, 4  ;;  %s8528_s13 = int_to_ptr.vmem [resolvable:$false] %s8527_s13 }
  0x9c   : > { %s8529_s9 = scalar_lea.vmem %s8528_s13, 2048  ;;  %p8530_p6 = scmp.lt.s32.totalorder %s8883_s14, %s8528_s13 }
  0x9d   : > { %p8525_p13 = pnand %p8523_p4, %p8509_p8  ;;  %p8531_p1 = scmp.lt.s32.totalorder %s8529_s9, %s8522_s17 }
  0x9f   : > { %p8526_p11 = pneg %p8525_p13  ;;  %p8532_p3 = por %p8531_p1, %p8530_p6 }
  0xa1   : > { %p8533_p2 = pnand %p8532_p3, %p8526_p11 }
  0xa3   : > { %8536 = shalt.err (!%p8533_p2)
}
  0xa4   : > { %s8635_s7 = smov 128   ;;  %s8636_s26 = smov 8  }
  0xa5   : > { %8234 = dma.hbm_to_vmem [thread:$0]  (!%p8879_p12), %s8877_s12, 1024, %s8883_s14, %s8885_s30, %s8635_s7, %s8635_s7, %s8636_s26  }
  0xa6   : > { %p9735_p8 = scmp.ne.s32.totalorder %s9725_s28, 0 }
  0xa7   : > { %s8916_s25 = sand.u32 (!%p9735_p8), 1, %s8611_s22  }
  0xa8   : > { %286 = sbr.rel (%p9735_p8) target bundleno = 2744 (0xab8), region = 44  ;;  %s6581_s8 = sshll.u32 (!%p9735_p8), %s8916_s25, 6 }
  0xa9   : > { %s289_s10 = scalar_lea.sflag (!%p9735_p8), [#allocation6], %s8916_s25  ;;  %s8922_s17 = scalar_lea.vmem (!%p9735_p8), [#allocation5], %s6581_s8 }
  0xaf   : > { %8586 = dma.done.wait (%p8859_p7), %s289_s10, 1024  }
  0xb0   : > { %8588 = vsyncadd (%p8859_p7), %s289_s10, 4294966272  ;;  %p9736_p6 = scmp.eq.s32.totalorder %s8699_s27, 0 }
  0xb2   : > { %8590 = dma.done.wait (%p9736_p6), [#allocation9], 11536   ;;  %p9737_p11 = pmov %p9736_p6 }
  0xb3   : > { %p9738_p12 = pmov %p9736_p6 }
  0xb4   : > { %8592 = vsyncadd (%p9737_p11), [#allocation9], 4294955760 }
  0xb5   : > { %8594 = dma.done.wait (%p9738_p12), [#allocation12], 672   ;;  %p9739_p0 = pmov %p9736_p6 }
  0xb7   : > { %8596 = vsyncadd (%p9739_p0), [#allocation12], 4294966624  ;;  %p9740_p5 = pmov %p9739_p0 }
  0xb8   : > { %p9741_p9 = pmov %p9739_p0 }
  0xb9   : > { %8598 = dma.done.wait (%p9740_p5), [#allocation15], 64  }
  0xba   : > { %8600 = vsyncadd (%p9741_p9), [#allocation15], 4294967232  ;;  %vm342_vm0 = vcmask 130048   ;;  %vm344_vm1 = vcmask 123904   ;;  %v8637_v0 = vmov 0.0   ;;  %vm349_vm2 = vcmask 122880  }
  0xbb   : > { %343 = vst.msk [vmem:[#allocation2] sm:$0xff] %vm342_vm0, %v8637_v0  ;;  %347 = vst.msk [vmem:[#allocation2 + $0x90] sm:$0xff] %vm342_vm0, %v8637_v0  ;;  %v8307_v1 = vld [vmem:[#allocation10 + $0x8] sm:$0xff]   ;;  %v8962_v2 = vld [vmem:[#allocation10 + $0x20] sm:$0xff]   ;;  %s9066_s28 = scalar_lea.vmem [#allocation16], %s6581_s8  ;;  %s9068_s16 = smov 0  }
  0xbc   : > { %345 = vst.msk [vmem:[#allocation2 + $0x8] sm:$0x3] %vm344_vm1, %v8637_v0  ;;  %348 = vst.msk [vmem:[#allocation2 + $0x98] sm:$0x3] %vm344_vm1, %v8637_v0  ;;  %7251 = vmatprep.subr.bf16.mxu1 %v8307_v1  ;;  %v370_v3 = vld [vmem:[%s8922_s17] sm:$0xff]  ;;  %7291 = vmatprep.subr.bf16.mxu0 %v8962_v2  ;;  %v371_v7 = vld [vmem:[%s8922_s17 + $0x8] sm:$0xff] }
  0xbd   : > { %350 = vst.msk [vmem:[#allocation2] sm:$0x1] %vm349_vm2, %v8637_v0  ;;  %360 = vst.msk [vmem:[#allocation2 + $0x9] sm:$0x1] %vm349_vm2, %v8637_v0  ;;  %v6588_v4 = vld [vmem:[#allocation8] ss:$0 sm:$0xff]  ;;  %7252 = vmatpush3.bf16.msra.mxu1 %v8307_v1  ;;  %7292 = vmatpush3.bf16.msra.mxu0 %v8962_v2 }
  0xbe   : > { %351 = vst.msk [vmem:[#allocation2 + $0x10] sm:$0x1] %vm349_vm2, %v8637_v0  ;;  %352 = vst.msk [vmem:[#allocation2 + $0x20] sm:$0x1] %vm349_vm2, %v8637_v0  ;;  %v385_v5 = vsub.f32 %v370_v3, %v6588_v4  ;;  %v8309_v6 = vld [vmem:[#allocation10] sm:$0xff]   ;;  %v386_v8 = vsub.f32 %v371_v7, %v6588_v4  ;;  %v8310_v9 = vld [vmem:[#allocation10 + $0x28] sm:$0xff]  }
  0xbf   : > { %353 = vst.msk [vmem:[#allocation2 + $0x30] sm:$0x1] %vm349_vm2, %v8637_v0  ;;  %354 = vst.msk [vmem:[#allocation2 + $0x40] sm:$0x1] %vm349_vm2, %v8637_v0  ;;  %7261 = vmatprep.subr.bf16.mxu1 %v8309_v6  ;;  %v372_v10 = vld [vmem:[%s8922_s17 + $0x10] sm:$0xff]  ;;  %v373_v11 = vld [vmem:[%s8922_s17 + $0x18] sm:$0xff]  ;;  %7301 = vmatprep.subr.bf16.mxu0 %v8310_v9 }
  0xc0   : > { %355 = vst.msk [vmem:[#allocation2 + $0x50] sm:$0x1] %vm349_vm2, %v8637_v0  ;;  %356 = vst.msk [vmem:[#allocation2 + $0x60] sm:$0x1] %vm349_vm2, %v8637_v0  ;;  %v387_v12 = vsub.f32 %v372_v10, %v6588_v4  ;;  %v388_v13 = vsub.f32 %v373_v11, %v6588_v4  ;;  %v374_v14 = vld [vmem:[%s8922_s17 + $0x20] sm:$0xff]  ;;  %v375_v15 = vld [vmem:[%s8922_s17 + $0x28] sm:$0xff] }
  0xc1   : > { %357 = vst.msk [vmem:[#allocation2 + $0x70] sm:$0x1] %vm349_vm2, %v8637_v0  ;;  %358 = vst.msk [vmem:[#allocation2 + $0x80] sm:$0x1] %vm349_vm2, %v8637_v0  ;;  %v376_v16 = vld [vmem:[%s8922_s17 + $0x30] sm:$0xff]  ;;  %v389_v17 = vsub.f32 %v374_v14, %v6588_v4  ;;  %v390_v18 = vsub.f32 %v375_v15, %v6588_v4  ;;  %v377_v20 = vld [vmem:[%s8922_s17 + $0x38] sm:$0xff] }
  0xc2   : > { %361 = vst.msk [vmem:[#allocation2 + $0x19] sm:$0x1] %vm349_vm2, %v8637_v0  ;;  %362 = vst.msk [vmem:[#allocation2 + $0x29] sm:$0x1] %vm349_vm2, %v8637_v0  ;;  %v391_v19 = vsub.f32 %v376_v16, %v6588_v4  ;;  %v392_v22 = vsub.f32 %v377_v20, %v6588_v4  ;;  %v8311_v36 = vld [vmem:[#allocation10 + $0x30] sm:$0xff]   ;;  %v8313_v54 = vld [vmem:[#allocation10 + $0x38] sm:$0xff]  }
  0xc3   : > { %363 = vst.msk [vmem:[#allocation2 + $0x39] sm:$0x1] %vm349_vm2, %v8637_v0  ;;  %364 = vst.msk [vmem:[#allocation2 + $0x49] sm:$0x1] %vm349_vm2, %v8637_v0  ;;  %v432_v21 = vld [vmem:[#allocation2 + $0x1] sm:$0xff]  ;;  %v8312_v37 = vld [vmem:[#allocation10 + $0x10] sm:$0xff]  }
  0xc4   : > { %365 = vst.msk [vmem:[#allocation2 + $0x59] sm:$0x1] %vm349_vm2, %v8637_v0  ;;  %366 = vst.msk [vmem:[#allocation2 + $0x69] sm:$0x1] %vm349_vm2, %v8637_v0  ;;  %v420_v40 = vld [vmem:[#allocation2] sm:$0xff] }
  0xc5   : > { %367 = vst.msk [vmem:[#allocation2 + $0x79] sm:$0x1] %vm349_vm2, %v8637_v0  ;;  %368 = vst.msk [vmem:[#allocation2 + $0x89] sm:$0x1] %vm349_vm2, %v8637_v0  ;;  %v8314_v59 = vld [vmem:[#allocation10 + $0x18] sm:$0xff]   ;;  %v610_v63 = vld [vmem:[#allocation2 + $0x2] sm:$0xff] }
  0xc6   : > { %369 = vst.msk [vmem:[#allocation2 + $0x99] sm:$0x1] %vm349_vm2, %v8637_v0  ;;  %359 = vst.msk [vmem:[#allocation2 + $0x90] sm:$0x1] %vm349_vm2, %v8637_v0  ;;  %v8315_v3 = vld [vmem:[#allocation10 + $0x40] sm:$0xff]  }
  0xc7   : > { %394 = vst.msk [vmem:[#allocation2 + $0x11] sm:$0xff] %vm342_vm0, %v385_v5  ;;  %395 = vst.msk [vmem:[#allocation2 + $0x21] sm:$0xff] %vm342_vm0, %v386_v8 }
  0xc8   : > { %396 = vst.msk [vmem:[#allocation2 + $0x31] sm:$0xff] %vm342_vm0, %v387_v12  ;;  %397 = vst.msk [vmem:[#allocation2 + $0x41] sm:$0xff] %vm342_vm0, %v388_v13  ;;  %v1133_v13 = vld [vmem:[#allocation2 + $0x91] sm:$0xff] }
  0xc9   : > { %398 = vst.msk [vmem:[#allocation2 + $0x51] sm:$0xff] %vm342_vm0, %v389_v17  ;;  %399 = vst.msk [vmem:[#allocation2 + $0x61] sm:$0xff] %vm342_vm0, %v390_v18 }
  0xca   : > { %400 = vst.msk [vmem:[#allocation2 + $0x71] sm:$0xff] %vm342_vm0, %v391_v19  ;;  %401 = vst.msk [vmem:[#allocation2 + $0x81] sm:$0xff] %vm342_vm0, %v392_v22 }
  0xcd   : > { %v1236_v18 = vld [vmem:[#allocation2 + $0x92] sm:$0xff] }
  0xce   : > { %v433_v23 = vld [vmem:[#allocation2 + $0x11] sm:$0xff]  ;;  %v817_v26 = vld [vmem:[#allocation2 + $0x21] sm:$0xff] }
  0xcf   : > { %v440_v24 = vpack.c.bf16 %v433_v23, %v432_v21  ;;  %v8982_v25 = vld [vmem:[#allocation2 + $0x12] sm:$0xff]  ;;  %v8984_v27 = vld [vmem:[#allocation2 + $0x22] sm:$0xff]  ;;  %v824_v28 = vpack.c.bf16 %v817_v26, %v433_v23 }
  0xd0   : > { %v435_v29 = vld [vmem:[#allocation2 + $0x31] sm:$0xff]  ;;  %v819_v30 = vld [vmem:[#allocation2 + $0x41] sm:$0xff]  ;;  %v927_v34 = vpack.c.bf16 %v8984_v27, %v8982_v25  ;;  %v618_v1 = vpack.c.bf16 %v8982_v25, %v610_v63 }
  0xd1   : > { %7253 = vmatprep.mubr.msk.bf16.mxu1 %vm342_vm0, %v440_v24  ;;  %v8987_v31 = vpack.c.bf16 %v435_v29, %v817_v26  ;;  %v825_v32 = vpack.c.bf16 %v819_v30, %v435_v29  ;;  %v8989_v33 = vld [vmem:[#allocation2 + $0x51] sm:$0xff]  ;;  %7293 = vmatprep.mubr.msk.bf16.mxu0 %vm342_vm0, %v824_v28  ;;  %v9000_v38 = vld [vmem:[#allocation2 + $0x61] sm:$0xff] }
  0xd2   : > { %v8995_v35 = vpack.c.bf16 %v8989_v33, %v819_v30  ;;  %v9002_v39 = vld [vmem:[#allocation2 + $0x71] sm:$0xff]  ;;  %v922_v44 = vld [vmem:[#allocation2 + $0x42] sm:$0xff]  ;;  %v826_v17 = vpack.c.bf16 %v9000_v38, %v8989_v33 }
  0xd3   : > { %7254 = vmatmul.mubr.msk.bf16.vlgmr.msra.gmra.mrb[0].mxu1 %vm342_vm0, %v8987_v31  ;;  %7294 = vmatmul.mubr.msk.bf16.vlgmr.msra.gmra.mrb[0].mxu0 %vm342_vm0, %v825_v32  ;;  %v421_v41 = vld [vmem:[#allocation2 + $0x10] sm:$0xff]  ;;  %v443_v42 = vpack.c.bf16 %v9002_v39, %v9000_v38  ;;  %v924_v47 = vld [vmem:[#allocation2 + $0x62] sm:$0xff] }
  0xd4   : > { %7262 = vmatpush3.bf16.msra.mxu1 %v8309_v6  ;;  %7302 = vmatpush3.bf16.msra.mxu0 %v8310_v9  ;;  %v921_v43 = vld [vmem:[#allocation2 + $0x32] sm:$0xff]  ;;  %v428_v45 = vpack.c.bf16 %v421_v41, %v420_v40  ;;  %v422_v49 = vld [vmem:[#allocation2 + $0x20] sm:$0xff] }
  0xd5   : > { %7257 = vmatprep.mubr.msk.bf16.mxu1 %vm342_vm0, %v8995_v35  ;;  %7303 = vmatprep.mubr.msk.bf16.mxu0 %vm342_vm0, %v927_v34  ;;  %v923_v46 = vld [vmem:[#allocation2 + $0x52] sm:$0xff]  ;;  %v928_v48 = vpack.c.bf16 %v922_v44, %v921_v43  ;;  %v424_v52 = vld [vmem:[#allocation2 + $0x40] sm:$0xff]  ;;  %v619_v4 = vpack.c.bf16 %v921_v43, %v8984_v27  ;;  %v721_v10 = vpack.c.bf16 %v422_v49, %v421_v41 }
  0xd6   : > { %7311 = vmatprep.subr.bf16.mxu0 %v8311_v36  ;;  %7271 = vmatprep.subr.bf16.mxu1 %v8312_v37  ;;  %v423_v50 = vld [vmem:[#allocation2 + $0x30] sm:$0xff]  ;;  %v929_v51 = vpack.c.bf16 %v924_v47, %v923_v46  ;;  %v926_v57 = vld [vmem:[#allocation2 + $0x82] sm:$0xff]  ;;  %v620_v7 = vpack.c.bf16 %v923_v46, %v922_v44 }
  0xd7   : > { %v425_v53 = vld [vmem:[#allocation2 + $0x50] sm:$0xff]  ;;  %v429_v55 = vpack.c.bf16 %v423_v50, %v422_v49  ;;  %v426_v61 = vld [vmem:[#allocation2 + $0x60] sm:$0xff]  ;;  %v722_v11 = vpack.c.bf16 %v424_v52, %v423_v50  ;;  %v1240_v19 = vpack.c.bf16 %v1236_v18, %v926_v57 }
  0xd8   : > { %v925_v56 = vld [vmem:[#allocation2 + $0x72] sm:$0xff]  ;;  %v430_v58 = vpack.c.bf16 %v425_v53, %v424_v52  ;;  %v1029_v5 = vld [vmem:[#allocation2 + $0x80] sm:$0xff]  ;;  %v723_v14 = vpack.c.bf16 %v426_v61, %v425_v53 }
  0xd9   : > { %v930_v60 = vpack.c.bf16 %v926_v57, %v925_v56  ;;  %v427_v62 = vld [vmem:[#allocation2 + $0x70] sm:$0xff]  ;;  %v621_v9 = vpack.c.bf16 %v925_v56, %v924_v47  ;;  %v1132_v12 = vld [vmem:[#allocation2 + $0x81] sm:$0xff] }
  0xda   : > { %v431_v0 = vpack.c.bf16 %v427_v62, %v426_v61  ;;  %v1030_v6 = vld [vmem:[#allocation2 + $0x90] sm:$0xff]  ;;  %v1137_v15 = vpack.c.bf16 %v1133_v13, %v1132_v12  ;;  %v724_v16 = vpack.c.bf16 %v1029_v5, %v427_v62 }
  0xdb   : > { %7258 = vmatmul.mubr.msk.bf16.gmra.mrb[4].mxu1 %vm342_vm0, %v443_v42  ;;  %v1034_v8 = vpack.c.bf16 %v1030_v6, %v1029_v5  ;;  %v6634_v25 = vld [vmem:[#allocation11] ss:$0 sm:$0xff] }
  0xdc   : > { %7263 = vmatprep.mubr.msk.bf16.mxu1 %vm342_vm0, %v428_v45 }
  0xdf   : > { %7304 = vmatmul.mubr.msk.bf16.vlgmr.msra.gmra.mrb[0].mxu0 %vm342_vm0, %v928_v48 }
  0xe0   : > { %7312 = vmatpush3.bf16.msra.mxu0 %v8311_v36  ;;  %7307 = vmatprep.mubr.msk.bf16.mxu0 %vm342_vm0, %v929_v51 }
  0xe1   : > { %7321 = vmatprep.subr.bf16.mxu0 %v8313_v54 }
  0xe3   : > { %7264 = vmatmul.mubr.msk.bf16.vlgmr.msra.gmra.mrb[0].mxu1 %vm342_vm0, %v429_v55 }
  0xe4   : > { %7272 = vmatpush3.bf16.msra.mxu1 %v8312_v37  ;;  %7267 = vmatprep.mubr.msk.bf16.mxu1 %vm342_vm0, %v430_v58 }
  0xe5   : > { %7281 = vmatprep.subr.bf16.mxu1 %v8314_v59 }
  0xe7   : > { %7308 = vmatmul.mubr.msk.bf16.gmra.mrb[4].mxu0 %vm342_vm0, %v930_v60 }
  0xe8   : > { %7313 = vmatprep.mubr.msk.bf16.mxu0 %vm342_vm0, %v429_v55 }
  0xeb   : > { %7268 = vmatmul.mubr.msk.bf16.gmra.mrb[4].mxu1 %vm342_vm0, %v431_v0 }
  0xec   : > { %7273 = vmatprep.mubr.msk.bf16.mxu1 %vm342_vm0, %v618_v1 }
  0xef   : > { %7314 = vmatmul.mubr.msk.bf16.vlgmr.msra.gmra.mrb[0].mxu0 %vm342_vm0, %v430_v58 }
  0xf0   : > { %7322 = vmatpush3.bf16.msra.mxu0 %v8313_v54  ;;  %7317 = vmatprep.mubr.msk.bf16.mxu0 %vm342_vm0, %v431_v0 }
  0xf1   : > { %7331 = vmatprep.subr.bf16.mxu0 %v8315_v3 }
  0xf3   : > { %7274 = vmatmul.mubr.msk.bf16.vlgmr.msra.gmra.mrb[0].mxu1 %vm342_vm0, %v619_v4 }
  0xf4   : > { %7282 = vmatpush3.bf16.msra.mxu1 %v8314_v59  ;;  %7277 = vmatprep.mubr.msk.bf16.mxu1 %vm342_vm0, %v620_v7 }
  0xf5   : > { %7803 = vmatprep.subr.bf16.mxu1 %v8962_v2 }
  0xf7   : > { %7318 = vmatmul.mubr.msk.bf16.gmra.mrb[4].mxu0 %vm342_vm0, %v1034_v8 }
  0xf8   : > { %7323 = vmatprep.mubr.msk.bf16.mxu0 %vm342_vm0, %v8987_v31 }
  0xfb   : > { %7278 = vmatmul.mubr.msk.bf16.gmra.mrb[4].mxu1 %vm342_vm0, %v621_v9 }
  0xfc   : > { %7283 = vmatprep.mubr.msk.bf16.mxu1 %vm342_vm0, %v721_v10 }
  0xff   : > { %7324 = vmatmul.mubr.msk.bf16.vlgmr.msra.gmra.mrb[0].mxu0 %vm342_vm0, %v8995_v35 }
 0x100   : > { %7332 = vmatpush3.bf16.msra.mxu0 %v8315_v3  ;;  %7327 = vmatprep.mubr.msk.bf16.mxu0 %vm342_vm0, %v443_v42 }
 0x103   : > { %7284 = vmatmul.mubr.msk.bf16.vlgmr.msra.gmra.mrb[0].mxu1 %vm342_vm0, %v722_v11 }
 0x104   : > { %7804 = vmatpush3.bf16.msra.mxu1 %v8962_v2  ;;  %7287 = vmatprep.mubr.msk.bf16.mxu1 %vm342_vm0, %v723_v14  ;;  %v827_v2 = vpack.c.bf16 %v1132_v12, %v9002_v39 }
 0x107   : > { %7328 = vmatmul.mubr.msk.bf16.gmra.mrb[4].mxu0 %vm342_vm0, %v1137_v15 }
 0x108   : > { %7333 = vmatprep.mubr.msk.bf16.mxu0 %vm342_vm0, %v619_v4 }
 0x10b   : > { %7288 = vmatmul.mubr.msk.bf16.gmra.mrb[4].mxu1 %vm342_vm0, %v724_v16 }
 0x10c   : > { %7297 = vmatprep.mubr.msk.bf16.mxu1 %vm342_vm0, %v826_v17 }
 0x10f   : > { %7334 = vmatmul.mubr.msk.bf16.vlgmr.msra.gmra.mrb[0].mxu0 %vm342_vm0, %v620_v7 }
 0x110   : > { %7337 = vmatprep.mubr.msk.bf16.mxu0 %vm342_vm0, %v621_v9 }
 0x117   : > { %7298 = vmatmul.mubr.msk.bf16.vlgmr.msra.gmra.mrb[4].mxu1 %vm342_vm0, %v827_v2  ;;  %7338 = vmatmul.mubr.msk.bf16.gmra.mrb[4].mxu0 %vm342_vm0, %v1240_v19 }
 0x1d6   : > { %v7285_v20 = vpop.f32.mrb[0].mxu1 }
 0x1d7   : > { %v777_v21 = vpop.f32.mrb[1].mxu1 }
 0x1d8   : > { %v7286_v22 = vpop.f32.mrb[2].mxu1 }
 0x1d9   : > { %v780_v23 = vpop.f32.mrb[3].mxu1 }
 0x1e2   : > { %v7335_v24 = vpop.f32.mrb[0].mxu0 }
 0x1e3   : > { %v7805_v26 = vadd.f32 %v7335_v24, %v7285_v20  ;;  %v1293_v27 = vpop.f32.mrb[1].mxu0 }
 0x1e4   : > { %v7806_v28 = vadd.f32 %v1293_v27, %v777_v21  ;;  %v7336_v29 = vpop.f32.mrb[2].mxu0 }
 0x1e5   : > { %v1341_v30 = vadd.f32 %v7805_v26, %v6634_v25  ;;  %v7807_v31 = vadd.f32 %v7336_v29, %v7286_v22  ;;  %v1296_v32 = vpop.f32.mrb[3].mxu0 }
 0x1e6   : > { %v1339_v33 = vadd.f32 %v7806_v28, %v6634_v25  ;;  %v7808_v34 = vadd.f32 %v1296_v32, %v780_v23 }
 0x1e7   : > { %1349 = vst.msk [vmem:[#allocation3 + $0x10] sm:$0xff] %vm342_vm0, %v1341_v30  ;;  %1357 = vst.msk [vmem:[#allocation4 + $0x10] sm:$0xff] %vm342_vm0, %v1341_v30  ;;  %v1342_v35 = vadd.f32 %v7807_v31, %v6634_v25 }
 0x1e8   : > { %1347 = vst.msk [vmem:[#allocation3] sm:$0xff] %vm342_vm0, %v1339_v33  ;;  %1355 = vst.msk [vmem:[#allocation4] sm:$0xff] %vm342_vm0, %v1339_v33  ;;  %v1340_v36 = vadd.f32 %v7808_v34, %v6634_v25 }
 0x1e9   : > { %1350 = vst.msk [vmem:[#allocation3 + $0x18] sm:$0xff] %vm342_vm0, %v1342_v35  ;;  %1358 = vst.msk [vmem:[#allocation4 + $0x18] sm:$0xff] %vm342_vm0, %v1342_v35 }
 0x1ea   : > { %1348 = vst.msk [vmem:[#allocation3 + $0x8] sm:$0xff] %vm342_vm0, %v1340_v36  ;;  %1356 = vst.msk [vmem:[#allocation4 + $0x8] sm:$0xff] %vm342_vm0, %v1340_v36  ;;  %v7299_v37 = vpop.f32.mrb[4].mxu1  ;;  %v7339_v38 = vpop.f32.mrb[4].mxu0 }
 0x1eb   : > { %v7809_v39 = vadd.f32 %v7339_v38, %v7299_v37  ;;  %v896_v40 = vpop.f32.mrb[5].mxu1  ;;  %v1309_v41 = vpop.f32.mrb[5].mxu0 }
 0x1ec   : > { %v7810_v42 = vadd.f32 %v1309_v41, %v896_v40  ;;  %v7300_v43 = vpop.f32.mrb[6].mxu1  ;;  %v7340_v44 = vpop.f32.mrb[6].mxu0 }
 0x1ed   : > { %v1345_v45 = vadd.f32 %v7809_v39, %v6634_v25  ;;  %v7811_v46 = vadd.f32 %v7340_v44, %v7300_v43  ;;  %v899_v47 = vpop.f32.mrb[7].mxu1  ;;  %v1312_v48 = vpop.f32.mrb[7].mxu0 }
 0x1ee   : > { %v1343_v49 = vadd.f32 %v7810_v42, %v6634_v25  ;;  %v7812_v50 = vadd.f32 %v1312_v48, %v899_v47 }
 0x1ef   : > { %1353 = vst.msk [vmem:[#allocation3 + $0x30] sm:$0xff] %vm342_vm0, %v1345_v45  ;;  %1361 = vst.msk [vmem:[#allocation4 + $0x30] sm:$0xff] %vm342_vm0, %v1345_v45  ;;  %v1346_v51 = vadd.f32 %v7811_v46, %v6634_v25 }
 0x1f0   : > { %1351 = vst.msk [vmem:[#allocation3 + $0x20] sm:$0xff] %vm342_vm0, %v1343_v49  ;;  %1359 = vst.msk [vmem:[#allocation4 + $0x20] sm:$0xff] %vm342_vm0, %v1343_v49  ;;  %v1344_v52 = vadd.f32 %v7812_v50, %v6634_v25 }
 0x1f1   : > { %1354 = vst.msk [vmem:[#allocation3 + $0x38] sm:$0xff] %vm342_vm0, %v1346_v51  ;;  %1362 = vst.msk [vmem:[#allocation4 + $0x38] sm:$0xff] %vm342_vm0, %v1346_v51 }
 0x1f2   : > { %1352 = vst.msk [vmem:[#allocation3 + $0x28] sm:$0xff] %vm342_vm0, %v1344_v52  ;;  %1360 = vst.msk [vmem:[#allocation4 + $0x28] sm:$0xff] %vm342_vm0, %v1344_v52 }
 0x1f3 LB: >> { %v1371_v53 = vld [vmem:[#allocation4] sm:$0xff]  ;;  %v1372_v54 = vld [vmem:[#allocation4 + $0x8] sm:$0xff]  ;;  %v1373_v55 = vld [vmem:[#allocation4 + $0x10] sm:$0xff]  ;;  %s6636_s12 = smul.u32 288, %s8623_s16  ;;  %s6700_s20 = sshll.u32 %s8623_s16, 2  ;;  %vm8639_vm3 = vmmov 0   ;;  %s8623_s16 = sphi %s9068_s16, %s1368_s16  }
 0x1f4   : >> { %1379 = vst.msk [vmem:[#allocation2 + $0x11] sm:$0xff] %vm342_vm0, %v1371_v53  ;;  %1380 = vst.msk [vmem:[#allocation2 + $0x21] sm:$0xff] %vm342_vm0, %v1372_v54  ;;  %v1374_v56 = vld [vmem:[#allocation4 + $0x18] sm:$0xff]  ;;  %v9081_v61 = vld [vmem:[#allocation2 + $0x1] sm:$0xff]  ;;  %s9206_s30 = scalar_lea.vmem [#allocation11], %s6700_s20  ;;  %s6974_s11 = sshll.u32 %s8623_s16, 4 }
 0x1f5   : >> { %1381 = vst.msk [vmem:[#allocation2 + $0x31] sm:$0xff] %vm342_vm0, %v1373_v55  ;;  %1382 = vst.msk [vmem:[#allocation2 + $0x41] sm:$0xff] %vm342_vm0, %v1374_v56  ;;  %s9084_s14 = scalar_lea.vmem [#allocation10], %s6636_s12  ;;  %v9118_v12 = vld [vmem:[#allocation2] sm:$0xff]  ;;  %s5249_s13 = scalar_lea.vmem [#allocation13], %s6974_s11 }
 0x1f6   : >> { %v1377_v59 = vld [vmem:[#allocation4 + $0x30] sm:$0xff]  ;;  %v8317_v63 = vld [vmem:[%s9084_s14 + $0x48] sm:$0xff]   ;;  %v8318_v9 = vld [vmem:[%s9084_s14 + $0x58] sm:$0xff]   ;;  %s6907_s9 = sshll.u32 %s8623_s16, 1  ;;  %s1368_s16 = sadd.s32 1, %s8623_s16  }
 0x1f7   : >> { %v1375_v57 = vld [vmem:[#allocation4 + $0x20] sm:$0xff]  ;;  %1385 = vst.msk [vmem:[#allocation2 + $0x71] sm:$0xff] %vm342_vm0, %v1377_v59  ;;  %v8316_v62 = vld [vmem:[%s9084_s14 + $0x50] sm:$0xff]   ;;  %v8320_v34 = vld [vmem:[%s9084_s14 + $0x68] sm:$0xff]   ;;  %s5252_s7 = scalar_lea.vmem [#allocation14], %s6907_s9  ;;  %p1365_p7 = scmp.ge.s32.totalorder %s1368_s16, 2  }
 0x1f8   : >> { %1383 = vst.msk [vmem:[#allocation2 + $0x51] sm:$0xff] %vm342_vm0, %v1375_v57  ;;  %v1378_v60 = vld [vmem:[#allocation4 + $0x38] sm:$0xff]  ;;  %7341 = vmatprep.subr.bf16.mxu0 %v8316_v62  ;;  %v8319_v20 = vld [vmem:[%s9084_s14 + $0x60] sm:$0xff]   ;;  %v8321_v41 = vld [vmem:[%s9084_s14 + $0x70] sm:$0xff]   ;;  %s6976_s26 = sshll.u32 (%p1365_p7), %s8699_s27, 10  ;;  %s6404_s8 = sshll.u32 (%p1365_p7), %s9066_s28, 4  ;;  %s9663_s8 = int_to_ptr.vmem [resolvable:$true] %s6404_s8 }
 0x1f9   : >> { %v1376_v58 = vld [vmem:[#allocation4 + $0x28] sm:$0xff]  ;;  %1386 = vst.msk [vmem:[#allocation2 + $0x81] sm:$0xff] %vm342_vm0, %v1378_v60  ;;  %7342 = vmatpush3.bf16.msra.mxu0 %v8316_v62  ;;  %v8322_v47 = vld [vmem:[%s9084_s14 + $0x78] sm:$0xff]   ;;  %v8323_v53 = vld [vmem:[%s9084_s14 + $0x80] sm:$0xff]   ;;  %s9661_s16 = scalar_lea.hbm (%p1365_p7), %s9719_s6, %s6976_s26  ;;  %s6391_s27 = scalar_lea.sflag (%p1365_p7), [#allocation7], %s8916_s25 }
 0x1fa   : >> { %1384 = vst.msk [vmem:[#allocation2 + $0x61] sm:$0xff] %vm342_vm0, %v1376_v58  ;;  %7351 = vmatprep.subr.bf16.mxu0 %v8317_v63  ;;  %v9135_v24 = vld [vmem:[#allocation2 + $0x2] sm:$0xff]  ;;  %v9180_v57 = vld [vmem:[#allocation2 + $0x90] sm:$0xff]  ;;  %s8537_s12 = scalar_lea.vmem (%p1365_p7), %s9663_s8, 1024  ;;  %p9742_p4 = scmp.ne.s32.totalorder (%p1365_p7), %s9732_s29, 0 }
 0x1fb   : >> { %v9088_v0 = vld [vmem:[#allocation2 + $0x11] sm:$0xff]  ;;  %v9090_v1 = vld [vmem:[#allocation2 + $0x21] sm:$0xff]  ;;  %p8538_p10 = scmp.ne.s32.totalorder (%p1365_p7), %s9663_s8, %s8537_s12 }
 0x1fc   : >> { %v1428_v3 = vpack.c.bf16 %v9088_v0, %v9081_v61  ;;  %v9094_v4 = vld [vmem:[#allocation2 + $0x31] sm:$0xff]  ;;  %v9096_v5 = vld [vmem:[#allocation2 + $0x41] sm:$0xff]  ;;  %v1812_v44 = vpack.c.bf16 %v9090_v1, %v9088_v0 }
 0x1fd   : >> { %v9102_v7 = vpack.c.bf16 %v9094_v4, %v9090_v1  ;;  %v1409_v13 = vld [vmem:[#allocation2 + $0x10] sm:$0xff]  ;;  %v1410_v16 = vld [vmem:[#allocation2 + $0x20] sm:$0xff]  ;;  %v1813_v45 = vpack.c.bf16 %v9096_v5, %v9094_v4  ;;  %v8324_v56 = vld [vmem:[%s9084_s14 + $0x88] sm:$0xff]   ;;  %p8539_p13 = pnand (%p1365_p7), %p8538_p10, %p9742_p4 }
 0x1fe   : >> { %7343 = vmatprep.mubr.msk.bf16.mxu0 %vm342_vm0, %v1428_v3  ;;  %v9116_v11 = vld [vmem:[#allocation2 + $0x71] sm:$0xff]  ;;  %v1416_v15 = vpack.c.bf16 %v1409_v13, %v9118_v12  ;;  %v1412_v18 = vld [vmem:[#allocation2 + $0x40] sm:$0xff]  ;;  %v1709_v38 = vpack.c.bf16 %v1410_v16, %v1409_v13 }
 0x1ff   : >> { %v9098_v6 = vld [vmem:[#allocation2 + $0x51] sm:$0xff]  ;;  %7344 = vmatmul.mubr.msk.bf16.vlgmr.msra.gmra.mrb[0].mxu0 %vm342_vm0, %v9102_v7  ;;  %v1600_v28 = vld [vmem:[#allocation2 + $0x22] sm:$0xff]  ;;  %v6702_v3 = vld [vmem:[%s9206_s30 + $0x1] ss:$0 sm:$0xff]  ;;  %p8540_p1 = pneg (%p1365_p7), %p8539_p13 }
 0x200   : >> { %v9106_v8 = vpack.c.bf16 %v9098_v6, %v9096_v5  ;;  %7352 = vmatpush3.bf16.msra.mxu0 %v8317_v63  ;;  %v1411_v17 = vld [vmem:[#allocation2 + $0x30] sm:$0xff]  ;;  %v1602_v30 = vld [vmem:[#allocation2 + $0x42] sm:$0xff]  ;;  %v8325_v0 = vld [vmem:[%s9084_s14 + $0x98] sm:$0xff]  }
 0x201   : >> { %v9114_v10 = vld [vmem:[#allocation2 + $0x61] sm:$0xff]  ;;  %7361 = vmatprep.subr.bf16.mxu0 %v8318_v9  ;;  %v1413_v2 = vld [vmem:[#allocation2 + $0x50] sm:$0xff]  ;;  %v9128_v19 = vpack.c.bf16 %v1411_v17, %v1410_v16  ;;  %v1710_v39 = vpack.c.bf16 %v1412_v18, %v1411_v17  ;;  %7431 = vmatprep.subr.bf16.mxu1 %v8325_v0 }
 0x202   : >> { %7347 = vmatprep.mubr.msk.bf16.mxu0 %vm342_vm0, %v9106_v8  ;;  %v9122_v14 = vpack.c.bf16 %v9116_v11, %v9114_v10  ;;  %v9131_v21 = vpack.c.bf16 %v1413_v2, %v1412_v18  ;;  %v1414_v22 = vld [vmem:[#allocation2 + $0x60] sm:$0xff]  ;;  %v1415_v23 = vld [vmem:[#allocation2 + $0x70] sm:$0xff]  ;;  %v1814_v46 = vpack.c.bf16 %v9114_v10, %v9098_v6  ;;  %7432 = vmatpush3.bf16.msra.mxu1 %v8325_v0 }
 0x203   : >> { %v1599_v25 = vld [vmem:[#allocation2 + $0x12] sm:$0xff]  ;;  %v1419_v26 = vpack.c.bf16 %v1415_v23, %v1414_v22  ;;  %v1604_v35 = vld [vmem:[#allocation2 + $0x62] sm:$0xff]  ;;  %v1711_v40 = vpack.c.bf16 %v1414_v22, %v1413_v2 }
 0x204   : >> { %v1606_v27 = vpack.c.bf16 %v1599_v25, %v9135_v24  ;;  %v1601_v29 = vld [vmem:[#allocation2 + $0x32] sm:$0xff]  ;;  %v1708_v42 = vld [vmem:[#allocation2 + $0x80] sm:$0xff]  ;;  %v1915_v50 = vpack.c.bf16 %v1600_v28, %v1599_v25 }
 0x205   : >> { %v1603_v31 = vld [vmem:[#allocation2 + $0x52] sm:$0xff]  ;;  %v9142_v32 = vpack.c.bf16 %v1601_v29, %v1600_v28  ;;  %v1712_v43 = vpack.c.bf16 %v1708_v42, %v1415_v23  ;;  %v1811_v48 = vld [vmem:[#allocation2 + $0x81] sm:$0xff]  ;;  %v1916_v51 = vpack.c.bf16 %v1602_v30, %v1601_v29  ;;  %v2021_v58 = vpack.c.bf16 %v9180_v57, %v1708_v42 }
 0x206   : >> { %v9144_v33 = vpack.c.bf16 %v1603_v31, %v1602_v30  ;;  %v1605_v36 = vld [vmem:[#allocation2 + $0x72] sm:$0xff]  ;;  %v1815_v49 = vpack.c.bf16 %v1811_v48, %v9116_v11  ;;  %v1917_v52 = vpack.c.bf16 %v1604_v35, %v1603_v31  ;;  %v1914_v54 = vld [vmem:[#allocation2 + $0x82] sm:$0xff] }
 0x207   : >> { %7348 = vmatmul.mubr.msk.bf16.gmra.mrb[4].mxu0 %vm342_vm0, %v9122_v14  ;;  %v1609_v37 = vpack.c.bf16 %v1605_v36, %v1604_v35  ;;  %v1918_v55 = vpack.c.bf16 %v1914_v54, %v1605_v36  ;;  %v9190_v59 = vld [vmem:[#allocation2 + $0x91] sm:$0xff] }
 0x208   : >> { %7353 = vmatprep.mubr.msk.bf16.mxu0 %vm342_vm0, %v1416_v15  ;;  %v2124_v60 = vpack.c.bf16 %v9190_v59, %v1811_v48  ;;  %v9199_v62 = vld [vmem:[#allocation2 + $0x92] sm:$0xff] }
 0x209   : >> { %v2227_v63 = vpack.c.bf16 %v9199_v62, %v1914_v54  ;;  %v8326_v1 = vld [vmem:[%s9084_s14 + $0x90] sm:$0xff]  }
 0x20a   : >> { %7441 = vmatprep.subr.bf16.mxu1 %v8326_v1 }
 0x20f   : >> { %7354 = vmatmul.mubr.msk.bf16.vlgmr.msra.gmra.mrb[0].mxu0 %vm342_vm0, %v9128_v19 }
 0x210   : >> { %7362 = vmatpush3.bf16.msra.mxu0 %v8318_v9  ;;  %7357 = vmatprep.mubr.msk.bf16.mxu0 %vm342_vm0, %v9131_v21 }
 0x211   : >> { %7371 = vmatprep.subr.bf16.mxu0 %v8319_v20 }
 0x217   : >> { %7358 = vmatmul.mubr.msk.bf16.gmra.mrb[4].mxu0 %vm342_vm0, %v1419_v26 }
 0x218   : >> { %7363 = vmatprep.mubr.msk.bf16.mxu0 %vm342_vm0, %v1606_v27 }
 0x21f   : >> { %7364 = vmatmul.mubr.msk.bf16.vlgmr.msra.gmra.mrb[0].mxu0 %vm342_vm0, %v9142_v32 }
 0x220   : >> { %7372 = vmatpush3.bf16.msra.mxu0 %v8319_v20  ;;  %7367 = vmatprep.mubr.msk.bf16.mxu0 %vm342_vm0, %v9144_v33 }
 0x221   : >> { %7381 = vmatprep.subr.bf16.mxu0 %v8320_v34 }
 0x227   : >> { %7368 = vmatmul.mubr.msk.bf16.gmra.mrb[4].mxu0 %vm342_vm0, %v1609_v37 }
 0x228   : >> { %7373 = vmatprep.mubr.msk.bf16.mxu0 %vm342_vm0, %v1709_v38 }
 0x22f   : >> { %7374 = vmatmul.mubr.msk.bf16.vlgmr.msra.gmra.mrb[0].mxu0 %vm342_vm0, %v1710_v39 }
 0x230   : >> { %7382 = vmatpush3.bf16.msra.mxu0 %v8320_v34  ;;  %7377 = vmatprep.mubr.msk.bf16.mxu0 %vm342_vm0, %v1711_v40  ;;  %v8328_v40 = vld [vmem:[%s9084_s14 + $0xa8] sm:$0xff]  }
 0x231   : >> { %7391 = vmatprep.subr.bf16.mxu0 %v8321_v41 }
 0x237   : >> { %7378 = vmatmul.mubr.msk.bf16.gmra.mrb[4].mxu0 %vm342_vm0, %v1712_v43 }
 0x238   : >> { %7383 = vmatprep.mubr.msk.bf16.mxu0 %vm342_vm0, %v1812_v44 }
 0x23f   : >> { %7384 = vmatmul.mubr.msk.bf16.vlgmr.msra.gmra.mrb[0].mxu0 %vm342_vm0, %v1813_v45 }
 0x240   : >> { %7392 = vmatpush3.bf16.msra.mxu0 %v8321_v41  ;;  %7387 = vmatprep.mubr.msk.bf16.mxu0 %vm342_vm0, %v1814_v46 }
 0x241   : >> { %7401 = vmatprep.subr.bf16.mxu0 %v8322_v47 }
 0x247   : >> { %7388 = vmatmul.mubr.msk.bf16.gmra.mrb[4].mxu0 %vm342_vm0, %v1815_v49 }
 0x248   : >> { %7393 = vmatprep.mubr.msk.bf16.mxu0 %vm342_vm0, %v1915_v50 }
 0x24f   : >> { %7394 = vmatmul.mubr.msk.bf16.vlgmr.msra.gmra.mrb[0].mxu0 %vm342_vm0, %v1916_v51 }
 0x250   : >> { %7402 = vmatpush3.bf16.msra.mxu0 %v8322_v47  ;;  %7397 = vmatprep.mubr.msk.bf16.mxu0 %vm342_vm0, %v1917_v52  ;;  %v8329_v52 = vld [vmem:[%s9084_s14 + $0xb0] sm:$0xff]  }
 0x251   : >> { %7411 = vmatprep.subr.bf16.mxu0 %v8323_v53 }
 0x257   : >> { %7398 = vmatmul.mubr.msk.bf16.gmra.mrb[4].mxu0 %vm342_vm0, %v1918_v55 }
 0x258   : >> { %7403 = vmatprep.mubr.msk.bf16.mxu0 %vm342_vm0, %v9128_v19 }
 0x25f   : >> { %7404 = vmatmul.mubr.msk.bf16.vlgmr.msra.gmra.mrb[0].mxu0 %vm342_vm0, %v9131_v21 }
 0x260   : >> { %7412 = vmatpush3.bf16.msra.mxu0 %v8323_v53  ;;  %7407 = vmatprep.mubr.msk.bf16.mxu0 %vm342_vm0, %v1419_v26  ;;  %v8327_v26 = vld [vmem:[%s9084_s14 + $0xa0] sm:$0xff]  }
 0x261   : >> { %7421 = vmatprep.subr.bf16.mxu0 %v8324_v56 }
 0x267   : >> { %7408 = vmatmul.mubr.msk.bf16.gmra.mrb[4].mxu0 %vm342_vm0, %v2021_v58 }
 0x268   : >> { %7413 = vmatprep.mubr.msk.bf16.mxu0 %vm342_vm0, %v9102_v7 }
 0x26f   : >> { %7414 = vmatmul.mubr.msk.bf16.vlgmr.msra.gmra.mrb[0].mxu0 %vm342_vm0, %v9106_v8 }
 0x270   : >> { %7422 = vmatpush3.bf16.msra.mxu0 %v8324_v56  ;;  %7417 = vmatprep.mubr.msk.bf16.mxu0 %vm342_vm0, %v9122_v14 }
 0x277   : >> { %7418 = vmatmul.mubr.msk.bf16.gmra.mrb[4].mxu0 %vm342_vm0, %v2124_v60 }
 0x278   : >> { %7423 = vmatprep.mubr.msk.bf16.mxu0 %vm342_vm0, %v9142_v32 }
 0x27f   : >> { %7424 = vmatmul.mubr.msk.bf16.vlgmr.msra.gmra.mrb[0].mxu0 %vm342_vm0, %v9144_v33 }
 0x280   : >> { %7427 = vmatprep.mubr.msk.bf16.mxu0 %vm342_vm0, %v1609_v37 }
 0x287   : >> { %7428 = vmatmul.mubr.msk.bf16.gmra.mrb[4].mxu0 %vm342_vm0, %v2227_v63  ;;  %v8330_v63 = vld [vmem:[%s9084_s14 + $0xb8] sm:$0xff]  }
 0x352   : >> { %v7425_v4 = vpop.f32.mrb[0].mxu0 }
 0x353   : >> { %v2329_v5 = vadd.f32 %v7425_v4, %v6702_v3  ;;  %v2280_v6 = vpop.f32.mrb[1].mxu0 }
 0x354   : >> { %v2327_v7 = vadd.f32 %v6702_v3, %v2280_v6  ;;  %v7426_v8 = vpop.f32.mrb[2].mxu0  ;;  %v8331_v6 = vld [vmem:[%s9084_s14 + $0xc0] sm:$0xff]  }
 0x355   : >> { %2337 = vst.msk [vmem:[#allocation2 + $0x31] sm:$0xff] %vm342_vm0, %v2329_v5  ;;  %v2330_v9 = vadd.f32 %v7426_v8, %v6702_v3  ;;  %v2283_v10 = vpop.f32.mrb[3].mxu0 }
 0x356   : >> { %2335 = vst.msk [vmem:[#allocation2 + $0x11] sm:$0xff] %vm342_vm0, %v2327_v7  ;;  %v2328_v11 = vadd.f32 %v6702_v3, %v2283_v10 }
 0x357   : >> { %2338 = vst.msk [vmem:[#allocation2 + $0x41] sm:$0xff] %vm342_vm0, %v2330_v9 }
 0x358   : >> { %2336 = vst.msk [vmem:[#allocation2 + $0x21] sm:$0xff] %vm342_vm0, %v2328_v11 }
 0x35a   : >> { %v7429_v13 = vpop.f32.mrb[4].mxu0 }
 0x35b   : >> { %v2333_v14 = vadd.f32 %v7429_v13, %v6702_v3  ;;  %v2296_v15 = vpop.f32.mrb[5].mxu0  ;;  %v8332_v13 = vld [vmem:[%s9084_s14 + $0xc8] sm:$0xff]  }
 0x35c   : >> { %v2331_v16 = vadd.f32 %v6702_v3, %v2296_v15  ;;  %v7430_v17 = vpop.f32.mrb[6].mxu0  ;;  %v9222_v23 = vld [vmem:[#allocation2 + $0x31] sm:$0xff] }
 0x35d   : >> { %2341 = vst.msk [vmem:[#allocation2 + $0x71] sm:$0xff] %vm342_vm0, %v2333_v14  ;;  %v2334_v18 = vadd.f32 %v7430_v17, %v6702_v3  ;;  %v2299_v2 = vpop.f32.mrb[7].mxu0  ;;  %v9214_v19 = vld [vmem:[#allocation2 + $0x11] sm:$0xff] }
 0x35e   : >> { %2339 = vst.msk [vmem:[#allocation2 + $0x51] sm:$0xff] %vm342_vm0, %v2331_v16  ;;  %v2332_v20 = vadd.f32 %v6702_v3, %v2299_v2  ;;  %v2385_v21 = vpack.c.bf16 %v9214_v19, %v9081_v61  ;;  %v2381_v27 = vld [vmem:[#allocation2 + $0x41] sm:$0xff]  ;;  %v2366_v30 = vld [vmem:[#allocation2 + $0x10] sm:$0xff] }
 0x35f   : >> { %2342 = vst.msk [vmem:[#allocation2 + $0x81] sm:$0xff] %vm342_vm0, %v2334_v18  ;;  %v9220_v22 = vld [vmem:[#allocation2 + $0x21] sm:$0xff]  ;;  %v2373_v34 = vpack.c.bf16 %v2366_v30, %v9118_v12  ;;  %v2368_v37 = vld [vmem:[#allocation2 + $0x30] sm:$0xff]  ;;  %v2770_v5 = vpack.c.bf16 %v2381_v27, %v9222_v23 }
 0x360   : >> { %2340 = vst.msk [vmem:[#allocation2 + $0x61] sm:$0xff] %vm342_vm0, %v2332_v20  ;;  %7433 = vmatprep.mubr.msk.bf16.mxu1 %vm342_vm0, %v2385_v21  ;;  %v9228_v25 = vpack.c.bf16 %v9222_v23, %v9220_v22  ;;  %v2367_v35 = vld [vmem:[#allocation2 + $0x20] sm:$0xff]  ;;  %v2556_v43 = vld [vmem:[#allocation2 + $0x12] sm:$0xff]  ;;  %v2769_v4 = vpack.c.bf16 %v9220_v22, %v9214_v19 }
 0x361   : >> { %v9246_v38 = vpack.c.bf16 %v2368_v37, %v2367_v35  ;;  %v2369_v39 = vld [vmem:[#allocation2 + $0x40] sm:$0xff]  ;;  %v2563_v46 = vpack.c.bf16 %v2556_v43, %v9135_v24  ;;  %v2558_v49 = vld [vmem:[#allocation2 + $0x32] sm:$0xff]  ;;  %v2666_v58 = vpack.c.bf16 %v2367_v35, %v2366_v30 }
 0x362   : >> { %7434 = vmatmul.mubr.msk.bf16.vlgmr.msra.gmra.mrb[0].mxu1 %vm342_vm0, %v9228_v25  ;;  %v2557_v47 = vld [vmem:[#allocation2 + $0x22] sm:$0xff]  ;;  %v2667_v60 = vpack.c.bf16 %v2369_v39, %v2368_v37  ;;  %v8333_v17 = vld [vmem:[%s9084_s14 + $0xd0] sm:$0xff]   ;;  %v8335_v21 = vld [vmem:[%s9084_s14 + $0xd8] sm:$0xff]  }
 0x363   : >> { %7442 = vmatpush3.bf16.msra.mxu1 %v8326_v1  ;;  %v2564_v50 = vpack.c.bf16 %v2558_v49, %v2557_v47  ;;  %v2559_v51 = vld [vmem:[#allocation2 + $0x42] sm:$0xff]  ;;  %v2872_v10 = vpack.c.bf16 %v2557_v47, %v2556_v43 }
 0x364   : >> { %7451 = vmatprep.subr.bf16.mxu1 %v8327_v26  ;;  %v9235_v32 = vld [vmem:[#allocation2 + $0x71] sm:$0xff]  ;;  %v2873_v11 = vpack.c.bf16 %v2559_v51, %v2558_v49  ;;  %v8334_v20 = vld [vmem:[%s9084_s14 + $0xe0] sm:$0xff]  }
 0x365   : >> { %v2382_v28 = vld [vmem:[#allocation2 + $0x51] sm:$0xff]  ;;  %7521 = vmatprep.subr.bf16.mxu0 %v8334_v20  ;;  %v6770_v22 = vld [vmem:[%s9206_s30 + $0x2] ss:$0 sm:$0xff] }
 0x366   : >> { %v9233_v29 = vpack.c.bf16 %v2382_v28, %v2381_v27  ;;  %v2370_v36 = vld [vmem:[#allocation2 + $0x50] sm:$0xff]  ;;  %v2665_v1 = vld [vmem:[#allocation2 + $0x80] sm:$0xff]  ;;  %7522 = vmatpush3.bf16.msra.mxu0 %v8334_v20 }
 0x367   : >> { %v2383_v31 = vld [vmem:[#allocation2 + $0x61] sm:$0xff]  ;;  %v9249_v41 = vpack.c.bf16 %v2370_v36, %v2369_v39  ;;  %v2372_v44 = vld [vmem:[#allocation2 + $0x70] sm:$0xff]  ;;  %v2978_v18 = vpack.c.bf16 %v9180_v57, %v2665_v1  ;;  %7531 = vmatprep.subr.bf16.mxu0 %v8335_v21 }
 0x368   : >> { %7437 = vmatprep.mubr.msk.bf16.mxu1 %vm342_vm0, %v9233_v29  ;;  %v9240_v33 = vpack.c.bf16 %v9235_v32, %v2383_v31  ;;  %v2371_v42 = vld [vmem:[#allocation2 + $0x60] sm:$0xff]  ;;  %v2560_v48 = vld [vmem:[#allocation2 + $0x52] sm:$0xff]  ;;  %v2669_v3 = vpack.c.bf16 %v2665_v1, %v2372_v44  ;;  %v2771_v7 = vpack.c.bf16 %v2383_v31, %v2382_v28 }
 0x369   : >> { %v2376_v45 = vpack.c.bf16 %v2372_v44, %v2371_v42  ;;  %v2565_v53 = vpack.c.bf16 %v2560_v48, %v2559_v51  ;;  %v2561_v54 = vld [vmem:[#allocation2 + $0x62] sm:$0xff]  ;;  %v2562_v55 = vld [vmem:[#allocation2 + $0x72] sm:$0xff]  ;;  %v2668_v0 = vpack.c.bf16 %v2371_v42, %v2370_v36 }
 0x36a   : >> { %7438 = vmatmul.mubr.msk.bf16.gmra.mrb[4].mxu1 %vm342_vm0, %v9240_v33  ;;  %v2566_v56 = vpack.c.bf16 %v2562_v55, %v2561_v54  ;;  %v2768_v8 = vld [vmem:[#allocation2 + $0x81] sm:$0xff]  ;;  %v2874_v14 = vpack.c.bf16 %v2561_v54, %v2560_v48 }
 0x36b   : >> { %7443 = vmatprep.mubr.msk.bf16.mxu1 %vm342_vm0, %v2373_v34  ;;  %v2772_v9 = vpack.c.bf16 %v2768_v8, %v9235_v32  ;;  %v2871_v15 = vld [vmem:[#allocation2 + $0x82] sm:$0xff]  ;;  %v3081_v2 = vpack.c.bf16 %v9190_v59, %v2768_v8 }
 0x36c   : >> { %v2875_v16 = vpack.c.bf16 %v2871_v15, %v2562_v55  ;;  %v3184_v19 = vpack.c.bf16 %v9199_v62, %v2871_v15 }
 0x372   : >> { %7444 = vmatmul.mubr.msk.bf16.vlgmr.msra.gmra.mrb[0].mxu1 %vm342_vm0, %v9246_v38 }
 0x373   : >> { %7447 = vmatprep.mubr.msk.bf16.mxu1 %vm342_vm0, %v9249_v41  ;;  %7452 = vmatpush3.bf16.msra.mxu1 %v8327_v26 }
 0x374   : >> { %7461 = vmatprep.subr.bf16.mxu1 %v8328_v40 }
 0x37a   : >> { %7448 = vmatmul.mubr.msk.bf16.gmra.mrb[4].mxu1 %vm342_vm0, %v2376_v45 }
 0x37b   : >> { %7453 = vmatprep.mubr.msk.bf16.mxu1 %vm342_vm0, %v2563_v46 }
 0x382   : >> { %7454 = vmatmul.mubr.msk.bf16.vlgmr.msra.gmra.mrb[0].mxu1 %vm342_vm0, %v2564_v50 }
 0x383   : >> { %7457 = vmatprep.mubr.msk.bf16.mxu1 %vm342_vm0, %v2565_v53  ;;  %7462 = vmatpush3.bf16.msra.mxu1 %v8328_v40 }
 0x384   : >> { %7471 = vmatprep.subr.bf16.mxu1 %v8329_v52 }
 0x38a   : >> { %7458 = vmatmul.mubr.msk.bf16.gmra.mrb[4].mxu1 %vm342_vm0, %v2566_v56 }
 0x38b   : >> { %7463 = vmatprep.mubr.msk.bf16.mxu1 %vm342_vm0, %v2666_v58 }
 0x392   : >> { %7464 = vmatmul.mubr.msk.bf16.vlgmr.msra.gmra.mrb[0].mxu1 %vm342_vm0, %v2667_v60 }
 0x393   : >> { %7467 = vmatprep.mubr.msk.bf16.mxu1 %vm342_vm0, %v2668_v0  ;;  %7472 = vmatpush3.bf16.msra.mxu1 %v8329_v52 }
 0x394   : >> { %7481 = vmatprep.subr.bf16.mxu1 %v8330_v63 }
 0x39a   : >> { %7468 = vmatmul.mubr.msk.bf16.gmra.mrb[4].mxu1 %vm342_vm0, %v2669_v3 }
 0x39b   : >> { %7473 = vmatprep.mubr.msk.bf16.mxu1 %vm342_vm0, %v2769_v4 }
 0x3a2   : >> { %7474 = vmatmul.mubr.msk.bf16.vlgmr.msra.gmra.mrb[0].mxu1 %vm342_vm0, %v2770_v5 }
 0x3a3   : >> { %7477 = vmatprep.mubr.msk.bf16.mxu1 %vm342_vm0, %v2771_v7  ;;  %7482 = vmatpush3.bf16.msra.mxu1 %v8330_v63  ;;  %v8337_v7 = vld [vmem:[%s9084_s14 + $0xf0] sm:$0xff]  }
 0x3a4   : >> { %7491 = vmatprep.subr.bf16.mxu1 %v8331_v6 }
 0x3aa   : >> { %7478 = vmatmul.mubr.msk.bf16.gmra.mrb[4].mxu1 %vm342_vm0, %v2772_v9 }
 0x3ab   : >> { %7483 = vmatprep.mubr.msk.bf16.mxu1 %vm342_vm0, %v2872_v10 }
 0x3b2   : >> { %7484 = vmatmul.mubr.msk.bf16.vlgmr.msra.gmra.mrb[0].mxu1 %vm342_vm0, %v2873_v11 }
 0x3b3   : >> { %7487 = vmatprep.mubr.msk.bf16.mxu1 %vm342_vm0, %v2874_v14  ;;  %7492 = vmatpush3.bf16.msra.mxu1 %v8331_v6 }
 0x3b4   : >> { %7501 = vmatprep.subr.bf16.mxu1 %v8332_v13 }
 0x3ba   : >> { %7488 = vmatmul.mubr.msk.bf16.gmra.mrb[4].mxu1 %vm342_vm0, %v2875_v16 }
 0x3bb   : >> { %7493 = vmatprep.mubr.msk.bf16.mxu1 %vm342_vm0, %v9246_v38 }
 0x3c2   : >> { %7494 = vmatmul.mubr.msk.bf16.vlgmr.msra.gmra.mrb[0].mxu1 %vm342_vm0, %v9249_v41 }
 0x3c3   : >> { %7497 = vmatprep.mubr.msk.bf16.mxu1 %vm342_vm0, %v2376_v45  ;;  %7502 = vmatpush3.bf16.msra.mxu1 %v8332_v13 }
 0x3c4   : >> { %7511 = vmatprep.subr.bf16.mxu1 %v8333_v17 }
 0x3ca   : >> { %7498 = vmatmul.mubr.msk.bf16.gmra.mrb[4].mxu1 %vm342_vm0, %v2978_v18 }
 0x3cb   : >> { %7503 = vmatprep.mubr.msk.bf16.mxu1 %vm342_vm0, %v9228_v25 }
 0x3d2   : >> { %7504 = vmatmul.mubr.msk.bf16.vlgmr.msra.gmra.mrb[0].mxu1 %vm342_vm0, %v9233_v29 }
 0x3d3   : >> { %7507 = vmatprep.mubr.msk.bf16.mxu1 %vm342_vm0, %v9240_v33  ;;  %7512 = vmatpush3.bf16.msra.mxu1 %v8333_v17 }
 0x3da   : >> { %7508 = vmatmul.mubr.msk.bf16.gmra.mrb[4].mxu1 %vm342_vm0, %v3081_v2  ;;  %v8338_v2 = vld [vmem:[%s9084_s14 + $0xf8] sm:$0xff]  }
 0x3db   : >> { %7513 = vmatprep.mubr.msk.bf16.mxu1 %vm342_vm0, %v2564_v50 }
 0x3e2   : >> { %7514 = vmatmul.mubr.msk.bf16.vlgmr.msra.gmra.mrb[0].mxu1 %vm342_vm0, %v2565_v53  ;;  %v8336_v53 = vld [vmem:[%s9084_s14 + $0xe8] sm:$0xff]  }
 0x3e3   : >> { %7517 = vmatprep.mubr.msk.bf16.mxu1 %vm342_vm0, %v2566_v56 }
 0x3ea   : >> { %7518 = vmatmul.mubr.msk.bf16.gmra.mrb[4].mxu1 %vm342_vm0, %v3184_v19 }
 0x4b5   : >> { %v7515_v23 = vpop.f32.mrb[0].mxu1 }
 0x4b6   : >> { %v3286_v25 = vadd.f32 %v7515_v23, %v6770_v22  ;;  %v3237_v26 = vpop.f32.mrb[1].mxu1 }
 0x4b7   : >> { %v3284_v27 = vadd.f32 %v6770_v22, %v3237_v26  ;;  %v7516_v28 = vpop.f32.mrb[2].mxu1 }
 0x4b8   : >> { %v3294_v29 = vmax.f32 %v3286_v25, 0.0  ;;  %v3287_v30 = vadd.f32 %v7516_v28, %v6770_v22  ;;  %v3240_v31 = vpop.f32.mrb[3].mxu1  ;;  %v8339_v25 = vld [vmem:[%s9084_s14 + $0x100] sm:$0xff]  }
 0x4b9   : >> { %v3292_v32 = vmax.f32 %v3284_v27, 0.0  ;;  %v3285_v33 = vadd.f32 %v6770_v22, %v3240_v31  ;;  %v8340_v31 = vld [vmem:[%s9084_s14 + $0x108] sm:$0xff]  }
 0x4ba   : >> { %3302 = vst.msk [vmem:[#allocation2 + $0x31] sm:$0xff] %vm342_vm0, %v3294_v29  ;;  %v3295_v34 = vmax.f32 %v3287_v30, 0.0 }
 0x4bb   : >> { %3300 = vst.msk [vmem:[#allocation2 + $0x11] sm:$0xff] %vm342_vm0, %v3292_v32  ;;  %v3293_v35 = vmax.f32 %v3285_v33, 0.0 }
 0x4bc   : >> { %3303 = vst.msk [vmem:[#allocation2 + $0x41] sm:$0xff] %vm342_vm0, %v3295_v34 }
 0x4bd   : >> { %3301 = vst.msk [vmem:[#allocation2 + $0x21] sm:$0xff] %vm342_vm0, %v3293_v35  ;;  %v7519_v36 = vpop.f32.mrb[4].mxu1 }
 0x4be   : >> { %v3290_v37 = vadd.f32 %v7519_v36, %v6770_v22  ;;  %v3253_v38 = vpop.f32.mrb[5].mxu1 }
 0x4bf   : >> { %v3288_v39 = vadd.f32 %v6770_v22, %v3253_v38  ;;  %v7520_v40 = vpop.f32.mrb[6].mxu1 }
 0x4c0   : >> { %v3298_v41 = vmax.f32 %v3290_v37, 0.0  ;;  %v3291_v42 = vadd.f32 %v7520_v40, %v6770_v22  ;;  %v3256_v43 = vpop.f32.mrb[7].mxu1  ;;  %v8341_v37 = vld [vmem:[%s9084_s14 + $0x110] sm:$0xff]  }
 0x4c1   : >> { %v3296_v44 = vmax.f32 %v3288_v39, 0.0  ;;  %v3289_v45 = vadd.f32 %v6770_v22, %v3256_v43  ;;  %v9318_v51 = vld [vmem:[#allocation2 + $0x31] sm:$0xff] }
 0x4c2   : >> { %3306 = vst.msk [vmem:[#allocation2 + $0x71] sm:$0xff] %vm342_vm0, %v3298_v41  ;;  %v3299_v46 = vmax.f32 %v3291_v42, 0.0  ;;  %v9310_v47 = vld [vmem:[#allocation2 + $0x11] sm:$0xff] }
 0x4c3   : >> { %3304 = vst.msk [vmem:[#allocation2 + $0x51] sm:$0xff] %vm342_vm0, %v3296_v44  ;;  %v3297_v48 = vmax.f32 %v3289_v45, 0.0  ;;  %v3350_v49 = vpack.c.bf16 %v9310_v47, %v9081_v61  ;;  %v3346_v61 = vld [vmem:[#allocation2 + $0x41] sm:$0xff]  ;;  %v3331_v56 = vld [vmem:[#allocation2 + $0x10] sm:$0xff]  ;;  %v8342_v41 = vld [vmem:[%s9084_s14 + $0x118] sm:$0xff]  }
 0x4c4   : >> { %3307 = vst.msk [vmem:[#allocation2 + $0x81] sm:$0xff] %vm342_vm0, %v3299_v46  ;;  %v9316_v50 = vld [vmem:[#allocation2 + $0x21] sm:$0xff]  ;;  %v3338_v0 = vpack.c.bf16 %v3331_v56, %v9118_v12  ;;  %v3333_v4 = vld [vmem:[#allocation2 + $0x30] sm:$0xff]  ;;  %v3735_v30 = vpack.c.bf16 %v3346_v61, %v9318_v51 }
 0x4c5   : >> { %3305 = vst.msk [vmem:[#allocation2 + $0x61] sm:$0xff] %vm342_vm0, %v3297_v48  ;;  %7523 = vmatprep.mubr.msk.bf16.mxu0 %vm342_vm0, %v3350_v49  ;;  %v9324_v52 = vpack.c.bf16 %v9318_v51, %v9316_v50  ;;  %v3332_v1 = vld [vmem:[#allocation2 + $0x20] sm:$0xff]  ;;  %v3521_v9 = vld [vmem:[#allocation2 + $0x12] sm:$0xff]  ;;  %v3734_v29 = vpack.c.bf16 %v9316_v50, %v9310_v47  ;;  %v8343_v44 = vld [vmem:[%s9084_s14 + $0x128] sm:$0xff]  }
 0x4c6   : >> { %v9342_v5 = vpack.c.bf16 %v3333_v4, %v3332_v1  ;;  %v3334_v6 = vld [vmem:[#allocation2 + $0x40] sm:$0xff]  ;;  %v3528_v13 = vpack.c.bf16 %v3521_v9, %v9135_v24  ;;  %v3523_v16 = vld [vmem:[#allocation2 + $0x32] sm:$0xff]  ;;  %v3631_v22 = vpack.c.bf16 %v3332_v1, %v3331_v56  ;;  %7611 = vmatprep.subr.bf16.mxu1 %v8343_v44 }
 0x4c7   : >> { %7524 = vmatmul.mubr.msk.bf16.vlgmr.msra.gmra.mrb[8].mxu0 %vm342_vm0, %v9324_v52  ;;  %v3522_v14 = vld [vmem:[#allocation2 + $0x22] sm:$0xff]  ;;  %v3632_v23 = vpack.c.bf16 %v3334_v6, %v3333_v4  ;;  %7612 = vmatpush3.bf16.msra.mxu1 %v8343_v44 }
 0x4c8   : >> { %7532 = vmatpush3.bf16.msra.mxu0 %v8335_v21  ;;  %v3529_v17 = vpack.c.bf16 %v3523_v16, %v3522_v14  ;;  %v3524_v18 = vld [vmem:[#allocation2 + $0x42] sm:$0xff]  ;;  %v3837_v35 = vpack.c.bf16 %v3522_v14, %v3521_v9 }
 0x4c9   : >> { %7541 = vmatprep.subr.bf16.mxu0 %v8336_v53  ;;  %v9331_v60 = vld [vmem:[#allocation2 + $0x71] sm:$0xff]  ;;  %v3838_v36 = vpack.c.bf16 %v3524_v18, %v3523_v16  ;;  %v8344_v45 = vld [vmem:[%s9084_s14 + $0x120] sm:$0xff]  }
 0x4ca   : >> { %v3347_v54 = vld [vmem:[#allocation2 + $0x51] sm:$0xff]  ;;  %7621 = vmatprep.subr.bf16.mxu1 %v8344_v45  ;;  %v6838_v46 = vld [vmem:[%s9206_s30 + $0x3] ss:$0 sm:$0xff] }
 0x4cb   : >> { %v9329_v55 = vpack.c.bf16 %v3347_v54, %v3346_v61  ;;  %v3335_v3 = vld [vmem:[#allocation2 + $0x50] sm:$0xff]  ;;  %v3630_v27 = vld [vmem:[#allocation2 + $0x80] sm:$0xff] }
 0x4cc   : >> { %v3348_v58 = vld [vmem:[#allocation2 + $0x61] sm:$0xff]  ;;  %v9345_v8 = vpack.c.bf16 %v3335_v3, %v3334_v6  ;;  %v3337_v10 = vld [vmem:[#allocation2 + $0x70] sm:$0xff]  ;;  %v3943_v42 = vpack.c.bf16 %v9180_v57, %v3630_v27 }
 0x4cd   : >> { %7527 = vmatprep.mubr.msk.bf16.mxu0 %vm342_vm0, %v9329_v55  ;;  %v9336_v63 = vpack.c.bf16 %v9331_v60, %v3348_v58  ;;  %v3336_v12 = vld [vmem:[#allocation2 + $0x60] sm:$0xff]  ;;  %v3525_v15 = vld [vmem:[#allocation2 + $0x52] sm:$0xff]  ;;  %v3634_v28 = vpack.c.bf16 %v3630_v27, %v3337_v10  ;;  %v3736_v32 = vpack.c.bf16 %v3348_v58, %v3347_v54 }
 0x4ce   : >> { %v3341_v11 = vpack.c.bf16 %v3337_v10, %v3336_v12  ;;  %v3530_v19 = vpack.c.bf16 %v3525_v15, %v3524_v18  ;;  %v3526_v20 = vld [vmem:[#allocation2 + $0x62] sm:$0xff]  ;;  %v3527_v24 = vld [vmem:[#allocation2 + $0x72] sm:$0xff]  ;;  %v3633_v26 = vpack.c.bf16 %v3336_v12, %v3335_v3 }
 0x4cf   : >> { %7528 = vmatmul.mubr.msk.bf16.gmra.mrb[12].mxu0 %vm342_vm0, %v9336_v63  ;;  %v3531_v21 = vpack.c.bf16 %v3527_v24, %v3526_v20  ;;  %v3733_v33 = vld [vmem:[#allocation2 + $0x81] sm:$0xff]  ;;  %v3839_v38 = vpack.c.bf16 %v3526_v20, %v3525_v15 }
 0x4d0   : >> { %7533 = vmatprep.mubr.msk.bf16.mxu0 %vm342_vm0, %v3338_v0  ;;  %v3737_v34 = vpack.c.bf16 %v3733_v33, %v9331_v60  ;;  %v3836_v39 = vld [vmem:[#allocation2 + $0x82] sm:$0xff]  ;;  %v4046_v43 = vpack.c.bf16 %v9190_v59, %v3733_v33 }
 0x4d1   : >> { %v3840_v40 = vpack.c.bf16 %v3836_v39, %v3527_v24  ;;  %v4149_v57 = vpack.c.bf16 %v9199_v62, %v3836_v39  ;;  %v4287_v10 = vld [vmem:[#allocation2] sm:$0xff]  ;;  %v8346_v24 = vld [vmem:[%s9084_s14 + $0x138] sm:$0xff]  }
 0x4d7   : >> { %7534 = vmatmul.mubr.msk.bf16.vlgmr.msra.gmra.mrb[8].mxu0 %vm342_vm0, %v9342_v5 }
 0x4d8   : >> { %7537 = vmatprep.mubr.msk.bf16.mxu0 %vm342_vm0, %v9345_v8  ;;  %7542 = vmatpush3.bf16.msra.mxu0 %v8336_v53 }
 0x4d9   : >> { %7551 = vmatprep.subr.bf16.mxu0 %v8337_v7 }
 0x4df   : >> { %7538 = vmatmul.mubr.msk.bf16.gmra.mrb[12].mxu0 %vm342_vm0, %v3341_v11 }
 0x4e0   : >> { %7543 = vmatprep.mubr.msk.bf16.mxu0 %vm342_vm0, %v3528_v13 }
 0x4e7   : >> { %7544 = vmatmul.mubr.msk.bf16.vlgmr.msra.gmra.mrb[8].mxu0 %vm342_vm0, %v3529_v17 }
 0x4e8   : >> { %7547 = vmatprep.mubr.msk.bf16.mxu0 %vm342_vm0, %v3530_v19  ;;  %7552 = vmatpush3.bf16.msra.mxu0 %v8337_v7  ;;  %v8345_v7 = vld [vmem:[%s9084_s14 + $0x130] sm:$0xff]  }
 0x4e9   : >> { %7561 = vmatprep.subr.bf16.mxu0 %v8338_v2 }
 0x4ef   : >> { %7548 = vmatmul.mubr.msk.bf16.gmra.mrb[12].mxu0 %vm342_vm0, %v3531_v21 }
 0x4f0   : >> { %7553 = vmatprep.mubr.msk.bf16.mxu0 %vm342_vm0, %v3631_v22 }
 0x4f7   : >> { %7554 = vmatmul.mubr.msk.bf16.vlgmr.msra.gmra.mrb[8].mxu0 %vm342_vm0, %v3632_v23  ;;  %v4477_v23 = vld [vmem:[#allocation2 + $0x2] sm:$0xff] }
 0x4f8   : >> { %7557 = vmatprep.mubr.msk.bf16.mxu0 %vm342_vm0, %v3633_v26  ;;  %7562 = vmatpush3.bf16.msra.mxu0 %v8338_v2 }
 0x4f9   : >> { %7571 = vmatprep.subr.bf16.mxu0 %v8339_v25 }
 0x4ff   : >> { %7558 = vmatmul.mubr.msk.bf16.gmra.mrb[12].mxu0 %vm342_vm0, %v3634_v28 }
 0x500   : >> { %7563 = vmatprep.mubr.msk.bf16.mxu0 %vm342_vm0, %v3734_v29 }
 0x507   : >> { %7564 = vmatmul.mubr.msk.bf16.vlgmr.msra.gmra.mrb[8].mxu0 %vm342_vm0, %v3735_v30 }
 0x508   : >> { %7567 = vmatprep.mubr.msk.bf16.mxu0 %vm342_vm0, %v3736_v32  ;;  %7572 = vmatpush3.bf16.msra.mxu0 %v8339_v25 }
 0x509   : >> { %7581 = vmatprep.subr.bf16.mxu0 %v8340_v31 }
 0x50f   : >> { %7568 = vmatmul.mubr.msk.bf16.gmra.mrb[12].mxu0 %vm342_vm0, %v3737_v34  ;;  %v8347_v34 = vld [vmem:[%s9084_s14 + $0x140] sm:$0xff]  }
 0x510   : >> { %7573 = vmatprep.mubr.msk.bf16.mxu0 %vm342_vm0, %v3837_v35 }
 0x517   : >> { %7574 = vmatmul.mubr.msk.bf16.vlgmr.msra.gmra.mrb[8].mxu0 %vm342_vm0, %v3838_v36 }
 0x518   : >> { %7577 = vmatprep.mubr.msk.bf16.mxu0 %vm342_vm0, %v3839_v38  ;;  %7582 = vmatpush3.bf16.msra.mxu0 %v8340_v31 }
 0x519   : >> { %7591 = vmatprep.subr.bf16.mxu0 %v8341_v37 }
 0x51f   : >> { %7578 = vmatmul.mubr.msk.bf16.gmra.mrb[12].mxu0 %vm342_vm0, %v3840_v40 }
 0x520   : >> { %7583 = vmatprep.mubr.msk.bf16.mxu0 %vm342_vm0, %v9342_v5 }
 0x527   : >> { %7584 = vmatmul.mubr.msk.bf16.vlgmr.msra.gmra.mrb[8].mxu0 %vm342_vm0, %v9345_v8 }
 0x528   : >> { %7587 = vmatprep.mubr.msk.bf16.mxu0 %vm342_vm0, %v3341_v11  ;;  %7592 = vmatpush3.bf16.msra.mxu0 %v8341_v37 }
 0x529   : >> { %7601 = vmatprep.subr.bf16.mxu0 %v8342_v41 }
 0x52f   : >> { %7588 = vmatmul.mubr.msk.bf16.gmra.mrb[12].mxu0 %vm342_vm0, %v3943_v42 }
 0x530   : >> { %7593 = vmatprep.mubr.msk.bf16.mxu0 %vm342_vm0, %v9324_v52 }
 0x537   : >> { %7594 = vmatmul.mubr.msk.bf16.vlgmr.msra.gmra.mrb[8].mxu0 %vm342_vm0, %v9329_v55  ;;  %v4299_v55 = vld [vmem:[#allocation2 + $0x1] sm:$0xff] }
 0x538   : >> { %7597 = vmatprep.mubr.msk.bf16.mxu0 %vm342_vm0, %v9336_v63  ;;  %7602 = vmatpush3.bf16.msra.mxu0 %v8342_v41  ;;  %v8348_v41 = vld [vmem:[%s9084_s14 + $0x148] sm:$0xff]  }
 0x53f   : >> { %7598 = vmatmul.mubr.msk.bf16.gmra.mrb[12].mxu0 %vm342_vm0, %v4046_v43 }
 0x540   : >> { %7603 = vmatprep.mubr.msk.bf16.mxu0 %vm342_vm0, %v3529_v17 }
 0x547   : >> { %7604 = vmatmul.mubr.msk.bf16.vlgmr.msra.gmra.mrb[8].mxu0 %vm342_vm0, %v3530_v19 }
 0x548   : >> { %7607 = vmatprep.mubr.msk.bf16.mxu0 %vm342_vm0, %v3531_v21 }
 0x54f   : >> { %7608 = vmatmul.mubr.msk.bf16.gmra.mrb[12].mxu0 %vm342_vm0, %v4149_v57 }
 0x61a   : >> { %v7605_v47 = vpop.f32.mrb[8].mxu0 }
 0x61b   : >> { %v4251_v59 = vadd.f32 %v7605_v47, %v6838_v46  ;;  %v4202_v48 = vpop.f32.mrb[9].mxu0 }
 0x61c   : >> { %v4249_v49 = vadd.f32 %v6838_v46, %v4202_v48  ;;  %v7606_v50 = vpop.f32.mrb[10].mxu0 }
 0x61d   : >> { %4259 = vst.msk [vmem:[#allocation2 + $0x31] sm:$0xff] %vm342_vm0, %v4251_v59  ;;  %v4252_v51 = vadd.f32 %v7606_v50, %v6838_v46  ;;  %v4205_v52 = vpop.f32.mrb[11].mxu0 }
 0x61e   : >> { %4257 = vst.msk [vmem:[#allocation2 + $0x11] sm:$0xff] %vm342_vm0, %v4249_v49  ;;  %v4250_v62 = vadd.f32 %v6838_v46, %v4205_v52 }
 0x61f   : >> { %4260 = vst.msk [vmem:[#allocation2 + $0x41] sm:$0xff] %vm342_vm0, %v4252_v51  ;;  %v8350_v51 = vld [vmem:[%s9084_s14 + $0x158] sm:$0xff]  }
 0x620   : >> { %4258 = vst.msk [vmem:[#allocation2 + $0x21] sm:$0xff] %vm342_vm0, %v4250_v62 }
 0x622   : >> { %v7609_v53 = vpop.f32.mrb[12].mxu0 }
 0x623   : >> { %v4255_v61 = vadd.f32 %v7609_v53, %v6838_v46  ;;  %v4218_v54 = vpop.f32.mrb[13].mxu0 }
 0x624   : >> { %v4253_v56 = vadd.f32 %v6838_v46, %v4218_v54  ;;  %v7610_v58 = vpop.f32.mrb[14].mxu0  ;;  %v9413_v5 = vld [vmem:[#allocation2 + $0x31] sm:$0xff] }
 0x625   : >> { %4263 = vst.msk [vmem:[#allocation2 + $0x71] sm:$0xff] %vm342_vm0, %v4255_v61  ;;  %v4256_v60 = vadd.f32 %v7610_v58, %v6838_v46  ;;  %v4221_v63 = vpop.f32.mrb[15].mxu0  ;;  %v9406_v0 = vld [vmem:[#allocation2 + $0x11] sm:$0xff]  ;;  %v8351_v61 = vld [vmem:[%s9084_s14 + $0x160] sm:$0xff]  }
 0x626   : >> { %4261 = vst.msk [vmem:[#allocation2 + $0x51] sm:$0xff] %vm342_vm0, %v4253_v56  ;;  %v4254_v1 = vadd.f32 %v6838_v46, %v4221_v63  ;;  %v4307_v3 = vpack.c.bf16 %v9406_v0, %v4299_v55  ;;  %v9424_v8 = vld [vmem:[#allocation2 + $0x41] sm:$0xff]  ;;  %v4288_v11 = vld [vmem:[#allocation2 + $0x10] sm:$0xff] }
 0x627   : >> { %4264 = vst.msk [vmem:[#allocation2 + $0x81] sm:$0xff] %vm342_vm0, %v4256_v60  ;;  %v9411_v4 = vld [vmem:[#allocation2 + $0x21] sm:$0xff]  ;;  %v4295_v16 = vpack.c.bf16 %v4288_v11, %v4287_v10  ;;  %v4290_v2 = vld [vmem:[#allocation2 + $0x30] sm:$0xff] }
 0x628   : >> { %4262 = vst.msk [vmem:[#allocation2 + $0x61] sm:$0xff] %vm342_vm0, %v4254_v1  ;;  %7613 = vmatprep.mubr.msk.bf16.mxu1 %vm342_vm0, %v4307_v3  ;;  %v9419_v6 = vpack.c.bf16 %v9413_v5, %v9411_v4  ;;  %v4289_v17 = vld [vmem:[#allocation2 + $0x20] sm:$0xff]  ;;  %v4478_v25 = vld [vmem:[#allocation2 + $0x12] sm:$0xff]  ;;  %v4691_v44 = vpack.c.bf16 %v9411_v4, %v9406_v0  ;;  %v8638_v0 = vmov 0.0   ;;  %v8353_v3 = vld [vmem:[%s5249_s13 + $0x8] sm:$0xff]  }
 0x629   : >> { %v9442_v19 = vpack.c.bf16 %v4290_v2, %v4289_v17  ;;  %v4291_v20 = vld [vmem:[#allocation2 + $0x40] sm:$0xff]  ;;  %v4485_v28 = vpack.c.bf16 %v4478_v25, %v4477_v23  ;;  %v4480_v31 = vld [vmem:[#allocation2 + $0x32] sm:$0xff]  ;;  %v4588_v39 = vpack.c.bf16 %v4289_v17, %v4288_v11  ;;  %7701 = vmatprep.subr.bf16.mxu0 %v8638_v0  ;;  %7703 = vmatprep.mubr.msk.bf16.mxu0 %vm8639_vm3, %v8638_v0 }
 0x62a   : >> { %7614 = vmatmul.mubr.msk.bf16.vlgmr.msra.gmra.mrb[8].mxu1 %vm342_vm0, %v9419_v6  ;;  %v4479_v29 = vld [vmem:[#allocation2 + $0x22] sm:$0xff]  ;;  %v4589_v40 = vpack.c.bf16 %v4291_v20, %v4290_v2  ;;  %v8349_v46 = vld [vmem:[%s9084_s14 + $0x150] sm:$0xff]   ;;  %s8640_s14 = smov (%p1365_p7), [#allocation16]  }
 0x62b   : >> { %7622 = vmatpush3.bf16.msra.mxu1 %v8344_v45  ;;  %v9453_v32 = vpack.c.bf16 %v4480_v31, %v4479_v29  ;;  %v4481_v33 = vld [vmem:[#allocation2 + $0x42] sm:$0xff]  ;;  %v4692_v45 = vpack.c.bf16 %v9424_v8, %v9413_v5  ;;  %v4794_v49 = vpack.c.bf16 %v4479_v29, %v4478_v25  ;;  %v4896_v54 = vld [vmem:[#allocation2 + $0x90] sm:$0xff]  ;;  %s8541_s20 = sshll.u32 (%p1365_p7), %s8640_s14, 4  ;;  %s8542_s20 = int_to_ptr.vmem [resolvable:$false] %s8541_s20 }
 0x62c   : >> { %7631 = vmatprep.subr.bf16.mxu1 %v8345_v7  ;;  %v9432_v14 = vld [vmem:[#allocation2 + $0x71] sm:$0xff]  ;;  %v4795_v50 = vpack.c.bf16 %v4481_v33, %v4480_v31  ;;  %v8352_v1 = vld [vmem:[%s5249_s13] sm:$0xff]   ;;  %p8544_p3 = scmp.lt.s32.totalorder (%p1365_p7), %s9663_s8, %s8542_s20 }
 0x62d   : >> { %v9426_v12 = vld [vmem:[#allocation2 + $0x51] sm:$0xff]  ;;  %7702 = vmatpush3.bf16.msra.mxu0 %v8352_v1  ;;  %v6906_v4 = vld [vmem:[%s9206_s30 + $0x4] ss:$0 sm:$0xff]  ;;  %s8543_s30 = scalar_lea.vmem (%p1365_p7), %s8542_s20, 2048 }
 0x62e   : >> { %v9430_v9 = vpack.c.bf16 %v9426_v12, %v9424_v8  ;;  %v4292_v18 = vld [vmem:[#allocation2 + $0x50] sm:$0xff]  ;;  %v4587_v43 = vld [vmem:[#allocation2 + $0x80] sm:$0xff]  ;;  %p8545_p2 = scmp.lt.s32.totalorder (%p1365_p7), %s8543_s30, %s8537_s12 }
 0x62f   : >> { %v4305_v13 = vld [vmem:[#allocation2 + $0x61] sm:$0xff]  ;;  %v9445_v21 = vpack.c.bf16 %v4292_v18, %v4291_v20  ;;  %v4294_v26 = vld [vmem:[#allocation2 + $0x70] sm:$0xff]  ;;  %v4900_v55 = vpack.c.bf16 %v4896_v54, %v4587_v43 }
 0x630   : >> { %7617 = vmatprep.mubr.msk.bf16.mxu1 %vm342_vm0, %v9430_v9  ;;  %v9437_v15 = vpack.c.bf16 %v9432_v14, %v4305_v13  ;;  %v4293_v22 = vld [vmem:[#allocation2 + $0x60] sm:$0xff]  ;;  %v4482_v30 = vld [vmem:[#allocation2 + $0x52] sm:$0xff]  ;;  %v4591_v57 = vpack.c.bf16 %v4587_v43, %v4294_v26  ;;  %v4693_v47 = vpack.c.bf16 %v4305_v13, %v9426_v12  ;;  %p8546_p8 = por (%p1365_p7), %p8545_p2, %p8544_p3 }
 0x631   : >> { %v4298_v27 = vpack.c.bf16 %v4294_v26, %v4293_v22  ;;  %v4487_v35 = vpack.c.bf16 %v4482_v30, %v4481_v33  ;;  %v4483_v36 = vld [vmem:[#allocation2 + $0x62] sm:$0xff]  ;;  %v4484_v37 = vld [vmem:[#allocation2 + $0x72] sm:$0xff]  ;;  %v4590_v42 = vpack.c.bf16 %v4293_v22, %v4292_v18 }
 0x632   : >> { %7618 = vmatmul.mubr.msk.bf16.gmra.mrb[12].mxu1 %vm342_vm0, %v9437_v15  ;;  %v4488_v38 = vpack.c.bf16 %v4484_v37, %v4483_v36  ;;  %v4690_v59 = vld [vmem:[#allocation2 + $0x81] sm:$0xff]  ;;  %v4796_v52 = vpack.c.bf16 %v4483_v36, %v4482_v30  ;;  %v4999_v56 = vld [vmem:[#allocation2 + $0x91] sm:$0xff]  ;;  %p8547_p6 = pnand (%p1365_p7), %p8546_p8, %p8540_p1 }
 0x633   : >> { %7623 = vmatprep.mubr.msk.bf16.mxu1 %vm342_vm0, %v4295_v16  ;;  %v4694_v48 = vpack.c.bf16 %v4690_v59, %v9432_v14  ;;  %v4793_v62 = vld [vmem:[#allocation2 + $0x82] sm:$0xff]  ;;  %v5003_v58 = vpack.c.bf16 %v4999_v56, %v4690_v59  ;;  %v5102_v60 = vld [vmem:[#allocation2 + $0x92] sm:$0xff] }
 0x634   : >> { %v4797_v53 = vpack.c.bf16 %v4793_v62, %v4484_v37  ;;  %v5106_v63 = vpack.c.bf16 %v5102_v60, %v4793_v62 }
 0x63a   : >> { %7624 = vmatmul.mubr.msk.bf16.vlgmr.msra.gmra.mrb[8].mxu1 %vm342_vm0, %v9442_v19 }
 0x63b   : >> { %7627 = vmatprep.mubr.msk.bf16.mxu1 %vm342_vm0, %v9445_v21  ;;  %7632 = vmatpush3.bf16.msra.mxu1 %v8345_v7 }
 0x63c   : >> { %7641 = vmatprep.subr.bf16.mxu1 %v8346_v24 }
 0x642   : >> { %7628 = vmatmul.mubr.msk.bf16.gmra.mrb[12].mxu1 %vm342_vm0, %v4298_v27 }
 0x643   : >> { %7633 = vmatprep.mubr.msk.bf16.mxu1 %vm342_vm0, %v4485_v28 }
 0x64a   : >> { %7634 = vmatmul.mubr.msk.bf16.vlgmr.msra.gmra.mrb[8].mxu1 %vm342_vm0, %v9453_v32 }
 0x64b   : >> { %7637 = vmatprep.mubr.msk.bf16.mxu1 %vm342_vm0, %v4487_v35  ;;  %7642 = vmatpush3.bf16.msra.mxu1 %v8346_v24 }
 0x64c   : >> { %7651 = vmatprep.subr.bf16.mxu1 %v8347_v34 }
 0x652   : >> { %7638 = vmatmul.mubr.msk.bf16.gmra.mrb[12].mxu1 %vm342_vm0, %v4488_v38 }
 0x653   : >> { %7643 = vmatprep.mubr.msk.bf16.mxu1 %vm342_vm0, %v4588_v39 }
 0x65a   : >> { %7644 = vmatmul.mubr.msk.bf16.vlgmr.msra.gmra.mrb[8].mxu1 %vm342_vm0, %v4589_v40 }
 0x65b   : >> { %7647 = vmatprep.mubr.msk.bf16.mxu1 %vm342_vm0, %v4590_v42  ;;  %7652 = vmatpush3.bf16.msra.mxu1 %v8347_v34 }
 0x65c   : >> { %7661 = vmatprep.subr.bf16.mxu1 %v8348_v41 }
 0x662   : >> { %7648 = vmatmul.mubr.msk.bf16.gmra.mrb[12].mxu1 %vm342_vm0, %v4591_v57 }
 0x663   : >> { %7653 = vmatprep.mubr.msk.bf16.mxu1 %vm342_vm0, %v4691_v44 }
 0x66a   : >> { %7654 = vmatmul.mubr.msk.bf16.vlgmr.msra.gmra.mrb[8].mxu1 %vm342_vm0, %v4692_v45 }
 0x66b   : >> { %7657 = vmatprep.mubr.msk.bf16.mxu1 %vm342_vm0, %v4693_v47  ;;  %7662 = vmatpush3.bf16.msra.mxu1 %v8348_v41 }
 0x66c   : >> { %7671 = vmatprep.subr.bf16.mxu1 %v8349_v46 }
 0x672   : >> { %7658 = vmatmul.mubr.msk.bf16.gmra.mrb[12].mxu1 %vm342_vm0, %v4694_v48 }
 0x673   : >> { %7663 = vmatprep.mubr.msk.bf16.mxu1 %vm342_vm0, %v4794_v49  ;;  %v5253_v49 = vld [vmem:[%s5252_s7] sm:$0x1] }
 0x67a   : >> { %7664 = vmatmul.mubr.msk.bf16.vlgmr.msra.gmra.mrb[8].mxu1 %vm342_vm0, %v4795_v50 }
 0x67b   : >> { %7667 = vmatprep.mubr.msk.bf16.mxu1 %vm342_vm0, %v4796_v52  ;;  %7672 = vmatpush3.bf16.msra.mxu1 %v8349_v46 }
 0x67c   : >> { %7681 = vmatprep.subr.bf16.mxu1 %v8350_v51 }
 0x682   : >> { %7668 = vmatmul.mubr.msk.bf16.gmra.mrb[12].mxu1 %vm342_vm0, %v4797_v53 }
 0x683   : >> { %7673 = vmatprep.mubr.msk.bf16.mxu1 %vm342_vm0, %v9442_v19 }
 0x68a   : >> { %7674 = vmatmul.mubr.msk.bf16.vlgmr.msra.gmra.mrb[8].mxu1 %vm342_vm0, %v9445_v21 }
 0x68b   : >> { %7677 = vmatprep.mubr.msk.bf16.mxu1 %vm342_vm0, %v4298_v27  ;;  %7682 = vmatpush3.bf16.msra.mxu1 %v8350_v51 }
 0x68c   : >> { %7691 = vmatprep.subr.bf16.mxu1 %v8351_v61 }
 0x692   : >> { %7678 = vmatmul.mubr.msk.bf16.gmra.mrb[12].mxu1 %vm342_vm0, %v4900_v55  ;;  %v6917_v55 = vld [vmem:[%s5252_s7 + $0x1] sm:$0x1] }
 0x693   : >> { %7683 = vmatprep.mubr.msk.bf16.mxu1 %vm342_vm0, %v9419_v6 }
 0x69a   : >> { %7684 = vmatmul.mubr.msk.bf16.vlgmr.msra.gmra.mrb[8].mxu1 %vm342_vm0, %v9430_v9 }
 0x69b   : >> { %7687 = vmatprep.mubr.msk.bf16.mxu1 %vm342_vm0, %v9437_v15  ;;  %7692 = vmatpush3.bf16.msra.mxu1 %v8351_v61 }
 0x69c   : >> { %7707 = vmatprep.subr.bf16.mxu1 %v8638_v0 }
 0x6a2   : >> { %7688 = vmatmul.mubr.msk.bf16.gmra.mrb[12].mxu1 %vm342_vm0, %v5003_v58 }
 0x6a3   : >> { %7693 = vmatprep.mubr.msk.bf16.mxu1 %vm342_vm0, %v9453_v32 }
 0x6aa   : >> { %7694 = vmatmul.mubr.msk.bf16.vlgmr.msra.gmra.mrb[8].mxu1 %vm342_vm0, %v4487_v35 }
 0x6ab   : >> { %7697 = vmatprep.mubr.msk.bf16.mxu1 %vm342_vm0, %v4488_v38  ;;  %7708 = vmatpush3.bf16.msra.mxu1 %v8353_v3 }
 0x6b2   : >> { %7698 = vmatmul.mubr.msk.bf16.gmra.mrb[12].mxu1 %vm342_vm0, %v5106_v63 }
 0x6b3   : >> { %7709 = vmatprep.mubr.msk.bf16.mxu1 %vm8639_vm3, %v8638_v0 }
 0x77d   : >> { %v7695_v5 = vpop.f32.mrb[8].mxu1 }
 0x77e   : >> { %v5159_v6 = vpop.f32.mrb[9].mxu1  ;;  %v9502_v7 = vadd.f32 %v7695_v5, %v6906_v4  ;;  %v5368_v5 = vlaneseq }
 0x77f   : >> { %v9504_v8 = vadd.f32 %v6906_v4, %v5159_v6  ;;  %v7696_v12 = vpop.f32.mrb[10].mxu1 }
 0x780   : >> { %v5162_v9 = vpop.f32.mrb[11].mxu1  ;;  %v9507_v11 = vadd.f32 %v7696_v12, %v6906_v4  ;;  %v5216_v14 = vmax.f32 %v9502_v7, 0.0  ;;  %v5369_v6 = vshrl.u32 %v5368_v5, 7 }
 0x781   : >> { %v5214_v10 = vmax.f32 %v9504_v8, 0.0  ;;  %v9509_v13 = vadd.f32 %v6906_v4, %v5162_v9 }
 0x782   : >> { %v5217_v17 = vmax.f32 %v9507_v11, 0.0  ;;  %v5225_v24 = vsel %vm342_vm0, %v5216_v14, 0.0  ;;  %v5370_v12 = vsub.s32 0, %v5369_v6  ;;  %v8358_v11 = vld [vmem:[#allocation10 + $0x290] sm:$0xff] (%p1365_p7)  }
 0x783   : >> { %v5215_v15 = vmax.f32 %v9509_v13, 0.0  ;;  %v5222_v16 = vsel %vm342_vm0, %v5214_v10, 0.0  ;;  %7713 = vmatprep.subr.bf16.mxu1 (%p1365_p7), %v8358_v11 }
 0x784   : >> { %v5227_v27 = vsel %vm342_vm0, %v5217_v17, 0.0 }
 0x785   : >> { %v5223_v18 = vsel %vm342_vm0, %v5215_v15, 0.0  ;;  %v7699_v2 = vpop.f32.mrb[12].mxu1 }
 0x786   : >> { %v5224_v19 = vadd.f32 %v5223_v18, %v5222_v16  ;;  %v5175_v20 = vpop.f32.mrb[13].mxu1  ;;  %v9523_v21 = vadd.f32 %v7699_v2, %v6906_v4  ;;  %v5380_v18 = vld [vmem:[#allocation4] sm:$0xff]  ;;  %v5381_v2 = vld [vmem:[#allocation4 + $0x8] sm:$0xff] }
 0x787   : >> { %v9525_v22 = vadd.f32 %v6906_v4, %v5175_v20  ;;  %v7700_v23 = vpop.f32.mrb[14].mxu1  ;;  %v5383_v20 = vld [vmem:[#allocation4 + $0x18] sm:$0xff] }
 0x788   : >> { %v5226_v25 = vadd.f32 %v5225_v24, %v5224_v19  ;;  %v5178_v26 = vpop.f32.mrb[15].mxu1  ;;  %v9531_v29 = vadd.f32 %v7700_v23, %v6906_v4  ;;  %v5220_v32 = vmax.f32 %v9523_v21, 0.0  ;;  %v5382_v19 = vld [vmem:[#allocation4 + $0x10] sm:$0xff]  ;;  %v5384_v24 = vld [vmem:[#allocation4 + $0x20] sm:$0xff] }
 0x789   : >> { %v5218_v28 = vmax.f32 %v9525_v22, 0.0  ;;  %v9533_v30 = vadd.f32 %v6906_v4, %v5178_v26 }
 0x78a   : >> { %v5228_v31 = vadd.f32 %v5227_v27, %v5226_v25  ;;  %v5221_v36 = vmax.f32 %v9531_v29, 0.0  ;;  %v5233_v39 = vsel %vm342_vm0, %v5220_v32, 0.0  ;;  %v5385_v27 = vld [vmem:[#allocation4 + $0x28] sm:$0xff]  ;;  %v5386_v29 = vld [vmem:[#allocation4 + $0x30] sm:$0xff] }
 0x78b   : >> { %v5229_v33 = vsel %vm342_vm0, %v5218_v28, 0.0  ;;  %v5219_v34 = vmax.f32 %v9533_v30, 0.0  ;;  %v5387_v30 = vld [vmem:[#allocation4 + $0x38] sm:$0xff] }
 0x78c   : >> { %v5230_v35 = vadd.f32 %v5229_v33, %v5228_v31  ;;  %v5235_v41 = vsel %vm342_vm0, %v5221_v36, 0.0 }
 0x78d   : >> { %v5231_v37 = vsel %vm342_vm0, %v5219_v34, 0.0 }
 0x78e   : >> { %v5232_v38 = vadd.f32 %v5231_v37, %v5230_v35 }
 0x790   : >> { %v5234_v40 = vadd.f32 %v5233_v39, %v5232_v38 }
 0x792   : >> { %v5236_v42 = vadd.f32 %v5235_v41, %v5234_v40 }
 0x794   : >> { %v5237_v43 = vrot.slane %v5236_v42, 4 }
 0x796   : >> { %v5238_v57 = vadd.f32 %v5237_v43, %v5236_v42 }
 0x798   : >> { %v5239_v44 = vrot.slane %v5238_v57, 2 }
 0x79a   : >> { %v5240_v45 = vadd.f32 %v5239_v44, %v5238_v57  ;;  %v5451_v57 = vld [vmem:[#allocation2 + $0x1] sm:$0xff] (%p1365_p7) }
 0x79c   : >> { %v5241_v46 = vrot.slane %v5240_v45, 1 }
 0x79e   : >> { %v5242_v47 = vadd.f32 %v5241_v46, %v5240_v45 }
 0x7a0   : >> { %v5244_v59 = vmul.f32 0.015625, %v5242_v47 }
 0x7a2   : >> { %v5245_v48 = vpack.c.bf16 %v5244_v59, %v5244_v59 }
 0x7a4   : >> { %7704 = vmatmul.mubr.msk.bf16.vlgmr.msra.gmra.mrb[16].mxu0 %vm342_vm0, %v5245_v48 }
 0x877   : >> { %v5297_v50 = vpop.f32.mrb[16].mxu0 }
 0x878   : >> { %v5298_v51 = vadd.f32 %v5297_v50, %v5253_v49  ;;  %v7705_v52 = vpop.f32.mrb[17].mxu0 }
 0x879   : >> { %v5300_v62 = vpop.f32.mrb[18].mxu0 }
 0x87a   : >> { %v5303_v53 = vmax.f32 %v5298_v51, 0.0  ;;  %v7706_v61 = vpop.f32.mrb[19].mxu0 }
 0x87c   : >> { %v5304_v54 = vpack.c.bf16 %v5303_v53, %v5303_v53 }
 0x87e   : >> { %7710 = vmatmul.mubr.msk.bf16.vlgmr.msra.gmra.mrb[16].mxu1 %vm342_vm0, %v5304_v54 }
 0x87f   : > { %7714 = vmatpush3.bf16.msra.mxu1 (%p1365_p7), %v8358_v11 }
 0x951   : >> { %v5356_v56 = vpop.f32.mrb[16].mxu1 }
 0x952   : >> { %v5357_v58 = vadd.f32 %v6917_v55, %v5356_v56  ;;  %v7711_v60 = vpop.f32.mrb[17].mxu1  ;;  %v8362_v55 = vld [vmem:[#allocation10 + $0x2b8] sm:$0xff] (%p1365_p7)  }
 0x953   : >> { %v5359_v63 = vpop.f32.mrb[18].mxu1  ;;  %v8363_v56 = vld [vmem:[#allocation10 + $0x298] sm:$0xff] (%p1365_p7)  }
 0x954   : >> { %v6920_v0 = vmul.f32 -1.442695, %v5357_v58  ;;  %v7712_v1 = vpop.f32.mrb[19].mxu1  ;;  %v5439_v63 = vld [vmem:[#allocation2] sm:$0xff] (%p1365_p7) }
 0x956   : >> { %8354 = vpow2.f32 %v6920_v0 }
 0x960   : >> { %v8355_v3 = vpop.eup %8354 }
 0x961   : >> { %v5365_v4 = vadd.f32 1.0, %v8355_v3 }
 0x963   : >> { %8356 = vrcp.f32 %v5365_v4 }
 0x96d   : >> { %v8357_v9 = vpop.eup %8356 }
 0x96e   : >> { %v5371_v16 = vrot.slane %v8357_v9, %v5370_v12 }
 0x970   : >> { %v5372_v21 = vmul.f32 %v5371_v16, %v5214_v10  ;;  %v5373_v23 = vmul.f32 %v5371_v16, %v5215_v15  ;;  %v5374_v25 = vmul.f32 %v5371_v16, %v5216_v14  ;;  %v5375_v26 = vmul.f32 %v5371_v16, %v5217_v17  ;;  %v9568_v17 = vld [vmem:[#allocation10 + $0x2a8] sm:$0xff] (%p1365_p7)  }
 0x971   : >> { %v5376_v31 = vmul.f32 %v5371_v16, %v5218_v28  ;;  %v5377_v33 = vmul.f32 %v5371_v16, %v5219_v34  ;;  %v5378_v35 = vmul.f32 %v5371_v16, %v5220_v32  ;;  %v5379_v37 = vmul.f32 %v5371_v16, %v5221_v36  ;;  %1367 = sbr.rel (!%p1365_p7) target bundleno = 499 (0x1f3), region = 133  ;;  %7753 = vmatprep.subr.bf16.mxu0 (%p1365_p7), %v9568_v17  ;;  %v8360_v28 = vld [vmem:[#allocation10 + $0x288] sm:$0xff] (%p1365_p7)   ;;  %v8361_v34 = vld [vmem:[#allocation10 + $0x2b0] sm:$0xff] (%p1365_p7)  }
 0x972   : >> { %v5388_v8 = vadd.f32 %v5380_v18, %v5372_v21  ;;  %v5389_v10 = vadd.f32 %v5381_v2, %v5373_v23  ;;  %v5390_v38 = vadd.f32 %v5382_v19, %v5374_v25  ;;  %v5391_v13 = vadd.f32 %v5383_v20, %v5375_v26  ;;  %7754 = vmatpush3.bf16.msra.mxu0 (%p1365_p7), %v9568_v17 }
 0x973   : >> { %v5392_v15 = vadd.f32 %v5384_v24, %v5376_v31  ;;  %v5393_v39 = vadd.f32 %v5385_v27, %v5377_v33  ;;  %v5394_v7 = vadd.f32 %v5386_v29, %v5378_v35  ;;  %v5395_v14 = vadd.f32 %v5387_v30, %v5379_v37  ;;  %7723 = vmatprep.subr.bf16.mxu1 (%p1365_p7), %v8360_v28  ;;  %v8364_v24 = vld [vmem:[#allocation10 + $0x2c0] sm:$0xff] (%p1365_p7)  }
 0x974   : >> { %5396 = vst.msk [vmem:[#allocation4] sm:$0xff] %vm342_vm0, %v5388_v8  ;;  %5397 = vst.msk [vmem:[#allocation4 + $0x8] sm:$0xff] %vm342_vm0, %v5389_v10  ;;  %7763 = vmatprep.subr.bf16.mxu0 (%p1365_p7), %v8361_v34  ;;  %v8365_v27 = vld [vmem:[#allocation10 + $0x2a0] sm:$0xff] (%p1365_p7)   ;;  %v8366_v8 = vld [vmem:[#allocation10 + $0x2c8] sm:$0xff] (%p1365_p7)  }
 0x975   : >> { %5398 = vst.msk [vmem:[#allocation4 + $0x10] sm:$0xff] %vm342_vm0, %v5390_v38  ;;  %5399 = vst.msk [vmem:[#allocation4 + $0x18] sm:$0xff] %vm342_vm0, %v5391_v13  ;;  %v5629_v33 = vld [vmem:[#allocation2 + $0x2] sm:$0xff] (%p1365_p7)  ;;  %v6048_v13 = vld [vmem:[#allocation2 + $0x90] sm:$0xff] (%p1365_p7) }
 0x976   : >> { %5400 = vst.msk [vmem:[#allocation4 + $0x20] sm:$0xff] %vm342_vm0, %v5392_v15  ;;  %5401 = vst.msk [vmem:[#allocation4 + $0x28] sm:$0xff] %vm342_vm0, %v5393_v39 }
 0x977   : >> { %5402 = vst.msk [vmem:[#allocation4 + $0x30] sm:$0xff] %vm342_vm0, %v5394_v7  ;;  %5403 = vst.msk [vmem:[#allocation4 + $0x38] sm:$0xff] %vm342_vm0, %v5395_v14 }
 0x97b   : > { %v5404_v22 = vld [vmem:[#allocation4] sm:$0xff]  ;;  %v5405_v32 = vld [vmem:[#allocation4 + $0x8] sm:$0xff] }
 0x97c   : > { %5412 = vst.msk [vmem:[#allocation2 + $0x11] sm:$0xff] %vm342_vm0, %v5404_v22  ;;  %5413 = vst.msk [vmem:[#allocation2 + $0x21] sm:$0xff] %vm342_vm0, %v5405_v32  ;;  %v5406_v36 = vld [vmem:[#allocation4 + $0x10] sm:$0xff]  ;;  %v5407_v40 = vld [vmem:[#allocation4 + $0x18] sm:$0xff] }
 0x97d   : > { %v5408_v41 = vld [vmem:[#allocation4 + $0x20] sm:$0xff]  ;;  %5414 = vst.msk [vmem:[#allocation2 + $0x31] sm:$0xff] %vm342_vm0, %v5406_v36  ;;  %5415 = vst.msk [vmem:[#allocation2 + $0x41] sm:$0xff] %vm342_vm0, %v5407_v40  ;;  %v5409_v42 = vld [vmem:[#allocation4 + $0x28] sm:$0xff] }
 0x97e   : > { %5416 = vst.msk [vmem:[#allocation2 + $0x51] sm:$0xff] %vm342_vm0, %v5408_v41  ;;  %v5410_v43 = vld [vmem:[#allocation4 + $0x30] sm:$0xff]  ;;  %5417 = vst.msk [vmem:[#allocation2 + $0x61] sm:$0xff] %vm342_vm0, %v5409_v42  ;;  %v5411_v44 = vld [vmem:[#allocation4 + $0x38] sm:$0xff] }
 0x97f   : > { %5418 = vst.msk [vmem:[#allocation2 + $0x71] sm:$0xff] %vm342_vm0, %v5410_v43  ;;  %5419 = vst.msk [vmem:[#allocation2 + $0x81] sm:$0xff] %vm342_vm0, %v5411_v44  ;;  %v6254_v41 = vld [vmem:[#allocation2 + $0x92] sm:$0xff] }
 0x983   : > { %v5452_v45 = vld [vmem:[#allocation2 + $0x11] sm:$0xff]  ;;  %v5836_v47 = vld [vmem:[#allocation2 + $0x21] sm:$0xff] }
 0x984   : > { %v5459_v46 = vpack.c.bf16 %v5452_v45, %v5451_v57  ;;  %v9580_v59 = vld [vmem:[#allocation2 + $0x12] sm:$0xff]  ;;  %v9582_v48 = vld [vmem:[#allocation2 + $0x22] sm:$0xff]  ;;  %v5843_v49 = vpack.c.bf16 %v5836_v47, %v5452_v45 }
 0x985   : > { %v5454_v50 = vld [vmem:[#allocation2 + $0x31] sm:$0xff]  ;;  %v5838_v51 = vld [vmem:[#allocation2 + $0x41] sm:$0xff]  ;;  %v5946_v54 = vpack.c.bf16 %v9582_v48, %v9580_v59  ;;  %v5637_v37 = vpack.c.bf16 %v9580_v59, %v5629_v33 }
 0x986   : > { %7715 = vmatprep.mubr.msk.bf16.mxu1 %vm342_vm0, %v5459_v46  ;;  %v9585_v52 = vld [vmem:[#allocation2 + $0x51] sm:$0xff]  ;;  %7755 = vmatprep.mubr.msk.bf16.mxu0 %vm342_vm0, %v5843_v49  ;;  %v9588_v62 = vpack.c.bf16 %v5454_v50, %v5836_v47  ;;  %v5844_v53 = vpack.c.bf16 %v5838_v51, %v5454_v50  ;;  %v9598_v58 = vld [vmem:[#allocation2 + $0x61] sm:$0xff]  ;;  %v6966_v47 = vld [vmem:[#allocation11 + $0x9] ss:$0 sm:$0xff] }
 0x987   : > { %v9591_v61 = vpack.c.bf16 %v9585_v52, %v5838_v51  ;;  %v9600_v60 = vld [vmem:[#allocation2 + $0x71] sm:$0xff]  ;;  %v5941_v4 = vld [vmem:[#allocation2 + $0x42] sm:$0xff]  ;;  %v5845_v40 = vpack.c.bf16 %v9598_v58, %v9585_v52 }
 0x988   : > { %7716 = vmatmul.mubr.msk.bf16.vlgmr.msra.gmra.mrb[0].mxu1 %vm342_vm0, %v9588_v62  ;;  %7756 = vmatmul.mubr.msk.bf16.vlgmr.msra.gmra.mrb[0].mxu0 %vm342_vm0, %v5844_v53  ;;  %v5440_v0 = vld [vmem:[#allocation2 + $0x10] sm:$0xff]  ;;  %v5462_v1 = vpack.c.bf16 %v9600_v60, %v9598_v58  ;;  %v5943_v12 = vld [vmem:[#allocation2 + $0x62] sm:$0xff] }
 0x989   : > { %7724 = vmatpush3.bf16.msra.mxu1 %v8360_v28  ;;  %7764 = vmatpush3.bf16.msra.mxu0 %v8361_v34  ;;  %v5940_v3 = vld [vmem:[#allocation2 + $0x32] sm:$0xff]  ;;  %v5447_v5 = vpack.c.bf16 %v5440_v0, %v5439_v63  ;;  %v5441_v16 = vld [vmem:[#allocation2 + $0x20] sm:$0xff]  ;;  %v6367_v63 = vld [vmem:[#allocation3 + $0x8] sm:$0xff] }
 0x98a   : > { %7719 = vmatprep.mubr.msk.bf16.mxu1 %vm342_vm0, %v9591_v61  ;;  %7765 = vmatprep.mubr.msk.bf16.mxu0 %vm342_vm0, %v5946_v54  ;;  %v5942_v6 = vld [vmem:[#allocation2 + $0x52] sm:$0xff]  ;;  %v5947_v9 = vpack.c.bf16 %v5941_v4, %v5940_v3  ;;  %v5443_v19 = vld [vmem:[#allocation2 + $0x40] sm:$0xff]  ;;  %v5638_v10 = vpack.c.bf16 %v5940_v3, %v9582_v48  ;;  %v5740_v14 = vpack.c.bf16 %v5441_v16, %v5440_v0 }
 0x98b   : > { %7773 = vmatprep.subr.bf16.mxu0 %v8362_v55  ;;  %7733 = vmatprep.subr.bf16.mxu1 %v8363_v56  ;;  %v5442_v18 = vld [vmem:[#allocation2 + $0x30] sm:$0xff]  ;;  %v5948_v2 = vpack.c.bf16 %v5943_v12, %v5942_v6  ;;  %v5945_v25 = vld [vmem:[#allocation2 + $0x82] sm:$0xff]  ;;  %v5639_v15 = vpack.c.bf16 %v5942_v6, %v5941_v4 }
 0x98c   : > { %v5444_v20 = vld [vmem:[#allocation2 + $0x50] sm:$0xff]  ;;  %v5448_v21 = vpack.c.bf16 %v5442_v18, %v5441_v16  ;;  %v5445_v30 = vld [vmem:[#allocation2 + $0x60] sm:$0xff]  ;;  %v5741_v11 = vpack.c.bf16 %v5443_v19, %v5442_v18  ;;  %v6258_v42 = vpack.c.bf16 %v6254_v41, %v5945_v25 }
 0x98d   : > { %v5944_v23 = vld [vmem:[#allocation2 + $0x72] sm:$0xff]  ;;  %v5449_v26 = vpack.c.bf16 %v5444_v20, %v5443_v19  ;;  %v6047_v38 = vld [vmem:[#allocation2 + $0x80] sm:$0xff]  ;;  %v5742_v32 = vpack.c.bf16 %v5445_v30, %v5444_v20 }
 0x98e   : > { %v5949_v29 = vpack.c.bf16 %v5945_v25, %v5944_v23  ;;  %v5446_v31 = vld [vmem:[#allocation2 + $0x70] sm:$0xff]  ;;  %v6052_v39 = vpack.c.bf16 %v6048_v13, %v6047_v38  ;;  %v5640_v7 = vpack.c.bf16 %v5944_v23, %v5943_v12  ;;  %v6150_v22 = vld [vmem:[#allocation2 + $0x81] sm:$0xff] }
 0x98f   : > { %v5450_v35 = vpack.c.bf16 %v5446_v31, %v5445_v30  ;;  %v6151_v28 = vld [vmem:[#allocation2 + $0x91] sm:$0xff]  ;;  %v5743_v36 = vpack.c.bf16 %v6047_v38, %v5446_v31 }
 0x990   : > { %7720 = vmatmul.mubr.msk.bf16.gmra.mrb[4].mxu1 %vm342_vm0, %v5462_v1  ;;  %v6155_v34 = vpack.c.bf16 %v6151_v28, %v6150_v22  ;;  %v6368_v49 = vld [vmem:[#allocation3 + $0x10] sm:$0xff] }
 0x991   : > { %7725 = vmatprep.mubr.msk.bf16.mxu1 %vm342_vm0, %v5447_v5  ;;  %v6372_v18 = vld [vmem:[#allocation3 + $0x30] sm:$0xff] }
 0x994   : > { %7766 = vmatmul.mubr.msk.bf16.vlgmr.msra.gmra.mrb[0].mxu0 %vm342_vm0, %v5947_v9 }
 0x995   : > { %7774 = vmatpush3.bf16.msra.mxu0 %v8362_v55  ;;  %7769 = vmatprep.mubr.msk.bf16.mxu0 %vm342_vm0, %v5948_v2  ;;  %v6369_v55 = vld [vmem:[#allocation3 + $0x18] sm:$0xff] }
 0x996   : > { %7783 = vmatprep.subr.bf16.mxu0 %v8364_v24 }
 0x998   : > { %7726 = vmatmul.mubr.msk.bf16.vlgmr.msra.gmra.mrb[0].mxu1 %vm342_vm0, %v5448_v21 }
 0x999   : > { %7734 = vmatpush3.bf16.msra.mxu1 %v8363_v56  ;;  %7729 = vmatprep.mubr.msk.bf16.mxu1 %vm342_vm0, %v5449_v26 }
 0x99a   : > { %7743 = vmatprep.subr.bf16.mxu1 %v8365_v27 }
 0x99c   : > { %7770 = vmatmul.mubr.msk.bf16.gmra.mrb[4].mxu0 %vm342_vm0, %v5949_v29  ;;  %v6373_v29 = vld [vmem:[#allocation3 + $0x38] sm:$0xff] }
 0x99d   : > { %7775 = vmatprep.mubr.msk.bf16.mxu0 %vm342_vm0, %v5448_v21  ;;  %v6370_v21 = vld [vmem:[#allocation3 + $0x20] sm:$0xff] }
 0x9a0   : > { %7730 = vmatmul.mubr.msk.bf16.gmra.mrb[4].mxu1 %vm342_vm0, %v5450_v35 }
 0x9a1   : > { %7735 = vmatprep.mubr.msk.bf16.mxu1 %vm342_vm0, %v5637_v37 }
 0x9a4   : > { %7776 = vmatmul.mubr.msk.bf16.vlgmr.msra.gmra.mrb[0].mxu0 %vm342_vm0, %v5449_v26 }
 0x9a5   : > { %7784 = vmatpush3.bf16.msra.mxu0 %v8364_v24  ;;  %7779 = vmatprep.mubr.msk.bf16.mxu0 %vm342_vm0, %v5450_v35  ;;  %v6371_v35 = vld [vmem:[#allocation3 + $0x28] sm:$0xff] }
 0x9a6   : > { %7793 = vmatprep.subr.bf16.mxu0 %v8366_v8 }
 0x9a8   : > { %7736 = vmatmul.mubr.msk.bf16.vlgmr.msra.gmra.mrb[0].mxu1 %vm342_vm0, %v5638_v10 }
 0x9a9   : > { %7744 = vmatpush3.bf16.msra.mxu1 %v8365_v27  ;;  %7739 = vmatprep.mubr.msk.bf16.mxu1 %vm342_vm0, %v5639_v15 }
 0x9aa   : > { %8125 = vmatprep.subr.bf16.mxu1 %v9568_v17 }
 0x9ac   : > { %7780 = vmatmul.mubr.msk.bf16.gmra.mrb[4].mxu0 %vm342_vm0, %v6052_v39 }
 0x9ad   : > { %7785 = vmatprep.mubr.msk.bf16.mxu0 %vm342_vm0, %v9588_v62  ;;  %v6366_v62 = vld [vmem:[#allocation3] sm:$0xff] }
 0x9b0   : > { %7740 = vmatmul.mubr.msk.bf16.gmra.mrb[4].mxu1 %vm342_vm0, %v5640_v7 }
 0x9b1   : > { %7745 = vmatprep.mubr.msk.bf16.mxu1 %vm342_vm0, %v5740_v14 }
 0x9b4   : > { %7786 = vmatmul.mubr.msk.bf16.vlgmr.msra.gmra.mrb[0].mxu0 %vm342_vm0, %v9591_v61 }
 0x9b5   : > { %7794 = vmatpush3.bf16.msra.mxu0 %v8366_v8  ;;  %7789 = vmatprep.mubr.msk.bf16.mxu0 %vm342_vm0, %v5462_v1 }
 0x9b8   : > { %7746 = vmatmul.mubr.msk.bf16.vlgmr.msra.gmra.mrb[0].mxu1 %vm342_vm0, %v5741_v11 }
 0x9b9   : > { %8126 = vmatpush3.bf16.msra.mxu1 %v9568_v17  ;;  %7749 = vmatprep.mubr.msk.bf16.mxu1 %vm342_vm0, %v5742_v32  ;;  %v5846_v17 = vpack.c.bf16 %v6150_v22, %v9600_v60 }
 0x9bc   : > { %7790 = vmatmul.mubr.msk.bf16.gmra.mrb[4].mxu0 %vm342_vm0, %v6155_v34 }
 0x9bd   : > { %7795 = vmatprep.mubr.msk.bf16.mxu0 %vm342_vm0, %v5638_v10 }
 0x9c0   : > { %7750 = vmatmul.mubr.msk.bf16.gmra.mrb[4].mxu1 %vm342_vm0, %v5743_v36 }
 0x9c1   : > { %7759 = vmatprep.mubr.msk.bf16.mxu1 %vm342_vm0, %v5845_v40 }
 0x9c4   : > { %7796 = vmatmul.mubr.msk.bf16.vlgmr.msra.gmra.mrb[0].mxu0 %vm342_vm0, %v5639_v15 }
 0x9c5   : > { %7799 = vmatprep.mubr.msk.bf16.mxu0 %vm342_vm0, %v5640_v7 }
 0x9cc   : > { %7760 = vmatmul.mubr.msk.bf16.vlgmr.msra.gmra.mrb[4].mxu1 %vm342_vm0, %v5846_v17  ;;  %7800 = vmatmul.mubr.msk.bf16.gmra.mrb[4].mxu0 %vm342_vm0, %v6258_v42 }
 0xa8b   : > { %v7747_v43 = vpop.f32.mrb[0].mxu1 }
 0xa8c   : > { %v5796_v57 = vpop.f32.mrb[1].mxu1 }
 0xa8d   : > { %v7748_v44 = vpop.f32.mrb[2].mxu1 }
 0xa8e   : > { %v5799_v45 = vpop.f32.mrb[3].mxu1 }
 0xa97   : > { %v7797_v46 = vpop.f32.mrb[0].mxu0 }
 0xa98   : > { %v8127_v59 = vadd.f32 %v7797_v46, %v7747_v43  ;;  %v6311_v48 = vpop.f32.mrb[1].mxu0 }
 0xa99   : > { %v8128_v50 = vadd.f32 %v6311_v48, %v5796_v57  ;;  %v7798_v51 = vpop.f32.mrb[2].mxu0 }
 0xa9a   : > { %v6360_v52 = vadd.f32 %v8127_v59, %v6966_v47  ;;  %v8129_v53 = vadd.f32 %v7798_v51, %v7748_v44  ;;  %v6314_v61 = vpop.f32.mrb[3].mxu0 }
 0xa9b   : > { %v6358_v54 = vadd.f32 %v8128_v50, %v6966_v47  ;;  %v8130_v56 = vadd.f32 %v6314_v61, %v5799_v45 }
 0xa9c   : > { %v6376_v58 = vadd.f32 %v6368_v49, %v6360_v52  ;;  %v6361_v60 = vadd.f32 %v8129_v53, %v6966_v47 }
 0xa9d   : > { %v6374_v0 = vadd.f32 %v6366_v62, %v6358_v54  ;;  %v6359_v1 = vadd.f32 %v8130_v56, %v6966_v47 }
 0xa9e   : > { %6384 = vst.msk [vmem:[%s9066_s28 + $0x10] sm:$0xff] %vm342_vm0, %v6376_v58  ;;  %v6377_v3 = vadd.f32 %v6369_v55, %v6361_v60 }
 0xa9f   : > { %6382 = vst.msk [vmem:[%s9066_s28] sm:$0xff] %vm342_vm0, %v6374_v0  ;;  %v6375_v4 = vadd.f32 %v6367_v63, %v6359_v1  ;;  %v7761_v5 = vpop.f32.mrb[4].mxu1  ;;  %v7801_v6 = vpop.f32.mrb[4].mxu0 }
 0xaa0   : > { %6385 = vst.msk [vmem:[%s9066_s28 + $0x18] sm:$0xff] %vm342_vm0, %v6377_v3  ;;  %v8131_v12 = vadd.f32 %v7801_v6, %v7761_v5  ;;  %v5915_v9 = vpop.f32.mrb[5].mxu1  ;;  %v6327_v16 = vpop.f32.mrb[5].mxu0 }
 0xaa1   : > { %6383 = vst.msk [vmem:[%s9066_s28 + $0x8] sm:$0xff] %vm342_vm0, %v6375_v4  ;;  %v8132_v2 = vadd.f32 %v6327_v16, %v5915_v9  ;;  %v7762_v19 = vpop.f32.mrb[6].mxu1  ;;  %v7802_v20 = vpop.f32.mrb[6].mxu0 }
 0xaa2   : > { %v6364_v24 = vadd.f32 %v8131_v12, %v6966_v47  ;;  %v8133_v23 = vadd.f32 %v7802_v20, %v7762_v19  ;;  %v5918_v25 = vpop.f32.mrb[7].mxu1  ;;  %v6330_v26 = vpop.f32.mrb[7].mxu0 }
 0xaa3   : > { %v6362_v27 = vadd.f32 %v8132_v2, %v6966_v47  ;;  %v8134_v30 = vadd.f32 %v6330_v26, %v5918_v25 }
 0xaa4   : > { %v6380_v31 = vadd.f32 %v6372_v18, %v6364_v24  ;;  %v6365_v33 = vadd.f32 %v8133_v23, %v6966_v47 }
 0xaa5   : > { %v6378_v37 = vadd.f32 %v6370_v21, %v6362_v27  ;;  %v6363_v8 = vadd.f32 %v8134_v30, %v6966_v47 }
 0xaa6   : > { %6388 = vst.msk [vmem:[%s9066_s28 + $0x30] sm:$0xff] %vm342_vm0, %v6380_v31  ;;  %v6381_v10 = vadd.f32 %v6373_v29, %v6365_v33 }
 0xaa7   : > { %6386 = vst.msk [vmem:[%s9066_s28 + $0x20] sm:$0xff] %vm342_vm0, %v6378_v37  ;;  %v6379_v38 = vadd.f32 %v6371_v35, %v6363_v8 }
 0xaa8   : > { %6389 = vst.msk [vmem:[%s9066_s28 + $0x38] sm:$0xff] %vm342_vm0, %v6381_v10 }
 0xaa9   : > { %6387 = vst.msk [vmem:[%s9066_s28 + $0x28] sm:$0xff] %vm342_vm0, %v6379_v38 }
 0xaaa   : > { %8550 = shalt.err (!%p8547_p6)
}
 0xaab   : > { %s8551_s28 = scalar_lea.hbm %s9661_s16, 1024  ;;  %s8555_s9 = scalar_lea.hbm %s9719_s6, 2048 }
 0xaac   : > { %p8552_p11 = scmp.ne.s32.totalorder %s9661_s16, %s8551_s28  ;;  %p8556_p5 = scmp.lt.u32.totalorder %s9661_s16, %s9719_s6 }
 0xaad   : > { %p8557_p9 = scmp.lt.u32.totalorder %s8555_s9, %s8551_s28  ;;  %p8559_p10 = scmp.lt.u32.totalorder %s8551_s28, %s9661_s16 }
 0xaae   : > { %p8553_p12 = pnand %p8552_p11, %p9742_p4 }
 0xaaf   : > { %p8558_p7 = por %p8557_p9, %p8556_p5 }
 0xab0   : > { %p8554_p0 = pneg %p8553_p12 }
 0xab1   : > { %p8560_p13 = por %p8559_p10, %p8558_p7 }
 0xab3   : > { %p8561_p1 = pnand %p8560_p13, %p8554_p0 }
 0xab5   : > { %8564 = shalt.err (!%p8561_p1)
}
 0xab6   : > { %s8641_s10 = smov 128   ;;  %s8642_s17 = smov 8  }
 0xab7   : > { %8213 = dma.vmem_to_hbm [thread:$0]  (%p9742_p4), %s9663_s8, 1024, %s9661_s16, %s6391_s27, %s8641_s10, %s8641_s10, %s8642_s17  }
 0xab8 PF: > { %s6419_s12 = sand.u32 1, %s8607_s21   ;;  %p9743_p3 = scmp.ne.s32.totalorder %s9733_s19, 0 }
 0xab9   : > { %p9744_p2 = scmp.ge.s32.totalorder %s8619_s24, 2  ;;  %s6420_s14 = scalar_lea.sflag [#allocation7], %s6419_s12 }
 0xabb   : > { %p8236_p8 = pnand %p9744_p2, %p9743_p3 }
 0xabd   : > { %8602 = dma.done.wait (!%p8236_p8), %s6420_s14, 1024  }
 0xabe   : > { %8604 = vsyncadd (!%p8236_p8), %s6420_s14, 4294966272  ;;  %p22_p6 = scmp.ge.s32.totalorder %s8843_s15, 4   ;;  %s9745_s21 = smov %s8611_s22 }
 0xabf   : > { %s9746_s22 = smov %s8615_s23  ;;  %s9747_s23 = smov %s8855_s18 }
 0xac0   : > { %s9748_s24 = smov %s8843_s15  ;;  %24 = sbr.rel (!%p22_p6) target bundleno = 8 (0x8), region = 144 }
 0xac7   :  { %6425 = vsyncpa [#allocation6], 1 }
 0xac8   :  { %6427 = vsyncpa [#allocation6 + $0x1], 1 }
 0xac9   :  { %6428 = vsyncpa [#allocation9], 1 }
 0xaca   :  { %6429 = vsyncpa [#allocation12], 1 }
 0xacb   :  { %6430 = vsyncpa [#allocation15], 1 }
 0xacc   :  { %6431 = vsyncpa [#allocation7], 1 }
 0xacd   :  { %6433 = vsyncpa [#allocation7 + $0x1], 1 }

</bundles_post_ra>
